<compile_context>
chip_gen: v7x
topology: tpu7x:2x2x1
jax: 0.10.0
libtpu: 0.0.40
codegen_flags: <defaults>
</compile_context>

<pallas_src>
import functools
import math

import jax
import jax.numpy as jnp
from jax import lax
from jax.experimental import pallas as pl
from jax.experimental.pallas import tpu as pltpu


# ----------------------------------------------------------------------------
# Pallas kernel: all stacked StochasticLSTM layers + folded head, one invocation.
#
#   x_ref   : (T, Bp, H)      layer-0 input, features zero-padded to H, batch padded
#   zx_ref  : (L, Bp, 4H)     per-layer input-gate dropout masks (gate-major lanes)
#   zh_ref  : (L, Bp, 4H)     per-layer hidden-gate dropout masks
#   wbd_ref : (L, 4H, 4H)     block-diag [Wi^T|Wf^T|Wo^T|Wg^T] per layer  (bf16)
#   ubd_ref : (L, 4H, 4H)     block-diag [Ui^T|Uf^T|Uo^T|Ug^T] per layer  (bf16)
#   b_ref   : (L, 1, 4H)      merged gate bias (wb + ub), gate-major
#   wc_ref  : (1, H)          folded head weight  (fc_mean.w @ fc1.w)
#   bc_ref  : (1, 1)          folded head bias
#   mean_ref: (Bp, 1)         output
#   gx_sc   : (T, Bp, 4H)     VMEM scratch, hoisted x-gate pre-activations
#   seq_sc  : (T, Bp, H)      VMEM scratch, inter-layer sequence buffer (hn)
# ----------------------------------------------------------------------------
def _stacked_lstm_head_kernel(x_ref, zx_ref, zh_ref, wbd_ref, ubd_ref, b_ref,
                              wc_ref, bc_ref, mean_ref, gx_sc, seq_sc):
    T, Bp, H = x_ref.shape
    L = wbd_ref.shape[0]
    H4 = 4 * H

    h = jnp.zeros((Bp, H), jnp.float32)
    c = jnp.zeros((Bp, H), jnp.float32)

    for l in range(L):                      # static (small) layer loop
        # ---- hoisted input projection: whole sequence, one fused block-diag matmul
        if l == 0:
            xl = x_ref[...]                 # (T, Bp, H)
        else:
            xl = seq_sc[...]                # previous layer's hn (VMEM only)
        zx_l = zx_ref[l]                    # (Bp, 4H)
        xz = jnp.concatenate([xl, xl, xl, xl], axis=-1) * zx_l[None]     # (T, Bp, 4H)
        gx = jnp.dot(xz.reshape(T * Bp, H4).astype(wbd_ref.dtype),
                     wbd_ref[l],
                     preferred_element_type=jnp.float32) + b_ref[l]      # (T*Bp, 4H)
        gx_sc[...] = gx.reshape(T, Bp, H4)

        zh_l = zh_ref[l]                    # (Bp, 4H)
        u_l = ubd_ref[l]                    # (4H, 4H)
        write_seq = (l < L - 1)             # last layer: only h_T is needed

        def step(t, carry, zh_l=zh_l, u_l=u_l, write_seq=write_seq):
            h_t, c_t = carry
            hm = jnp.concatenate([h_t, h_t, h_t, h_t], axis=-1) * zh_l   # (Bp, 4H)
            gates = gx_sc[t] + jnp.dot(hm.astype(u_l.dtype), u_l,
                                       preferred_element_type=jnp.float32)
            i = jax.nn.sigmoid(gates[:, 0 * H:1 * H])
            f = jax.nn.sigmoid(gates[:, 1 * H:2 * H])
            o = jax.nn.sigmoid(gates[:, 2 * H:3 * H])
            g = jnp.tanh(gates[:, 3 * H:4 * H])
            c_new = f * c_t + i * g
            h_new = o * jnp.tanh(c_new)
            if write_seq:
                seq_sc[t] = h_new
            return h_new, c_new

        h, c = lax.fori_loop(0, T, step, (h, c), unroll=True)

    # ---- folded head: mean = fc_mean(fc1(h_T)) = h_T . wc + bc  (no activation)
    mean = jnp.sum(h * wc_ref[...], axis=-1, keepdims=True) + bc_ref[...]
    mean_ref[...] = mean.astype(mean_ref.dtype)


def stacked_lstm_head_pallas(x0, zx, zh, w_bd, u_bd, bias, head_w, head_b):
    T, Bp, H = x0.shape
    return pl.pallas_call(
        _stacked_lstm_head_kernel,
        out_shape=jax.ShapeDtypeStruct((Bp, 1), jnp.float32),
        scratch_shapes=[
            pltpu.VMEM((T, Bp, 4 * H), jnp.float32),   # hoisted x-gate pre-activations
            pltpu.VMEM((T, Bp, H), jnp.float32),       # inter-layer sequence buffer
        ],
    )(x0, zx, zh, w_bd, u_bd, bias, head_w, head_b)


# ----------------------------------------------------------------------------
# Concrete-dropout mask sampling (glue; matches StochasticLSTMCell._sample_mask).
# input_size > 1 always holds here (value_embedding + 1 and hidden_size), so the
# input_size == 1 branch of the reference is never taken.
# ----------------------------------------------------------------------------
def sample_masks(key, p, B, input_size, hidden_size):
    eps = 1e-7
    t = 0.1
    kx, kh = jax.random.split(key)
    ux = jax.random.uniform(kx, (4, B, input_size), dtype=jnp.float32)
    uh = jax.random.uniform(kh, (4, B, hidden_size), dtype=jnp.float32)

    def _z(u):
        logit = (math.log(p + eps) - math.log(1.0 - p + eps)
                 + jnp.log(u + eps) - jnp.log(1.0 - u + eps)) / t
        return (1.0 - jax.nn.sigmoid(logit)) / (1.0 - p)

    return _z(ux), _z(uh)


# ----------------------------------------------------------------------------
# NetNoUnc forward
# ----------------------------------------------------------------------------
def net_no_unc_forward(params, input_value, input_time, dropout_key):
    # embedding lookup (gather) — plain JAX glue
    emb = params["embedding"][input_value]                        # (B, T, E)
    combined = jnp.concatenate(
        [emb, input_time[..., None].astype(emb.dtype)], axis=2)   # (B, T, E+1)
    x = jnp.transpose(combined, (1, 0, 2))                        # (T, B, E+1) time-major

    T, B, I0 = x.shape
    H = params["hidden_size"]
    L = params["num_layers"]
    p = params["dropout"]
    assert I0 <= H, "layer-0 input width must not exceed hidden size for padding"

    Bp = ((B + 7) // 8) * 8                                       # sublane-pad batch

    # layer-0 input: pad features -> H, batch -> Bp (zeros; padded rows discarded)
    x0 = jnp.zeros((T, Bp, H), jnp.float32).at[:, :B, :I0].set(x.astype(jnp.float32))

    # per-layer dropout masks, gate-major concatenated and padded
    keys = jax.random.split(dropout_key, L)
    zx_list, zh_list = [], []
    for l in range(L):
        in_sz = params["layer_in_sizes"][l]
        zx, zh = sample_masks(keys[l], p, B, in_sz, H)            # (4,B,in_sz), (4,B,H)
        zx_p = jnp.ones((4, Bp, H), jnp.float32).at[:, :B, :in_sz].set(zx)
        zh_p = jnp.ones((4, Bp, H), jnp.float32).at[:, :B, :].set(zh)
        zx_list.append(jnp.transpose(zx_p, (1, 0, 2)).reshape(Bp, 4 * H))
        zh_list.append(jnp.transpose(zh_p, (1, 0, 2)).reshape(Bp, 4 * H))
    zx_all = jnp.stack(zx_list)                                   # (L, Bp, 4H)
    zh_all = jnp.stack(zh_list)                                   # (L, Bp, 4H)

    mean_p = stacked_lstm_head_pallas(
        x0, zx_all, zh_all,
        params["w_bd"], params["u_bd"], params["bias"],
        params["head_w"], params["head_b"])

    mean = mean_p[:B]                                             # drop batch padding
    return mean, jnp.array(0)


# ----------------------------------------------------------------------------
# Deterministic parameter init (mirrors shapes in __init__ / init_weights),
# converted to kernel-ready block-diagonal / folded form.
# ----------------------------------------------------------------------------
def init_params(key, num_features_df, hidden_size, num_layers, value_embedding,
                matmul_dtype=jnp.bfloat16):
    H = hidden_size
    H2 = H // 2
    input_size = value_embedding + 1
    k_lstm = 1.0 / math.sqrt(H)

    keys = iter(jax.random.split(key, 1 + 4 * num_layers + 4))

    emb = jax.random.normal(next(keys), (num_features_df + 1, value_embedding),
                            dtype=jnp.float32)
    emb = emb.at[0].set(0.0)                                      # padding_idx=0

    w_bd_layers, u_bd_layers, b_layers, in_sizes = [], [], [], []
    in_sz = input_size
    for _ in range(num_layers):
        w = jax.random.uniform(next(keys), (4, H, in_sz), minval=-k_lstm, maxval=k_lstm)
        wb = jax.random.uniform(next(keys), (4, H), minval=-k_lstm, maxval=k_lstm)
        u = jax.random.uniform(next(keys), (4, H, H), minval=-k_lstm, maxval=k_lstm)
        ub = jax.random.uniform(next(keys), (4, H), minval=-k_lstm, maxval=k_lstm)

        # block-diagonal (4H, 4H): gate block k holds W[k]^T / U[k]^T; layer-0 W rows
        # beyond the real input width stay zero (input features are zero-padded to H).
        w_bd = jnp.zeros((4 * H, 4 * H), jnp.float32)
        u_bd = jnp.zeros((4 * H, 4 * H), jnp.float32)
        for k in range(4):
            w_bd = w_bd.at[k * H:k * H + in_sz, k * H:(k + 1) * H].set(w[k].T)
            u_bd = u_bd.at[k * H:(k + 1) * H, k * H:(k + 1) * H].set(u[k].T)

        w_bd_layers.append(w_bd)
        u_bd_layers.append(u_bd)
        b_layers.append((wb + ub).reshape(1, 4 * H))              # merged gate bias
        in_sizes.append(in_sz)
        in_sz = H

    k_fc1 = 1.0 / math.sqrt(H)
    fc1_w = jax.random.uniform(next(keys), (H2, H), minval=-k_fc1, maxval=k_fc1)
    fc1_b = jax.random.uniform(next(keys), (H2,), minval=-k_fc1, maxval=k_fc1)
    k_fcm = 1.0 / math.sqrt(H2)
    fcm_w = jax.random.uniform(next(keys), (1, H2), minval=-k_fcm, maxval=k_fcm)
    fcm_b = jax.random.uniform(next(keys), (1,), minval=-k_fcm, maxval=k_fcm)

    # fold fc1 ∘ fc_mean (no activation between them in forward()):
    head_w = (fcm_w @ fc1_w).astype(jnp.float32)                              # (1, H)
    head_b = (fcm_w @ fc1_b.reshape(H2, 1) + fcm_b.reshape(1, 1)).astype(jnp.float32)

    return {
        "embedding": emb,
        "hidden_size": H,
        "num_layers": num_layers,
        "dropout": 0.2,
        "layer_in_sizes": tuple(in_sizes),
        "w_bd": jnp.stack(w_bd_layers).astype(matmul_dtype),      # (L, 4H, 4H) bf16
        "u_bd": jnp.stack(u_bd_layers).astype(matmul_dtype),      # (L, 4H, 4H) bf16
        "bias": jnp.stack(b_layers).astype(jnp.float32),          # (L, 1, 4H)  f32
        "head_w": head_w,                                         # (1, H)      f32
        "head_b": head_b,                                         # (1, 1)      f32
    }


if __name__ == "__main__":
    # Small shapes: batch=2, seq=8, num_features_df=10, value_embedding=7 (input_size=8),
    # hidden_size=32 (4H = 128 lanes), num_layers=2.
    B, T = 2, 8
    num_features_df, value_embedding = 10, 7
    hidden_size, num_layers = 32, 2

    root = jax.random.PRNGKey(0)
    k_params, k_val, k_time, k_drop = jax.random.split(root, 4)

    params = init_params(k_params, num_features_df, hidden_size, num_layers,
                         value_embedding)

    input_value = jax.random.randint(k_val, (B, T), 0, num_features_df + 1,
                                     dtype=jnp.int32)
    input_time = jax.random.uniform(k_time, (B, T), dtype=jnp.float32)

    mean, zero = net_no_unc_forward(params, input_value, input_time, k_drop)
    jax.block_until_ready((mean, zero))

    assert mean.shape == (B, 1) and mean.dtype == jnp.float32
    assert bool(jnp.all(jnp.isfinite(mean)))
    print("KERNEL_OK")
</pallas_src>

<mosaic_0001>
module attributes {stable_mosaic.version = 11 : i64} {
  func.func @_stacked_lstm_head_kernel(%arg0: memref<8x8x32xf32, #tpu.memory_space<vmem>>, %arg1: memref<2x8x128xf32, #tpu.memory_space<vmem>>, %arg2: memref<2x8x128xf32, #tpu.memory_space<vmem>>, %arg3: memref<2x128x128xbf16, #tpu.memory_space<vmem>>, %arg4: memref<2x128x128xbf16, #tpu.memory_space<vmem>>, %arg5: memref<2x1x128xf32, #tpu.memory_space<vmem>>, %arg6: memref<1x32xf32, #tpu.memory_space<vmem>>, %arg7: memref<1x1xf32, #tpu.memory_space<vmem>>, %arg8: memref<8x1xf32, #tpu.memory_space<vmem>>, %arg9: memref<8x8x128xf32, #tpu.memory_space<vmem>>, %arg10: memref<8x8x32xf32, #tpu.memory_space<vmem>>) attributes {dimension_semantics = [], scalar_prefetch = 0 : i64, scratch_operands = 2 : i64, tpu.core_type = #tpu.core_type<tc>} {
    %cst = arith.constant 0.000000e+00 : f32
    %0 = vector.broadcast %cst : f32 to vector<8x32xf32>
    %cst_0 = arith.constant 0.000000e+00 : f32
    %1 = vector.broadcast %cst_0 : f32 to vector<8x32xf32>
    %c0 = arith.constant 0 : index
    %c0_1 = arith.constant 0 : index
    %c0_2 = arith.constant 0 : index
    %2 = vector.load %arg0[%c0, %c0_1, %c0_2] : memref<8x8x32xf32, #tpu.memory_space<vmem>>, vector<8x8x32xf32>
    %c0_3 = arith.constant 0 : index
    %c0_4 = arith.constant 0 : index
    %c0_5 = arith.constant 0 : index
    %3 = vector.load %arg1[%c0_3, %c0_4, %c0_5] : memref<2x8x128xf32, #tpu.memory_space<vmem>>, vector<1x8x128xf32>
    %4 = vector.shape_cast %3 : vector<1x8x128xf32> to vector<8x128xf32>
    %5 = tpu.concatenate %2, %2, %2, %2 in 2 : vector<8x8x32xf32>, vector<8x8x32xf32>, vector<8x8x32xf32>, vector<8x8x32xf32> -> vector<8x8x128xf32>
    %6 = vector.shape_cast %4 : vector<8x128xf32> to vector<1x8x128xf32>
    %7 = vector.broadcast %6 : vector<1x8x128xf32> to vector<8x8x128xf32>
    %8 = arith.mulf %5, %7 : vector<8x8x128xf32>
    %9 = vector.shape_cast %8 : vector<8x8x128xf32> to vector<64x128xf32>
    %10 = arith.truncf %9 : vector<64x128xf32> to vector<64x128xbf16>
    %c0_6 = arith.constant 0 : index
    %c0_7 = arith.constant 0 : index
    %c0_8 = arith.constant 0 : index
    %11 = vector.load %arg3[%c0_6, %c0_7, %c0_8] : memref<2x128x128xbf16, #tpu.memory_space<vmem>>, vector<1x128x128xbf16>
    %12 = vector.shape_cast %11 : vector<1x128x128xbf16> to vector<128x128xbf16>
    %cst_9 = arith.constant dense<0.000000e+00> : vector<64x128xf32>
    %13 = tpu.matmul %10, %12, %cst_9 {dimension_numbers = #tpu.dot_dimension_numbers<[1], [0], [0], [1], [0, 0, 1, 1], [], []>} : vector<64x128xbf16>, vector<128x128xbf16>, vector<64x128xf32> -> vector<64x128xf32>
    %c0_10 = arith.constant 0 : index
    %c0_11 = arith.constant 0 : index
    %c0_12 = arith.constant 0 : index
    %14 = vector.load %arg5[%c0_10, %c0_11, %c0_12] : memref<2x1x128xf32, #tpu.memory_space<vmem>>, vector<1x1x128xf32>
    %15 = vector.shape_cast %14 : vector<1x1x128xf32> to vector<1x128xf32>
    %16 = vector.broadcast %15 : vector<1x128xf32> to vector<64x128xf32>
    %17 = arith.addf %13, %16 : vector<64x128xf32>
    %18 = vector.shape_cast %17 : vector<64x128xf32> to vector<8x8x128xf32>
    %c0_13 = arith.constant 0 : index
    %c0_14 = arith.constant 0 : index
    %c0_15 = arith.constant 0 : index
    %19 = vector.load %arg9[%c0_13, %c0_14, %c0_15] : memref<8x8x128xf32, #tpu.memory_space<vmem>>, vector<8x8x128xf32>
    tpu.vector_store %arg9[%c0_13, %c0_14, %c0_15], %18 {strides = array<i32>} : memref<8x8x128xf32, #tpu.memory_space<vmem>>, vector<8x8x128xf32>,
    %c0_16 = arith.constant 0 : index
    %c0_17 = arith.constant 0 : index
    %c0_18 = arith.constant 0 : index
    %20 = vector.load %arg2[%c0_16, %c0_17, %c0_18] : memref<2x8x128xf32, #tpu.memory_space<vmem>>, vector<1x8x128xf32>
    %21 = vector.shape_cast %20 : vector<1x8x128xf32> to vector<8x128xf32>
    %c0_19 = arith.constant 0 : index
    %c0_20 = arith.constant 0 : index
    %c0_21 = arith.constant 0 : index
    %22 = vector.load %arg4[%c0_19, %c0_20, %c0_21] : memref<2x128x128xbf16, #tpu.memory_space<vmem>>, vector<1x128x128xbf16>
    %23 = vector.shape_cast %22 : vector<1x128x128xbf16> to vector<128x128xbf16>
    %c0_i32 = arith.constant 0 : i32
    %24 = tpu.concatenate %0, %0, %0, %0 in 1 : vector<8x32xf32>, vector<8x32xf32>, vector<8x32xf32>, vector<8x32xf32> -> vector<8x128xf32>
    %25 = arith.mulf %24, %21 : vector<8x128xf32>
    %26 = arith.index_cast %c0_i32 : i32 to index
    %c0_22 = arith.constant 0 : index
    %c0_23 = arith.constant 0 : index
    %27 = vector.load %arg9[%26, %c0_22, %c0_23] : memref<8x8x128xf32, #tpu.memory_space<vmem>>, vector<1x8x128xf32>
    %28 = vector.shape_cast %27 : vector<1x8x128xf32> to vector<8x128xf32>
    %29 = arith.truncf %25 : vector<8x128xf32> to vector<8x128xbf16>
    %cst_24 = arith.constant dense<0.000000e+00> : vector<8x128xf32>
    %30 = tpu.matmul %29, %23, %cst_24 {dimension_numbers = #tpu.dot_dimension_numbers<[1], [0], [0], [1], [0, 0, 1, 1], [], []>} : vector<8x128xbf16>, vector<128x128xbf16>, vector<8x128xf32> -> vector<8x128xf32>
    %31 = arith.addf %28, %30 : vector<8x128xf32>
    %32 = vector.extract_strided_slice %31 {offsets = [0, 0], sizes = [8, 32], strides = [1, 1]} : vector<8x128xf32> to vector<8x32xf32>
    %33 = arith.negf %32 : vector<8x32xf32>
    %34 = math.exp %33 : vector<8x32xf32>
    %cst_25 = arith.constant 1.000000e+00 : f32
    %35 = vector.broadcast %cst_25 : f32 to vector<8x32xf32>
    %36 = arith.addf %35, %34 : vector<8x32xf32>
    %37 = arith.divf %35, %36 : vector<8x32xf32>
    %38 = vector.extract_strided_slice %31 {offsets = [0, 32], sizes = [8, 32], strides = [1, 1]} : vector<8x128xf32> to vector<8x32xf32>
    %39 = arith.negf %38 : vector<8x32xf32>
    %40 = math.exp %39 : vector<8x32xf32>
    %cst_26 = arith.constant 1.000000e+00 : f32
    %41 = vector.broadcast %cst_26 : f32 to vector<8x32xf32>
    %42 = arith.addf %41, %40 : vector<8x32xf32>
    %43 = arith.divf %41, %42 : vector<8x32xf32>
    %44 = vector.extract_strided_slice %31 {offsets = [0, 64], sizes = [8, 32], strides = [1, 1]} : vector<8x128xf32> to vector<8x32xf32>
    %45 = arith.negf %44 : vector<8x32xf32>
    %46 = math.exp %45 : vector<8x32xf32>
    %cst_27 = arith.constant 1.000000e+00 : f32
    %47 = vector.broadcast %cst_27 : f32 to vector<8x32xf32>
    %48 = arith.addf %47, %46 : vector<8x32xf32>
    %49 = arith.divf %47, %48 : vector<8x32xf32>
    %50 = vector.extract_strided_slice %31 {offsets = [0, 96], sizes = [8, 32], strides = [1, 1]} : vector<8x128xf32> to vector<8x32xf32>
    %51 = math.tanh %50 : vector<8x32xf32>
    %52 = arith.mulf %43, %1 : vector<8x32xf32>
    %53 = arith.mulf %37, %51 : vector<8x32xf32>
    %54 = arith.addf %52, %53 : vector<8x32xf32>
    %55 = math.tanh %54 : vector<8x32xf32>
    %56 = arith.mulf %49, %55 : vector<8x32xf32>
    %57 = arith.index_cast %c0_i32 : i32 to index
    %c0_28 = arith.constant 0 : index
    %c0_29 = arith.constant 0 : index
    %58 = vector.load %arg10[%57, %c0_28, %c0_29] : memref<8x8x32xf32, #tpu.memory_space<vmem>>, vector<1x8x32xf32>
    %59 = vector.shape_cast %58 : vector<1x8x32xf32> to vector<8x32xf32>
    %60 = vector.shape_cast %56 : vector<8x32xf32> to vector<1x8x32xf32>
    tpu.vector_store %arg10[%57, %c0_28, %c0_29], %60 {strides = array<i32>} : memref<8x8x32xf32, #tpu.memory_space<vmem>>, vector<1x8x32xf32>,
    %c1_i32 = arith.constant 1 : i32
    %61 = tpu.concatenate %56, %56, %56, %56 in 1 : vector<8x32xf32>, vector<8x32xf32>, vector<8x32xf32>, vector<8x32xf32> -> vector<8x128xf32>
    %62 = arith.mulf %61, %21 : vector<8x128xf32>
    %63 = arith.index_cast %c1_i32 : i32 to index
    %c0_30 = arith.constant 0 : index
    %c0_31 = arith.constant 0 : index
    %64 = vector.load %arg9[%63, %c0_30, %c0_31] : memref<8x8x128xf32, #tpu.memory_space<vmem>>, vector<1x8x128xf32>
    %65 = vector.shape_cast %64 : vector<1x8x128xf32> to vector<8x128xf32>
    %66 = arith.truncf %62 : vector<8x128xf32> to vector<8x128xbf16>
    %cst_32 = arith.constant dense<0.000000e+00> : vector<8x128xf32>
    %67 = tpu.matmul %66, %23, %cst_32 {dimension_numbers = #tpu.dot_dimension_numbers<[1], [0], [0], [1], [0, 0, 1, 1], [], []>} : vector<8x128xbf16>, vector<128x128xbf16>, vector<8x128xf32> -> vector<8x128xf32>
    %68 = arith.addf %65, %67 : vector<8x128xf32>
    %69 = vector.extract_strided_slice %68 {offsets = [0, 0], sizes = [8, 32], strides = [1, 1]} : vector<8x128xf32> to vector<8x32xf32>
    %70 = arith.negf %69 : vector<8x32xf32>
    %71 = math.exp %70 : vector<8x32xf32>
    %cst_33 = arith.constant 1.000000e+00 : f32
    %72 = vector.broadcast %cst_33 : f32 to vector<8x32xf32>
    %73 = arith.addf %72, %71 : vector<8x32xf32>
    %74 = arith.divf %72, %73 : vector<8x32xf32>
    %75 = vector.extract_strided_slice %68 {offsets = [0, 32], sizes = [8, 32], strides = [1, 1]} : vector<8x128xf32> to vector<8x32xf32>
    %76 = arith.negf %75 : vector<8x32xf32>
    %77 = math.exp %76 : vector<8x32xf32>
    %cst_34 = arith.constant 1.000000e+00 : f32
    %78 = vector.broadcast %cst_34 : f32 to vector<8x32xf32>
    %79 = arith.addf %78, %77 : vector<8x32xf32>
    %80 = arith.divf %78, %79 : vector<8x32xf32>
    %81 = vector.extract_strided_slice %68 {offsets = [0, 64], sizes = [8, 32], strides = [1, 1]} : vector<8x128xf32> to vector<8x32xf32>
    %82 = arith.negf %81 : vector<8x32xf32>
    %83 = math.exp %82 : vector<8x32xf32>
    %cst_35 = arith.constant 1.000000e+00 : f32
    %84 = vector.broadcast %cst_35 : f32 to vector<8x32xf32>
    %85 = arith.addf %84, %83 : vector<8x32xf32>
    %86 = arith.divf %84, %85 : vector<8x32xf32>
    %87 = vector.extract_strided_slice %68 {offsets = [0, 96], sizes = [8, 32], strides = [1, 1]} : vector<8x128xf32> to vector<8x32xf32>
    %88 = math.tanh %87 : vector<8x32xf32>
    %89 = arith.mulf %80, %54 : vector<8x32xf32>
    %90 = arith.mulf %74, %88 : vector<8x32xf32>
    %91 = arith.addf %89, %90 : vector<8x32xf32>
    %92 = math.tanh %91 : vector<8x32xf32>
    %93 = arith.mulf %86, %92 : vector<8x32xf32>
    %94 = arith.index_cast %c1_i32 : i32 to index
    %c0_36 = arith.constant 0 : index
    %c0_37 = arith.constant 0 : index
    %95 = vector.load %arg10[%94, %c0_36, %c0_37] : memref<8x8x32xf32, #tpu.memory_space<vmem>>, vector<1x8x32xf32>
    %96 = vector.shape_cast %95 : vector<1x8x32xf32> to vector<8x32xf32>
    %97 = vector.shape_cast %93 : vector<8x32xf32> to vector<1x8x32xf32>
    tpu.vector_store %arg10[%94, %c0_36, %c0_37], %97 {strides = array<i32>} : memref<8x8x32xf32, #tpu.memory_space<vmem>>, vector<1x8x32xf32>,
    %c2_i32 = arith.constant 2 : i32
    %98 = tpu.concatenate %93, %93, %93, %93 in 1 : vector<8x32xf32>, vector<8x32xf32>, vector<8x32xf32>, vector<8x32xf32> -> vector<8x128xf32>
    %99 = arith.mulf %98, %21 : vector<8x128xf32>
    %100 = arith.index_cast %c2_i32 : i32 to index
    %c0_38 = arith.constant 0 : index
    %c0_39 = arith.constant 0 : index
    %101 = vector.load %arg9[%100, %c0_38, %c0_39] : memref<8x8x128xf32, #tpu.memory_space<vmem>>, vector<1x8x128xf32>
    %102 = vector.shape_cast %101 : vector<1x8x128xf32> to vector<8x128xf32>
    %103 = arith.truncf %99 : vector<8x128xf32> to vector<8x128xbf16>
    %cst_40 = arith.constant dense<0.000000e+00> : vector<8x128xf32>
    %104 = tpu.matmul %103, %23, %cst_40 {dimension_numbers = #tpu.dot_dimension_numbers<[1], [0], [0], [1], [0, 0, 1, 1], [], []>} : vector<8x128xbf16>, vector<128x128xbf16>, vector<8x128xf32> -> vector<8x128xf32>
    %105 = arith.addf %102, %104 : vector<8x128xf32>
    %106 = vector.extract_strided_slice %105 {offsets = [0, 0], sizes = [8, 32], strides = [1, 1]} : vector<8x128xf32> to vector<8x32xf32>
    %107 = arith.negf %106 : vector<8x32xf32>
    %108 = math.exp %107 : vector<8x32xf32>
    %cst_41 = arith.constant 1.000000e+00 : f32
    %109 = vector.broadcast %cst_41 : f32 to vector<8x32xf32>
    %110 = arith.addf %109, %108 : vector<8x32xf32>
    %111 = arith.divf %109, %110 : vector<8x32xf32>
    %112 = vector.extract_strided_slice %105 {offsets = [0, 32], sizes = [8, 32], strides = [1, 1]} : vector<8x128xf32> to vector<8x32xf32>
    %113 = arith.negf %112 : vector<8x32xf32>
    %114 = math.exp %113 : vector<8x32xf32>
    %cst_42 = arith.constant 1.000000e+00 : f32
    %115 = vector.broadcast %cst_42 : f32 to vector<8x32xf32>
    %116 = arith.addf %115, %114 : vector<8x32xf32>
    %117 = arith.divf %115, %116 : vector<8x32xf32>
    %118 = vector.extract_strided_slice %105 {offsets = [0, 64], sizes = [8, 32], strides = [1, 1]} : vector<8x128xf32> to vector<8x32xf32>
    %119 = arith.negf %118 : vector<8x32xf32>
    %120 = math.exp %119 : vector<8x32xf32>
    %cst_43 = arith.constant 1.000000e+00 : f32
    %121 = vector.broadcast %cst_43 : f32 to vector<8x32xf32>
    %122 = arith.addf %121, %120 : vector<8x32xf32>
    %123 = arith.divf %121, %122 : vector<8x32xf32>
    %124 = vector.extract_strided_slice %105 {offsets = [0, 96], sizes = [8, 32], strides = [1, 1]} : vector<8x128xf32> to vector<8x32xf32>
    %125 = math.tanh %124 : vector<8x32xf32>
    %126 = arith.mulf %117, %91 : vector<8x32xf32>
    %127 = arith.mulf %111, %125 : vector<8x32xf32>
    %128 = arith.addf %126, %127 : vector<8x32xf32>
    %129 = math.tanh %128 : vector<8x32xf32>
    %130 = arith.mulf %123, %129 : vector<8x32xf32>
    %131 = arith.index_cast %c2_i32 : i32 to index
    %c0_44 = arith.constant 0 : index
    %c0_45 = arith.constant 0 : index
    %132 = vector.load %arg10[%131, %c0_44, %c0_45] : memref<8x8x32xf32, #tpu.memory_space<vmem>>, vector<1x8x32xf32>
    %133 = vector.shape_cast %132 : vector<1x8x32xf32> to vector<8x32xf32>
    %134 = vector.shape_cast %130 : vector<8x32xf32> to vector<1x8x32xf32>
    tpu.vector_store %arg10[%131, %c0_44, %c0_45], %134 {strides = array<i32>} : memref<8x8x32xf32, #tpu.memory_space<vmem>>, vector<1x8x32xf32>,
    %c3_i32 = arith.constant 3 : i32
    %135 = tpu.concatenate %130, %130, %130, %130 in 1 : vector<8x32xf32>, vector<8x32xf32>, vector<8x32xf32>, vector<8x32xf32> -> vector<8x128xf32>
    %136 = arith.mulf %135, %21 : vector<8x128xf32>
    %137 = arith.index_cast %c3_i32 : i32 to index
    %c0_46 = arith.constant 0 : index
    %c0_47 = arith.constant 0 : index
    %138 = vector.load %arg9[%137, %c0_46, %c0_47] : memref<8x8x128xf32, #tpu.memory_space<vmem>>, vector<1x8x128xf32>
    %139 = vector.shape_cast %138 : vector<1x8x128xf32> to vector<8x128xf32>
    %140 = arith.truncf %136 : vector<8x128xf32> to vector<8x128xbf16>
    %cst_48 = arith.constant dense<0.000000e+00> : vector<8x128xf32>
    %141 = tpu.matmul %140, %23, %cst_48 {dimension_numbers = #tpu.dot_dimension_numbers<[1], [0], [0], [1], [0, 0, 1, 1], [], []>} : vector<8x128xbf16>, vector<128x128xbf16>, vector<8x128xf32> -> vector<8x128xf32>
    %142 = arith.addf %139, %141 : vector<8x128xf32>
    %143 = vector.extract_strided_slice %142 {offsets = [0, 0], sizes = [8, 32], strides = [1, 1]} : vector<8x128xf32> to vector<8x32xf32>
    %144 = arith.negf %143 : vector<8x32xf32>
    %145 = math.exp %144 : vector<8x32xf32>
    %cst_49 = arith.constant 1.000000e+00 : f32
    %146 = vector.broadcast %cst_49 : f32 to vector<8x32xf32>
    %147 = arith.addf %146, %145 : vector<8x32xf32>
    %148 = arith.divf %146, %147 : vector<8x32xf32>
    %149 = vector.extract_strided_slice %142 {offsets = [0, 32], sizes = [8, 32], strides = [1, 1]} : vector<8x128xf32> to vector<8x32xf32>
    %150 = arith.negf %149 : vector<8x32xf32>
    %151 = math.exp %150 : vector<8x32xf32>
    %cst_50 = arith.constant 1.000000e+00 : f32
    %152 = vector.broadcast %cst_50 : f32 to vector<8x32xf32>
    %153 = arith.addf %152, %151 : vector<8x32xf32>
    %154 = arith.divf %152, %153 : vector<8x32xf32>
    %155 = vector.extract_strided_slice %142 {offsets = [0, 64], sizes = [8, 32], strides = [1, 1]} : vector<8x128xf32> to vector<8x32xf32>
    %156 = arith.negf %155 : vector<8x32xf32>
    %157 = math.exp %156 : vector<8x32xf32>
    %cst_51 = arith.constant 1.000000e+00 : f32
    %158 = vector.broadcast %cst_51 : f32 to vector<8x32xf32>
    %159 = arith.addf %158, %157 : vector<8x32xf32>
    %160 = arith.divf %158, %159 : vector<8x32xf32>
    %161 = vector.extract_strided_slice %142 {offsets = [0, 96], sizes = [8, 32], strides = [1, 1]} : vector<8x128xf32> to vector<8x32xf32>
    %162 = math.tanh %161 : vector<8x32xf32>
    %163 = arith.mulf %154, %128 : vector<8x32xf32>
    %164 = arith.mulf %148, %162 : vector<8x32xf32>
    %165 = arith.addf %163, %164 : vector<8x32xf32>
    %166 = math.tanh %165 : vector<8x32xf32>
    %167 = arith.mulf %160, %166 : vector<8x32xf32>
    %168 = arith.index_cast %c3_i32 : i32 to index
    %c0_52 = arith.constant 0 : index
    %c0_53 = arith.constant 0 : index
    %169 = vector.load %arg10[%168, %c0_52, %c0_53] : memref<8x8x32xf32, #tpu.memory_space<vmem>>, vector<1x8x32xf32>
    %170 = vector.shape_cast %169 : vector<1x8x32xf32> to vector<8x32xf32>
    %171 = vector.shape_cast %167 : vector<8x32xf32> to vector<1x8x32xf32>
    tpu.vector_store %arg10[%168, %c0_52, %c0_53], %171 {strides = array<i32>} : memref<8x8x32xf32, #tpu.memory_space<vmem>>, vector<1x8x32xf32>,
    %c4_i32 = arith.constant 4 : i32
    %172 = tpu.concatenate %167, %167, %167, %167 in 1 : vector<8x32xf32>, vector<8x32xf32>, vector<8x32xf32>, vector<8x32xf32> -> vector<8x128xf32>
    %173 = arith.mulf %172, %21 : vector<8x128xf32>
    %174 = arith.index_cast %c4_i32 : i32 to index
    %c0_54 = arith.constant 0 : index
    %c0_55 = arith.constant 0 : index
    %175 = vector.load %arg9[%174, %c0_54, %c0_55] : memref<8x8x128xf32, #tpu.memory_space<vmem>>, vector<1x8x128xf32>
    %176 = vector.shape_cast %175 : vector<1x8x128xf32> to vector<8x128xf32>
    %177 = arith.truncf %173 : vector<8x128xf32> to vector<8x128xbf16>
    %cst_56 = arith.constant dense<0.000000e+00> : vector<8x128xf32>
    %178 = tpu.matmul %177, %23, %cst_56 {dimension_numbers = #tpu.dot_dimension_numbers<[1], [0], [0], [1], [0, 0, 1, 1], [], []>} : vector<8x128xbf16>, vector<128x128xbf16>, vector<8x128xf32> -> vector<8x128xf32>
    %179 = arith.addf %176, %178 : vector<8x128xf32>
    %180 = vector.extract_strided_slice %179 {offsets = [0, 0], sizes = [8, 32], strides = [1, 1]} : vector<8x128xf32> to vector<8x32xf32>
    %181 = arith.negf %180 : vector<8x32xf32>
    %182 = math.exp %181 : vector<8x32xf32>
    %cst_57 = arith.constant 1.000000e+00 : f32
    %183 = vector.broadcast %cst_57 : f32 to vector<8x32xf32>
    %184 = arith.addf %183, %182 : vector<8x32xf32>
    %185 = arith.divf %183, %184 : vector<8x32xf32>
    %186 = vector.extract_strided_slice %179 {offsets = [0, 32], sizes = [8, 32], strides = [1, 1]} : vector<8x128xf32> to vector<8x32xf32>
    %187 = arith.negf %186 : vector<8x32xf32>
    %188 = math.exp %187 : vector<8x32xf32>
    %cst_58 = arith.constant 1.000000e+00 : f32
    %189 = vector.broadcast %cst_58 : f32 to vector<8x32xf32>
    %190 = arith.addf %189, %188 : vector<8x32xf32>
    %191 = arith.divf %189, %190 : vector<8x32xf32>
    %192 = vector.extract_strided_slice %179 {offsets = [0, 64], sizes = [8, 32], strides = [1, 1]} : vector<8x128xf32> to vector<8x32xf32>
    %193 = arith.negf %192 : vector<8x32xf32>
    %194 = math.exp %193 : vector<8x32xf32>
    %cst_59 = arith.constant 1.000000e+00 : f32
    %195 = vector.broadcast %cst_59 : f32 to vector<8x32xf32>
    %196 = arith.addf %195, %194 : vector<8x32xf32>
    %197 = arith.divf %195, %196 : vector<8x32xf32>
    %198 = vector.extract_strided_slice %179 {offsets = [0, 96], sizes = [8, 32], strides = [1, 1]} : vector<8x128xf32> to vector<8x32xf32>
    %199 = math.tanh %198 : vector<8x32xf32>
    %200 = arith.mulf %191, %165 : vector<8x32xf32>
    %201 = arith.mulf %185, %199 : vector<8x32xf32>
    %202 = arith.addf %200, %201 : vector<8x32xf32>
    %203 = math.tanh %202 : vector<8x32xf32>
    %204 = arith.mulf %197, %203 : vector<8x32xf32>
    %205 = arith.index_cast %c4_i32 : i32 to index
    %c0_60 = arith.constant 0 : index
    %c0_61 = arith.constant 0 : index
    %206 = vector.load %arg10[%205, %c0_60, %c0_61] : memref<8x8x32xf32, #tpu.memory_space<vmem>>, vector<1x8x32xf32>
    %207 = vector.shape_cast %206 : vector<1x8x32xf32> to vector<8x32xf32>
    %208 = vector.shape_cast %204 : vector<8x32xf32> to vector<1x8x32xf32>
    tpu.vector_store %arg10[%205, %c0_60, %c0_61], %208 {strides = array<i32>} : memref<8x8x32xf32, #tpu.memory_space<vmem>>, vector<1x8x32xf32>,
    %c5_i32 = arith.constant 5 : i32
    %209 = tpu.concatenate %204, %204, %204, %204 in 1 : vector<8x32xf32>, vector<8x32xf32>, vector<8x32xf32>, vector<8x32xf32> -> vector<8x128xf32>
    %210 = arith.mulf %209, %21 : vector<8x128xf32>
    %211 = arith.index_cast %c5_i32 : i32 to index
    %c0_62 = arith.constant 0 : index
    %c0_63 = arith.constant 0 : index
    %212 = vector.load %arg9[%211, %c0_62, %c0_63] : memref<8x8x128xf32, #tpu.memory_space<vmem>>, vector<1x8x128xf32>
    %213 = vector.shape_cast %212 : vector<1x8x128xf32> to vector<8x128xf32>
    %214 = arith.truncf %210 : vector<8x128xf32> to vector<8x128xbf16>
    %cst_64 = arith.constant dense<0.000000e+00> : vector<8x128xf32>
    %215 = tpu.matmul %214, %23, %cst_64 {dimension_numbers = #tpu.dot_dimension_numbers<[1], [0], [0], [1], [0, 0, 1, 1], [], []>} : vector<8x128xbf16>, vector<128x128xbf16>, vector<8x128xf32> -> vector<8x128xf32>
    %216 = arith.addf %213, %215 : vector<8x128xf32>
    %217 = vector.extract_strided_slice %216 {offsets = [0, 0], sizes = [8, 32], strides = [1, 1]} : vector<8x128xf32> to vector<8x32xf32>
    %218 = arith.negf %217 : vector<8x32xf32>
    %219 = math.exp %218 : vector<8x32xf32>
    %cst_65 = arith.constant 1.000000e+00 : f32
    %220 = vector.broadcast %cst_65 : f32 to vector<8x32xf32>
    %221 = arith.addf %220, %219 : vector<8x32xf32>
    %222 = arith.divf %220, %221 : vector<8x32xf32>
    %223 = vector.extract_strided_slice %216 {offsets = [0, 32], sizes = [8, 32], strides = [1, 1]} : vector<8x128xf32> to vector<8x32xf32>
    %224 = arith.negf %223 : vector<8x32xf32>
    %225 = math.exp %224 : vector<8x32xf32>
    %cst_66 = arith.constant 1.000000e+00 : f32
    %226 = vector.broadcast %cst_66 : f32 to vector<8x32xf32>
    %227 = arith.addf %226, %225 : vector<8x32xf32>
    %228 = arith.divf %226, %227 : vector<8x32xf32>
    %229 = vector.extract_strided_slice %216 {offsets = [0, 64], sizes = [8, 32], strides = [1, 1]} : vector<8x128xf32> to vector<8x32xf32>
    %230 = arith.negf %229 : vector<8x32xf32>
    %231 = math.exp %230 : vector<8x32xf32>
    %cst_67 = arith.constant 1.000000e+00 : f32
    %232 = vector.broadcast %cst_67 : f32 to vector<8x32xf32>
    %233 = arith.addf %232, %231 : vector<8x32xf32>
    %234 = arith.divf %232, %233 : vector<8x32xf32>
    %235 = vector.extract_strided_slice %216 {offsets = [0, 96], sizes = [8, 32], strides = [1, 1]} : vector<8x128xf32> to vector<8x32xf32>
    %236 = math.tanh %235 : vector<8x32xf32>
    %237 = arith.mulf %228, %202 : vector<8x32xf32>
    %238 = arith.mulf %222, %236 : vector<8x32xf32>
    %239 = arith.addf %237, %238 : vector<8x32xf32>
    %240 = math.tanh %239 : vector<8x32xf32>
    %241 = arith.mulf %234, %240 : vector<8x32xf32>
    %242 = arith.index_cast %c5_i32 : i32 to index
    %c0_68 = arith.constant 0 : index
    %c0_69 = arith.constant 0 : index
    %243 = vector.load %arg10[%242, %c0_68, %c0_69] : memref<8x8x32xf32, #tpu.memory_space<vmem>>, vector<1x8x32xf32>
    %244 = vector.shape_cast %243 : vector<1x8x32xf32> to vector<8x32xf32>
    %245 = vector.shape_cast %241 : vector<8x32xf32> to vector<1x8x32xf32>
    tpu.vector_store %arg10[%242, %c0_68, %c0_69], %245 {strides = array<i32>} : memref<8x8x32xf32, #tpu.memory_space<vmem>>, vector<1x8x32xf32>,
    %c6_i32 = arith.constant 6 : i32
    %246 = tpu.concatenate %241, %241, %241, %241 in 1 : vector<8x32xf32>, vector<8x32xf32>, vector<8x32xf32>, vector<8x32xf32> -> vector<8x128xf32>
    %247 = arith.mulf %246, %21 : vector<8x128xf32>
    %248 = arith.index_cast %c6_i32 : i32 to index
    %c0_70 = arith.constant 0 : index
    %c0_71 = arith.constant 0 : index
    %249 = vector.load %arg9[%248, %c0_70, %c0_71] : memref<8x8x128xf32, #tpu.memory_space<vmem>>, vector<1x8x128xf32>
    %250 = vector.shape_cast %249 : vector<1x8x128xf32> to vector<8x128xf32>
    %251 = arith.truncf %247 : vector<8x128xf32> to vector<8x128xbf16>
    %cst_72 = arith.constant dense<0.000000e+00> : vector<8x128xf32>
    %252 = tpu.matmul %251, %23, %cst_72 {dimension_numbers = #tpu.dot_dimension_numbers<[1], [0], [0], [1], [0, 0, 1, 1], [], []>} : vector<8x128xbf16>, vector<128x128xbf16>, vector<8x128xf32> -> vector<8x128xf32>
    %253 = arith.addf %250, %252 : vector<8x128xf32>
    %254 = vector.extract_strided_slice %253 {offsets = [0, 0], sizes = [8, 32], strides = [1, 1]} : vector<8x128xf32> to vector<8x32xf32>
    %255 = arith.negf %254 : vector<8x32xf32>
    %256 = math.exp %255 : vector<8x32xf32>
    %cst_73 = arith.constant 1.000000e+00 : f32
    %257 = vector.broadcast %cst_73 : f32 to vector<8x32xf32>
    %258 = arith.addf %257, %256 : vector<8x32xf32>
    %259 = arith.divf %257, %258 : vector<8x32xf32>
    %260 = vector.extract_strided_slice %253 {offsets = [0, 32], sizes = [8, 32], strides = [1, 1]} : vector<8x128xf32> to vector<8x32xf32>
    %261 = arith.negf %260 : vector<8x32xf32>
    %262 = math.exp %261 : vector<8x32xf32>
    %cst_74 = arith.constant 1.000000e+00 : f32
    %263 = vector.broadcast %cst_74 : f32 to vector<8x32xf32>
    %264 = arith.addf %263, %262 : vector<8x32xf32>
    %265 = arith.divf %263, %264 : vector<8x32xf32>
    %266 = vector.extract_strided_slice %253 {offsets = [0, 64], sizes = [8, 32], strides = [1, 1]} : vector<8x128xf32> to vector<8x32xf32>
    %267 = arith.negf %266 : vector<8x32xf32>
    %268 = math.exp %267 : vector<8x32xf32>
    %cst_75 = arith.constant 1.000000e+00 : f32
    %269 = vector.broadcast %cst_75 : f32 to vector<8x32xf32>
    %270 = arith.addf %269, %268 : vector<8x32xf32>
    %271 = arith.divf %269, %270 : vector<8x32xf32>
    %272 = vector.extract_strided_slice %253 {offsets = [0, 96], sizes = [8, 32], strides = [1, 1]} : vector<8x128xf32> to vector<8x32xf32>
    %273 = math.tanh %272 : vector<8x32xf32>
    %274 = arith.mulf %265, %239 : vector<8x32xf32>
    %275 = arith.mulf %259, %273 : vector<8x32xf32>
    %276 = arith.addf %274, %275 : vector<8x32xf32>
    %277 = math.tanh %276 : vector<8x32xf32>
    %278 = arith.mulf %271, %277 : vector<8x32xf32>
    %279 = arith.index_cast %c6_i32 : i32 to index
    %c0_76 = arith.constant 0 : index
    %c0_77 = arith.constant 0 : index
    %280 = vector.load %arg10[%279, %c0_76, %c0_77] : memref<8x8x32xf32, #tpu.memory_space<vmem>>, vector<1x8x32xf32>
    %281 = vector.shape_cast %280 : vector<1x8x32xf32> to vector<8x32xf32>
    %282 = vector.shape_cast %278 : vector<8x32xf32> to vector<1x8x32xf32>
    tpu.vector_store %arg10[%279, %c0_76, %c0_77], %282 {strides = array<i32>} : memref<8x8x32xf32, #tpu.memory_space<vmem>>, vector<1x8x32xf32>,
    %c7_i32 = arith.constant 7 : i32
    %283 = tpu.concatenate %278, %278, %278, %278 in 1 : vector<8x32xf32>, vector<8x32xf32>, vector<8x32xf32>, vector<8x32xf32> -> vector<8x128xf32>
    %284 = arith.mulf %283, %21 : vector<8x128xf32>
    %285 = arith.index_cast %c7_i32 : i32 to index
    %c0_78 = arith.constant 0 : index
    %c0_79 = arith.constant 0 : index
    %286 = vector.load %arg9[%285, %c0_78, %c0_79] : memref<8x8x128xf32, #tpu.memory_space<vmem>>, vector<1x8x128xf32>
    %287 = vector.shape_cast %286 : vector<1x8x128xf32> to vector<8x128xf32>
    %288 = arith.truncf %284 : vector<8x128xf32> to vector<8x128xbf16>
    %cst_80 = arith.constant dense<0.000000e+00> : vector<8x128xf32>
    %289 = tpu.matmul %288, %23, %cst_80 {dimension_numbers = #tpu.dot_dimension_numbers<[1], [0], [0], [1], [0, 0, 1, 1], [], []>} : vector<8x128xbf16>, vector<128x128xbf16>, vector<8x128xf32> -> vector<8x128xf32>
    %290 = arith.addf %287, %289 : vector<8x128xf32>
    %291 = vector.extract_strided_slice %290 {offsets = [0, 0], sizes = [8, 32], strides = [1, 1]} : vector<8x128xf32> to vector<8x32xf32>
    %292 = arith.negf %291 : vector<8x32xf32>
    %293 = math.exp %292 : vector<8x32xf32>
    %cst_81 = arith.constant 1.000000e+00 : f32
    %294 = vector.broadcast %cst_81 : f32 to vector<8x32xf32>
    %295 = arith.addf %294, %293 : vector<8x32xf32>
    %296 = arith.divf %294, %295 : vector<8x32xf32>
    %297 = vector.extract_strided_slice %290 {offsets = [0, 32], sizes = [8, 32], strides = [1, 1]} : vector<8x128xf32> to vector<8x32xf32>
    %298 = arith.negf %297 : vector<8x32xf32>
    %299 = math.exp %298 : vector<8x32xf32>
    %cst_82 = arith.constant 1.000000e+00 : f32
    %300 = vector.broadcast %cst_82 : f32 to vector<8x32xf32>
    %301 = arith.addf %300, %299 : vector<8x32xf32>
    %302 = arith.divf %300, %301 : vector<8x32xf32>
    %303 = vector.extract_strided_slice %290 {offsets = [0, 64], sizes = [8, 32], strides = [1, 1]} : vector<8x128xf32> to vector<8x32xf32>
    %304 = arith.negf %303 : vector<8x32xf32>
    %305 = math.exp %304 : vector<8x32xf32>
    %cst_83 = arith.constant 1.000000e+00 : f32
    %306 = vector.broadcast %cst_83 : f32 to vector<8x32xf32>
    %307 = arith.addf %306, %305 : vector<8x32xf32>
    %308 = arith.divf %306, %307 : vector<8x32xf32>
    %309 = vector.extract_strided_slice %290 {offsets = [0, 96], sizes = [8, 32], strides = [1, 1]} : vector<8x128xf32> to vector<8x32xf32>
    %310 = math.tanh %309 : vector<8x32xf32>
    %311 = arith.mulf %302, %276 : vector<8x32xf32>
    %312 = arith.mulf %296, %310 : vector<8x32xf32>
    %313 = arith.addf %311, %312 : vector<8x32xf32>
    %314 = math.tanh %313 : vector<8x32xf32>
    %315 = arith.mulf %308, %314 : vector<8x32xf32>
    %316 = arith.index_cast %c7_i32 : i32 to index
    %c0_84 = arith.constant 0 : index
    %c0_85 = arith.constant 0 : index
    %317 = vector.load %arg10[%316, %c0_84, %c0_85] : memref<8x8x32xf32, #tpu.memory_space<vmem>>, vector<1x8x32xf32>
    %318 = vector.shape_cast %317 : vector<1x8x32xf32> to vector<8x32xf32>
    %319 = vector.shape_cast %315 : vector<8x32xf32> to vector<1x8x32xf32>
    tpu.vector_store %arg10[%316, %c0_84, %c0_85], %319 {strides = array<i32>} : memref<8x8x32xf32, #tpu.memory_space<vmem>>, vector<1x8x32xf32>,
    %c8_i32 = arith.constant 8 : i32
    %c0_86 = arith.constant 0 : index
    %c0_87 = arith.constant 0 : index
    %c0_88 = arith.constant 0 : index
    %320 = vector.load %arg10[%c0_86, %c0_87, %c0_88] : memref<8x8x32xf32, #tpu.memory_space<vmem>>, vector<8x8x32xf32>
    %c1 = arith.constant 1 : index
    %c0_89 = arith.constant 0 : index
    %c0_90 = arith.constant 0 : index
    %321 = vector.load %arg1[%c1, %c0_89, %c0_90] : memref<2x8x128xf32, #tpu.memory_space<vmem>>, vector<1x8x128xf32>
    %322 = vector.shape_cast %321 : vector<1x8x128xf32> to vector<8x128xf32>
    %323 = tpu.concatenate %320, %320, %320, %320 in 2 : vector<8x8x32xf32>, vector<8x8x32xf32>, vector<8x8x32xf32>, vector<8x8x32xf32> -> vector<8x8x128xf32>
    %324 = vector.shape_cast %322 : vector<8x128xf32> to vector<1x8x128xf32>
    %325 = vector.broadcast %324 : vector<1x8x128xf32> to vector<8x8x128xf32>
    %326 = arith.mulf %323, %325 : vector<8x8x128xf32>
    %327 = vector.shape_cast %326 : vector<8x8x128xf32> to vector<64x128xf32>
    %328 = arith.truncf %327 : vector<64x128xf32> to vector<64x128xbf16>
    %c1_91 = arith.constant 1 : index
    %c0_92 = arith.constant 0 : index
    %c0_93 = arith.constant 0 : index
    %329 = vector.load %arg3[%c1_91, %c0_92, %c0_93] : memref<2x128x128xbf16, #tpu.memory_space<vmem>>, vector<1x128x128xbf16>
    %330 = vector.shape_cast %329 : vector<1x128x128xbf16> to vector<128x128xbf16>
    %cst_94 = arith.constant dense<0.000000e+00> : vector<64x128xf32>
    %331 = tpu.matmul %328, %330, %cst_94 {dimension_numbers = #tpu.dot_dimension_numbers<[1], [0], [0], [1], [0, 0, 1, 1], [], []>} : vector<64x128xbf16>, vector<128x128xbf16>, vector<64x128xf32> -> vector<64x128xf32>
    %c1_95 = arith.constant 1 : index
    %c0_96 = arith.constant 0 : index
    %c0_97 = arith.constant 0 : index
    %332 = vector.load %arg5[%c1_95, %c0_96, %c0_97] : memref<2x1x128xf32, #tpu.memory_space<vmem>>, vector<1x1x128xf32>
    %333 = vector.shape_cast %332 : vector<1x1x128xf32> to vector<1x128xf32>
    %334 = vector.broadcast %333 : vector<1x128xf32> to vector<64x128xf32>
    %335 = arith.addf %331, %334 : vector<64x128xf32>
    %336 = vector.shape_cast %335 : vector<64x128xf32> to vector<8x8x128xf32>
    %c0_98 = arith.constant 0 : index
    %c0_99 = arith.constant 0 : index
    %c0_100 = arith.constant 0 : index
    %337 = vector.load %arg9[%c0_98, %c0_99, %c0_100] : memref<8x8x128xf32, #tpu.memory_space<vmem>>, vector<8x8x128xf32>
    tpu.vector_store %arg9[%c0_98, %c0_99, %c0_100], %336 {strides = array<i32>} : memref<8x8x128xf32, #tpu.memory_space<vmem>>, vector<8x8x128xf32>,
    %c1_101 = arith.constant 1 : index
    %c0_102 = arith.constant 0 : index
    %c0_103 = arith.constant 0 : index
    %338 = vector.load %arg2[%c1_101, %c0_102, %c0_103] : memref<2x8x128xf32, #tpu.memory_space<vmem>>, vector<1x8x128xf32>
    %339 = vector.shape_cast %338 : vector<1x8x128xf32> to vector<8x128xf32>
    %c1_104 = arith.constant 1 : index
    %c0_105 = arith.constant 0 : index
    %c0_106 = arith.constant 0 : index
    %340 = vector.load %arg4[%c1_104, %c0_105, %c0_106] : memref<2x128x128xbf16, #tpu.memory_space<vmem>>, vector<1x128x128xbf16>
    %341 = vector.shape_cast %340 : vector<1x128x128xbf16> to vector<128x128xbf16>
    %c0_i32_107 = arith.constant 0 : i32
    %342 = tpu.concatenate %315, %315, %315, %315 in 1 : vector<8x32xf32>, vector<8x32xf32>, vector<8x32xf32>, vector<8x32xf32> -> vector<8x128xf32>
    %343 = arith.mulf %342, %339 : vector<8x128xf32>
    %344 = arith.index_cast %c0_i32_107 : i32 to index
    %c0_108 = arith.constant 0 : index
    %c0_109 = arith.constant 0 : index
    %345 = vector.load %arg9[%344, %c0_108, %c0_109] : memref<8x8x128xf32, #tpu.memory_space<vmem>>, vector<1x8x128xf32>
    %346 = vector.shape_cast %345 : vector<1x8x128xf32> to vector<8x128xf32>
    %347 = arith.truncf %343 : vector<8x128xf32> to vector<8x128xbf16>
    %cst_110 = arith.constant dense<0.000000e+00> : vector<8x128xf32>
    %348 = tpu.matmul %347, %341, %cst_110 {dimension_numbers = #tpu.dot_dimension_numbers<[1], [0], [0], [1], [0, 0, 1, 1], [], []>} : vector<8x128xbf16>, vector<128x128xbf16>, vector<8x128xf32> -> vector<8x128xf32>
    %349 = arith.addf %346, %348 : vector<8x128xf32>
    %350 = vector.extract_strided_slice %349 {offsets = [0, 0], sizes = [8, 32], strides = [1, 1]} : vector<8x128xf32> to vector<8x32xf32>
    %351 = arith.negf %350 : vector<8x32xf32>
    %352 = math.exp %351 : vector<8x32xf32>
    %cst_111 = arith.constant 1.000000e+00 : f32
    %353 = vector.broadcast %cst_111 : f32 to vector<8x32xf32>
    %354 = arith.addf %353, %352 : vector<8x32xf32>
    %355 = arith.divf %353, %354 : vector<8x32xf32>
    %356 = vector.extract_strided_slice %349 {offsets = [0, 32], sizes = [8, 32], strides = [1, 1]} : vector<8x128xf32> to vector<8x32xf32>
    %357 = arith.negf %356 : vector<8x32xf32>
    %358 = math.exp %357 : vector<8x32xf32>
    %cst_112 = arith.constant 1.000000e+00 : f32
    %359 = vector.broadcast %cst_112 : f32 to vector<8x32xf32>
    %360 = arith.addf %359, %358 : vector<8x32xf32>
    %361 = arith.divf %359, %360 : vector<8x32xf32>
    %362 = vector.extract_strided_slice %349 {offsets = [0, 64], sizes = [8, 32], strides = [1, 1]} : vector<8x128xf32> to vector<8x32xf32>
    %363 = arith.negf %362 : vector<8x32xf32>
    %364 = math.exp %363 : vector<8x32xf32>
    %cst_113 = arith.constant 1.000000e+00 : f32
    %365 = vector.broadcast %cst_113 : f32 to vector<8x32xf32>
    %366 = arith.addf %365, %364 : vector<8x32xf32>
    %367 = arith.divf %365, %366 : vector<8x32xf32>
    %368 = vector.extract_strided_slice %349 {offsets = [0, 96], sizes = [8, 32], strides = [1, 1]} : vector<8x128xf32> to vector<8x32xf32>
    %369 = math.tanh %368 : vector<8x32xf32>
    %370 = arith.mulf %361, %313 : vector<8x32xf32>
    %371 = arith.mulf %355, %369 : vector<8x32xf32>
    %372 = arith.addf %370, %371 : vector<8x32xf32>
    %373 = math.tanh %372 : vector<8x32xf32>
    %374 = arith.mulf %367, %373 : vector<8x32xf32>
    %c1_i32_114 = arith.constant 1 : i32
    %375 = tpu.concatenate %374, %374, %374, %374 in 1 : vector<8x32xf32>, vector<8x32xf32>, vector<8x32xf32>, vector<8x32xf32> -> vector<8x128xf32>
    %376 = arith.mulf %375, %339 : vector<8x128xf32>
    %377 = arith.index_cast %c1_i32_114 : i32 to index
    %c0_115 = arith.constant 0 : index
    %c0_116 = arith.constant 0 : index
    %378 = vector.load %arg9[%377, %c0_115, %c0_116] : memref<8x8x128xf32, #tpu.memory_space<vmem>>, vector<1x8x128xf32>
    %379 = vector.shape_cast %378 : vector<1x8x128xf32> to vector<8x128xf32>
    %380 = arith.truncf %376 : vector<8x128xf32> to vector<8x128xbf16>
    %cst_117 = arith.constant dense<0.000000e+00> : vector<8x128xf32>
    %381 = tpu.matmul %380, %341, %cst_117 {dimension_numbers = #tpu.dot_dimension_numbers<[1], [0], [0], [1], [0, 0, 1, 1], [], []>} : vector<8x128xbf16>, vector<128x128xbf16>, vector<8x128xf32> -> vector<8x128xf32>
    %382 = arith.addf %379, %381 : vector<8x128xf32>
    %383 = vector.extract_strided_slice %382 {offsets = [0, 0], sizes = [8, 32], strides = [1, 1]} : vector<8x128xf32> to vector<8x32xf32>
    %384 = arith.negf %383 : vector<8x32xf32>
    %385 = math.exp %384 : vector<8x32xf32>
    %cst_118 = arith.constant 1.000000e+00 : f32
    %386 = vector.broadcast %cst_118 : f32 to vector<8x32xf32>
    %387 = arith.addf %386, %385 : vector<8x32xf32>
    %388 = arith.divf %386, %387 : vector<8x32xf32>
    %389 = vector.extract_strided_slice %382 {offsets = [0, 32], sizes = [8, 32], strides = [1, 1]} : vector<8x128xf32> to vector<8x32xf32>
    %390 = arith.negf %389 : vector<8x32xf32>
    %391 = math.exp %390 : vector<8x32xf32>
    %cst_119 = arith.constant 1.000000e+00 : f32
    %392 = vector.broadcast %cst_119 : f32 to vector<8x32xf32>
    %393 = arith.addf %392, %391 : vector<8x32xf32>
    %394 = arith.divf %392, %393 : vector<8x32xf32>
    %395 = vector.extract_strided_slice %382 {offsets = [0, 64], sizes = [8, 32], strides = [1, 1]} : vector<8x128xf32> to vector<8x32xf32>
    %396 = arith.negf %395 : vector<8x32xf32>
    %397 = math.exp %396 : vector<8x32xf32>
    %cst_120 = arith.constant 1.000000e+00 : f32
    %398 = vector.broadcast %cst_120 : f32 to vector<8x32xf32>
    %399 = arith.addf %398, %397 : vector<8x32xf32>
    %400 = arith.divf %398, %399 : vector<8x32xf32>
    %401 = vector.extract_strided_slice %382 {offsets = [0, 96], sizes = [8, 32], strides = [1, 1]} : vector<8x128xf32> to vector<8x32xf32>
    %402 = math.tanh %401 : vector<8x32xf32>
    %403 = arith.mulf %394, %372 : vector<8x32xf32>
    %404 = arith.mulf %388, %402 : vector<8x32xf32>
    %405 = arith.addf %403, %404 : vector<8x32xf32>
    %406 = math.tanh %405 : vector<8x32xf32>
    %407 = arith.mulf %400, %406 : vector<8x32xf32>
    %c2_i32_121 = arith.constant 2 : i32
    %408 = tpu.concatenate %407, %407, %407, %407 in 1 : vector<8x32xf32>, vector<8x32xf32>, vector<8x32xf32>, vector<8x32xf32> -> vector<8x128xf32>
    %409 = arith.mulf %408, %339 : vector<8x128xf32>
    %410 = arith.index_cast %c2_i32_121 : i32 to index
    %c0_122 = arith.constant 0 : index
    %c0_123 = arith.constant 0 : index
    %411 = vector.load %arg9[%410, %c0_122, %c0_123] : memref<8x8x128xf32, #tpu.memory_space<vmem>>, vector<1x8x128xf32>
    %412 = vector.shape_cast %411 : vector<1x8x128xf32> to vector<8x128xf32>
    %413 = arith.truncf %409 : vector<8x128xf32> to vector<8x128xbf16>
    %cst_124 = arith.constant dense<0.000000e+00> : vector<8x128xf32>
    %414 = tpu.matmul %413, %341, %cst_124 {dimension_numbers = #tpu.dot_dimension_numbers<[1], [0], [0], [1], [0, 0, 1, 1], [], []>} : vector<8x128xbf16>, vector<128x128xbf16>, vector<8x128xf32> -> vector<8x128xf32>
    %415 = arith.addf %412, %414 : vector<8x128xf32>
    %416 = vector.extract_strided_slice %415 {offsets = [0, 0], sizes = [8, 32], strides = [1, 1]} : vector<8x128xf32> to vector<8x32xf32>
    %417 = arith.negf %416 : vector<8x32xf32>
    %418 = math.exp %417 : vector<8x32xf32>
    %cst_125 = arith.constant 1.000000e+00 : f32
    %419 = vector.broadcast %cst_125 : f32 to vector<8x32xf32>
    %420 = arith.addf %419, %418 : vector<8x32xf32>
    %421 = arith.divf %419, %420 : vector<8x32xf32>
    %422 = vector.extract_strided_slice %415 {offsets = [0, 32], sizes = [8, 32], strides = [1, 1]} : vector<8x128xf32> to vector<8x32xf32>
    %423 = arith.negf %422 : vector<8x32xf32>
    %424 = math.exp %423 : vector<8x32xf32>
    %cst_126 = arith.constant 1.000000e+00 : f32
    %425 = vector.broadcast %cst_126 : f32 to vector<8x32xf32>
    %426 = arith.addf %425, %424 : vector<8x32xf32>
    %427 = arith.divf %425, %426 : vector<8x32xf32>
    %428 = vector.extract_strided_slice %415 {offsets = [0, 64], sizes = [8, 32], strides = [1, 1]} : vector<8x128xf32> to vector<8x32xf32>
    %429 = arith.negf %428 : vector<8x32xf32>
    %430 = math.exp %429 : vector<8x32xf32>
    %cst_127 = arith.constant 1.000000e+00 : f32
    %431 = vector.broadcast %cst_127 : f32 to vector<8x32xf32>
    %432 = arith.addf %431, %430 : vector<8x32xf32>
    %433 = arith.divf %431, %432 : vector<8x32xf32>
    %434 = vector.extract_strided_slice %415 {offsets = [0, 96], sizes = [8, 32], strides = [1, 1]} : vector<8x128xf32> to vector<8x32xf32>
    %435 = math.tanh %434 : vector<8x32xf32>
    %436 = arith.mulf %427, %405 : vector<8x32xf32>
    %437 = arith.mulf %421, %435 : vector<8x32xf32>
    %438 = arith.addf %436, %437 : vector<8x32xf32>
    %439 = math.tanh %438 : vector<8x32xf32>
    %440 = arith.mulf %433, %439 : vector<8x32xf32>
    %c3_i32_128 = arith.constant 3 : i32
    %441 = tpu.concatenate %440, %440, %440, %440 in 1 : vector<8x32xf32>, vector<8x32xf32>, vector<8x32xf32>, vector<8x32xf32> -> vector<8x128xf32>
    %442 = arith.mulf %441, %339 : vector<8x128xf32>
    %443 = arith.index_cast %c3_i32_128 : i32 to index
    %c0_129 = arith.constant 0 : index
    %c0_130 = arith.constant 0 : index
    %444 = vector.load %arg9[%443, %c0_129, %c0_130] : memref<8x8x128xf32, #tpu.memory_space<vmem>>, vector<1x8x128xf32>
    %445 = vector.shape_cast %444 : vector<1x8x128xf32> to vector<8x128xf32>
    %446 = arith.truncf %442 : vector<8x128xf32> to vector<8x128xbf16>
    %cst_131 = arith.constant dense<0.000000e+00> : vector<8x128xf32>
    %447 = tpu.matmul %446, %341, %cst_131 {dimension_numbers = #tpu.dot_dimension_numbers<[1], [0], [0], [1], [0, 0, 1, 1], [], []>} : vector<8x128xbf16>, vector<128x128xbf16>, vector<8x128xf32> -> vector<8x128xf32>
    %448 = arith.addf %445, %447 : vector<8x128xf32>
    %449 = vector.extract_strided_slice %448 {offsets = [0, 0], sizes = [8, 32], strides = [1, 1]} : vector<8x128xf32> to vector<8x32xf32>
    %450 = arith.negf %449 : vector<8x32xf32>
    %451 = math.exp %450 : vector<8x32xf32>
    %cst_132 = arith.constant 1.000000e+00 : f32
    %452 = vector.broadcast %cst_132 : f32 to vector<8x32xf32>
    %453 = arith.addf %452, %451 : vector<8x32xf32>
    %454 = arith.divf %452, %453 : vector<8x32xf32>
    %455 = vector.extract_strided_slice %448 {offsets = [0, 32], sizes = [8, 32], strides = [1, 1]} : vector<8x128xf32> to vector<8x32xf32>
    %456 = arith.negf %455 : vector<8x32xf32>
    %457 = math.exp %456 : vector<8x32xf32>
    %cst_133 = arith.constant 1.000000e+00 : f32
    %458 = vector.broadcast %cst_133 : f32 to vector<8x32xf32>
    %459 = arith.addf %458, %457 : vector<8x32xf32>
    %460 = arith.divf %458, %459 : vector<8x32xf32>
    %461 = vector.extract_strided_slice %448 {offsets = [0, 64], sizes = [8, 32], strides = [1, 1]} : vector<8x128xf32> to vector<8x32xf32>
    %462 = arith.negf %461 : vector<8x32xf32>
    %463 = math.exp %462 : vector<8x32xf32>
    %cst_134 = arith.constant 1.000000e+00 : f32
    %464 = vector.broadcast %cst_134 : f32 to vector<8x32xf32>
    %465 = arith.addf %464, %463 : vector<8x32xf32>
    %466 = arith.divf %464, %465 : vector<8x32xf32>
    %467 = vector.extract_strided_slice %448 {offsets = [0, 96], sizes = [8, 32], strides = [1, 1]} : vector<8x128xf32> to vector<8x32xf32>
    %468 = math.tanh %467 : vector<8x32xf32>
    %469 = arith.mulf %460, %438 : vector<8x32xf32>
    %470 = arith.mulf %454, %468 : vector<8x32xf32>
    %471 = arith.addf %469, %470 : vector<8x32xf32>
    %472 = math.tanh %471 : vector<8x32xf32>
    %473 = arith.mulf %466, %472 : vector<8x32xf32>
    %c4_i32_135 = arith.constant 4 : i32
    %474 = tpu.concatenate %473, %473, %473, %473 in 1 : vector<8x32xf32>, vector<8x32xf32>, vector<8x32xf32>, vector<8x32xf32> -> vector<8x128xf32>
    %475 = arith.mulf %474, %339 : vector<8x128xf32>
    %476 = arith.index_cast %c4_i32_135 : i32 to index
    %c0_136 = arith.constant 0 : index
    %c0_137 = arith.constant 0 : index
    %477 = vector.load %arg9[%476, %c0_136, %c0_137] : memref<8x8x128xf32, #tpu.memory_space<vmem>>, vector<1x8x128xf32>
    %478 = vector.shape_cast %477 : vector<1x8x128xf32> to vector<8x128xf32>
    %479 = arith.truncf %475 : vector<8x128xf32> to vector<8x128xbf16>
    %cst_138 = arith.constant dense<0.000000e+00> : vector<8x128xf32>
    %480 = tpu.matmul %479, %341, %cst_138 {dimension_numbers = #tpu.dot_dimension_numbers<[1], [0], [0], [1], [0, 0, 1, 1], [], []>} : vector<8x128xbf16>, vector<128x128xbf16>, vector<8x128xf32> -> vector<8x128xf32>
    %481 = arith.addf %478, %480 : vector<8x128xf32>
    %482 = vector.extract_strided_slice %481 {offsets = [0, 0], sizes = [8, 32], strides = [1, 1]} : vector<8x128xf32> to vector<8x32xf32>
    %483 = arith.negf %482 : vector<8x32xf32>
    %484 = math.exp %483 : vector<8x32xf32>
    %cst_139 = arith.constant 1.000000e+00 : f32
    %485 = vector.broadcast %cst_139 : f32 to vector<8x32xf32>
    %486 = arith.addf %485, %484 : vector<8x32xf32>
    %487 = arith.divf %485, %486 : vector<8x32xf32>
    %488 = vector.extract_strided_slice %481 {offsets = [0, 32], sizes = [8, 32], strides = [1, 1]} : vector<8x128xf32> to vector<8x32xf32>
    %489 = arith.negf %488 : vector<8x32xf32>
    %490 = math.exp %489 : vector<8x32xf32>
    %cst_140 = arith.constant 1.000000e+00 : f32
    %491 = vector.broadcast %cst_140 : f32 to vector<8x32xf32>
    %492 = arith.addf %491, %490 : vector<8x32xf32>
    %493 = arith.divf %491, %492 : vector<8x32xf32>
    %494 = vector.extract_strided_slice %481 {offsets = [0, 64], sizes = [8, 32], strides = [1, 1]} : vector<8x128xf32> to vector<8x32xf32>
    %495 = arith.negf %494 : vector<8x32xf32>
    %496 = math.exp %495 : vector<8x32xf32>
    %cst_141 = arith.constant 1.000000e+00 : f32
    %497 = vector.broadcast %cst_141 : f32 to vector<8x32xf32>
    %498 = arith.addf %497, %496 : vector<8x32xf32>
    %499 = arith.divf %497, %498 : vector<8x32xf32>
    %500 = vector.extract_strided_slice %481 {offsets = [0, 96], sizes = [8, 32], strides = [1, 1]} : vector<8x128xf32> to vector<8x32xf32>
    %501 = math.tanh %500 : vector<8x32xf32>
    %502 = arith.mulf %493, %471 : vector<8x32xf32>
    %503 = arith.mulf %487, %501 : vector<8x32xf32>
    %504 = arith.addf %502, %503 : vector<8x32xf32>
    %505 = math.tanh %504 : vector<8x32xf32>
    %506 = arith.mulf %499, %505 : vector<8x32xf32>
    %c5_i32_142 = arith.constant 5 : i32
    %507 = tpu.concatenate %506, %506, %506, %506 in 1 : vector<8x32xf32>, vector<8x32xf32>, vector<8x32xf32>, vector<8x32xf32> -> vector<8x128xf32>
    %508 = arith.mulf %507, %339 : vector<8x128xf32>
    %509 = arith.index_cast %c5_i32_142 : i32 to index
    %c0_143 = arith.constant 0 : index
    %c0_144 = arith.constant 0 : index
    %510 = vector.load %arg9[%509, %c0_143, %c0_144] : memref<8x8x128xf32, #tpu.memory_space<vmem>>, vector<1x8x128xf32>
    %511 = vector.shape_cast %510 : vector<1x8x128xf32> to vector<8x128xf32>
    %512 = arith.truncf %508 : vector<8x128xf32> to vector<8x128xbf16>
    %cst_145 = arith.constant dense<0.000000e+00> : vector<8x128xf32>
    %513 = tpu.matmul %512, %341, %cst_145 {dimension_numbers = #tpu.dot_dimension_numbers<[1], [0], [0], [1], [0, 0, 1, 1], [], []>} : vector<8x128xbf16>, vector<128x128xbf16>, vector<8x128xf32> -> vector<8x128xf32>
    %514 = arith.addf %511, %513 : vector<8x128xf32>
    %515 = vector.extract_strided_slice %514 {offsets = [0, 0], sizes = [8, 32], strides = [1, 1]} : vector<8x128xf32> to vector<8x32xf32>
    %516 = arith.negf %515 : vector<8x32xf32>
    %517 = math.exp %516 : vector<8x32xf32>
    %cst_146 = arith.constant 1.000000e+00 : f32
    %518 = vector.broadcast %cst_146 : f32 to vector<8x32xf32>
    %519 = arith.addf %518, %517 : vector<8x32xf32>
    %520 = arith.divf %518, %519 : vector<8x32xf32>
    %521 = vector.extract_strided_slice %514 {offsets = [0, 32], sizes = [8, 32], strides = [1, 1]} : vector<8x128xf32> to vector<8x32xf32>
    %522 = arith.negf %521 : vector<8x32xf32>
    %523 = math.exp %522 : vector<8x32xf32>
    %cst_147 = arith.constant 1.000000e+00 : f32
    %524 = vector.broadcast %cst_147 : f32 to vector<8x32xf32>
    %525 = arith.addf %524, %523 : vector<8x32xf32>
    %526 = arith.divf %524, %525 : vector<8x32xf32>
    %527 = vector.extract_strided_slice %514 {offsets = [0, 64], sizes = [8, 32], strides = [1, 1]} : vector<8x128xf32> to vector<8x32xf32>
    %528 = arith.negf %527 : vector<8x32xf32>
    %529 = math.exp %528 : vector<8x32xf32>
    %cst_148 = arith.constant 1.000000e+00 : f32
    %530 = vector.broadcast %cst_148 : f32 to vector<8x32xf32>
    %531 = arith.addf %530, %529 : vector<8x32xf32>
    %532 = arith.divf %530, %531 : vector<8x32xf32>
    %533 = vector.extract_strided_slice %514 {offsets = [0, 96], sizes = [8, 32], strides = [1, 1]} : vector<8x128xf32> to vector<8x32xf32>
    %534 = math.tanh %533 : vector<8x32xf32>
    %535 = arith.mulf %526, %504 : vector<8x32xf32>
    %536 = arith.mulf %520, %534 : vector<8x32xf32>
    %537 = arith.addf %535, %536 : vector<8x32xf32>
    %538 = math.tanh %537 : vector<8x32xf32>
    %539 = arith.mulf %532, %538 : vector<8x32xf32>
    %c6_i32_149 = arith.constant 6 : i32
    %540 = tpu.concatenate %539, %539, %539, %539 in 1 : vector<8x32xf32>, vector<8x32xf32>, vector<8x32xf32>, vector<8x32xf32> -> vector<8x128xf32>
    %541 = arith.mulf %540, %339 : vector<8x128xf32>
    %542 = arith.index_cast %c6_i32_149 : i32 to index
    %c0_150 = arith.constant 0 : index
    %c0_151 = arith.constant 0 : index
    %543 = vector.load %arg9[%542, %c0_150, %c0_151] : memref<8x8x128xf32, #tpu.memory_space<vmem>>, vector<1x8x128xf32>
    %544 = vector.shape_cast %543 : vector<1x8x128xf32> to vector<8x128xf32>
    %545 = arith.truncf %541 : vector<8x128xf32> to vector<8x128xbf16>
    %cst_152 = arith.constant dense<0.000000e+00> : vector<8x128xf32>
    %546 = tpu.matmul %545, %341, %cst_152 {dimension_numbers = #tpu.dot_dimension_numbers<[1], [0], [0], [1], [0, 0, 1, 1], [], []>} : vector<8x128xbf16>, vector<128x128xbf16>, vector<8x128xf32> -> vector<8x128xf32>
    %547 = arith.addf %544, %546 : vector<8x128xf32>
    %548 = vector.extract_strided_slice %547 {offsets = [0, 0], sizes = [8, 32], strides = [1, 1]} : vector<8x128xf32> to vector<8x32xf32>
    %549 = arith.negf %548 : vector<8x32xf32>
    %550 = math.exp %549 : vector<8x32xf32>
    %cst_153 = arith.constant 1.000000e+00 : f32
    %551 = vector.broadcast %cst_153 : f32 to vector<8x32xf32>
    %552 = arith.addf %551, %550 : vector<8x32xf32>
    %553 = arith.divf %551, %552 : vector<8x32xf32>
    %554 = vector.extract_strided_slice %547 {offsets = [0, 32], sizes = [8, 32], strides = [1, 1]} : vector<8x128xf32> to vector<8x32xf32>
    %555 = arith.negf %554 : vector<8x32xf32>
    %556 = math.exp %555 : vector<8x32xf32>
    %cst_154 = arith.constant 1.000000e+00 : f32
    %557 = vector.broadcast %cst_154 : f32 to vector<8x32xf32>
    %558 = arith.addf %557, %556 : vector<8x32xf32>
    %559 = arith.divf %557, %558 : vector<8x32xf32>
    %560 = vector.extract_strided_slice %547 {offsets = [0, 64], sizes = [8, 32], strides = [1, 1]} : vector<8x128xf32> to vector<8x32xf32>
    %561 = arith.negf %560 : vector<8x32xf32>
    %562 = math.exp %561 : vector<8x32xf32>
    %cst_155 = arith.constant 1.000000e+00 : f32
    %563 = vector.broadcast %cst_155 : f32 to vector<8x32xf32>
    %564 = arith.addf %563, %562 : vector<8x32xf32>
    %565 = arith.divf %563, %564 : vector<8x32xf32>
    %566 = vector.extract_strided_slice %547 {offsets = [0, 96], sizes = [8, 32], strides = [1, 1]} : vector<8x128xf32> to vector<8x32xf32>
    %567 = math.tanh %566 : vector<8x32xf32>
    %568 = arith.mulf %559, %537 : vector<8x32xf32>
    %569 = arith.mulf %553, %567 : vector<8x32xf32>
    %570 = arith.addf %568, %569 : vector<8x32xf32>
    %571 = math.tanh %570 : vector<8x32xf32>
    %572 = arith.mulf %565, %571 : vector<8x32xf32>
    %c7_i32_156 = arith.constant 7 : i32
    %573 = tpu.concatenate %572, %572, %572, %572 in 1 : vector<8x32xf32>, vector<8x32xf32>, vector<8x32xf32>, vector<8x32xf32> -> vector<8x128xf32>
    %574 = arith.mulf %573, %339 : vector<8x128xf32>
    %575 = arith.index_cast %c7_i32_156 : i32 to index
    %c0_157 = arith.constant 0 : index
    %c0_158 = arith.constant 0 : index
    %576 = vector.load %arg9[%575, %c0_157, %c0_158] : memref<8x8x128xf32, #tpu.memory_space<vmem>>, vector<1x8x128xf32>
    %577 = vector.shape_cast %576 : vector<1x8x128xf32> to vector<8x128xf32>
    %578 = arith.truncf %574 : vector<8x128xf32> to vector<8x128xbf16>
    %cst_159 = arith.constant dense<0.000000e+00> : vector<8x128xf32>
    %579 = tpu.matmul %578, %341, %cst_159 {dimension_numbers = #tpu.dot_dimension_numbers<[1], [0], [0], [1], [0, 0, 1, 1], [], []>} : vector<8x128xbf16>, vector<128x128xbf16>, vector<8x128xf32> -> vector<8x128xf32>
    %580 = arith.addf %577, %579 : vector<8x128xf32>
    %581 = vector.extract_strided_slice %580 {offsets = [0, 0], sizes = [8, 32], strides = [1, 1]} : vector<8x128xf32> to vector<8x32xf32>
    %582 = arith.negf %581 : vector<8x32xf32>
    %583 = math.exp %582 : vector<8x32xf32>
    %cst_160 = arith.constant 1.000000e+00 : f32
    %584 = vector.broadcast %cst_160 : f32 to vector<8x32xf32>
    %585 = arith.addf %584, %583 : vector<8x32xf32>
    %586 = arith.divf %584, %585 : vector<8x32xf32>
    %587 = vector.extract_strided_slice %580 {offsets = [0, 32], sizes = [8, 32], strides = [1, 1]} : vector<8x128xf32> to vector<8x32xf32>
    %588 = arith.negf %587 : vector<8x32xf32>
    %589 = math.exp %588 : vector<8x32xf32>
    %cst_161 = arith.constant 1.000000e+00 : f32
    %590 = vector.broadcast %cst_161 : f32 to vector<8x32xf32>
    %591 = arith.addf %590, %589 : vector<8x32xf32>
    %592 = arith.divf %590, %591 : vector<8x32xf32>
    %593 = vector.extract_strided_slice %580 {offsets = [0, 64], sizes = [8, 32], strides = [1, 1]} : vector<8x128xf32> to vector<8x32xf32>
    %594 = arith.negf %593 : vector<8x32xf32>
    %595 = math.exp %594 : vector<8x32xf32>
    %cst_162 = arith.constant 1.000000e+00 : f32
    %596 = vector.broadcast %cst_162 : f32 to vector<8x32xf32>
    %597 = arith.addf %596, %595 : vector<8x32xf32>
    %598 = arith.divf %596, %597 : vector<8x32xf32>
    %599 = vector.extract_strided_slice %580 {offsets = [0, 96], sizes = [8, 32], strides = [1, 1]} : vector<8x128xf32> to vector<8x32xf32>
    %600 = math.tanh %599 : vector<8x32xf32>
    %601 = arith.mulf %592, %570 : vector<8x32xf32>
    %602 = arith.mulf %586, %600 : vector<8x32xf32>
    %603 = arith.addf %601, %602 : vector<8x32xf32>
    %604 = math.tanh %603 : vector<8x32xf32>
    %605 = arith.mulf %598, %604 : vector<8x32xf32>
    %c8_i32_163 = arith.constant 8 : i32
    %c0_164 = arith.constant 0 : index
    %c0_165 = arith.constant 0 : index
    %606 = vector.load %arg6[%c0_164, %c0_165] : memref<1x32xf32, #tpu.memory_space<vmem>>, vector<1x32xf32>
    %607 = vector.broadcast %606 : vector<1x32xf32> to vector<8x32xf32>
    %608 = arith.mulf %605, %607 : vector<8x32xf32>
    %cst_166 = arith.constant dense<0.000000e+00> : vector<8xf32>
    %609 = vector.multi_reduction <add>, %608, %cst_166 [1] : vector<8x32xf32> to vector<8xf32>
    %610 = vector.shape_cast %609 : vector<8xf32> to vector<8x1xf32>
    %c0_167 = arith.constant 0 : index
    %c0_168 = arith.constant 0 : index
    %611 = vector.load %arg7[%c0_167, %c0_168] : memref<1x1xf32, #tpu.memory_space<vmem>>, vector<1x1xf32>
    %612 = vector.broadcast %611 : vector<1x1xf32> to vector<8x1xf32>
    %613 = arith.addf %610, %612 : vector<8x1xf32>
    %c0_169 = arith.constant 0 : index
    %c0_170 = arith.constant 0 : index
    %614 = vector.load %arg8[%c0_169, %c0_170] : memref<8x1xf32, #tpu.memory_space<vmem>>, vector<8x1xf32>
    tpu.vector_store %arg8[%c0_169, %c0_170], %613 {strides = array<i32>} : memref<8x1xf32, #tpu.memory_space<vmem>>, vector<8x1xf32>,
    return
  }
}

</mosaic_0001>

<bundles_post_ra>
// kernel: tpu_custom_call.1
= control target key start
LH: loop header
LB: loop body
LE: loop exit
PB: predicated region body
PF: predicated region fallthrough
CT: control target
= control target key end

     0   :  { %s3881_s0 = inlined_call_operand.hbm [shape: f32[8,8,32], index: 0, kind: input, shape index: {}]   ;;  %s3882_s1 = inlined_call_operand.hbm [shape: f32[2,8,128], index: 1, kind: input, shape index: {}]   ;;  %s3883_s2 = inlined_call_operand.hbm [shape: f32[2,8,128], index: 2, kind: input, shape index: {}]   ;;  %s3884_s3 = inlined_call_operand.hbm [shape: bf16[2,128,128], index: 3, kind: input, shape index: {}]   ;;  %s3885_s4 = inlined_call_operand.hbm [shape: bf16[2,128,128], index: 4, kind: input, shape index: {}]   ;;  %s3886_s5 = inlined_call_operand.vmem [shape: f32[2,1,128], index: 5, kind: input, shape index: {}]   ;;  %s3887_s6 = inlined_call_operand.vmem [shape: f32[1,32], index: 6, kind: input, shape index: {}]   ;;  %s3888_s7 = inlined_call_operand.<no memory space> [shape: f32[1,1], index: 7, kind: input, shape index: {}]   ;;  %s3889_s8 = inlined_call_operand.vmem [shape: f32[8,1], index: 8, kind: output, shape index: {}]  }
   0x1   :  { %v13_v0 = vstv %s3888_s7 }
   0x2   :  { %14 = vst [vmem:[#allocation4] sm:$0x1] %v13_v0 }
   0x3   :  { %15 = vsyncpa [#allocation6], 0 }
   0x4   :  { %16 = vsyncpa [#allocation8], 0 }
   0x5   :  { %17 = vsyncpa [#allocation11], 0  ;;  %s2995_s29 = smov [#allocation7]   ;;  %s2996_s9 = smov [#allocation10]  }
   0x6   :  { %s35_s30 = sshll.u32 %s2995_s29, 4  ;;  %s59_s10 = sshll.u32 %s2996_s9, 4  ;;  %s36_s30 = int_to_ptr.vmem [resolvable:$true] %s35_s30  ;;  %s3056_s10 = int_to_ptr.vmem [resolvable:$true] %s59_s10 }
   0x7   :  { %s2879_s13 = scalar_lea.hbm %s3882_s1, 256 }
   0x8   :  { %p2880_p0 = scmp.ne.s32.totalorder %s3882_s1, %s2879_s13  ;;  %p2883_p1 = scmp.lt.u32.totalorder %s2879_s13, %s3882_s1 }
   0xa   :  { %p2885_p2 = pnand %p2883_p1, %p2880_p0 }
   0xc   :  { %2888 = shalt.err (!%p2885_p2)
}
   0xd   :  { %s2889_s17 = scalar_lea.vmem %s36_s30, 256  ;;  %p2894_p4 = scmp.lt.s32.totalorder %s36_s30, %s36_s30 }
   0xe   :  { %p2890_p3 = scmp.ne.s32.totalorder %s36_s30, %s2889_s17  ;;  %p2895_p5 = scmp.lt.s32.totalorder %s2889_s17, %s2889_s17 }
  0x10   :  { %p2896_p6 = por %p2895_p5, %p2894_p4 }
  0x12   :  { %p2897_p7 = pnand %p2896_p6, %p2890_p3 }
  0x14   :  { %2900 = shalt.err (!%p2897_p7)
}
  0x15   :  { %s2997_s18 = smov 128   ;;  %s2998_s19 = smov 8  }
  0x16   :  { %41 = dma.hbm_to_vmem [thread:$0]  %s3882_s1, 256, %s36_s30, [#allocation8], %s2997_s18, %s2997_s18, %s2998_s19  }
  0x17   :  { %s2901_s24 = scalar_lea.hbm %s3884_s3, 2048 }
  0x18   :  { %p2902_p8 = scmp.ne.s32.totalorder %s3884_s3, %s2901_s24  ;;  %p2905_p9 = scmp.lt.u32.totalorder %s2901_s24, %s3884_s3 }
  0x1a   :  { %p2907_p10 = pnand %p2905_p9, %p2902_p8 }
  0x1c   :  { %2910 = shalt.err (!%p2907_p10)
}
  0x1d   :  { %s2911_s29 = scalar_lea.vmem %s3056_s10, 2048  ;;  %p2916_p12 = scmp.lt.s32.totalorder %s3056_s10, %s3056_s10 }
  0x1e   :  { %p2912_p11 = scmp.ne.s32.totalorder %s3056_s10, %s2911_s29  ;;  %p2917_p13 = scmp.lt.s32.totalorder %s2911_s29, %s2911_s29 }
  0x20   :  { %p2918_p0 = por %p2917_p13, %p2916_p12 }
  0x22   :  { %p2919_p1 = pnand %p2918_p0, %p2912_p11 }
  0x24   :  { %2922 = shalt.err (!%p2919_p1)
}
  0x25   :  { %s2999_s1 = smov 64   ;;  %s3000_s30 = smov 4  }
  0x26   :  { %65 = dma.hbm_to_vmem [thread:$0]  %s3884_s3, 2048, %s3056_s10, [#allocation11], %s2999_s1, %s2999_s1, %s3000_s30  }
  0x27   :  { %s3001_s12 = smov [#allocation5]   ;;  %s3002_s14 = smov [#allocation9]  }
  0x28   :  { %s23_s13 = sshll.u32 %s3001_s12, 4  ;;  %s47_s15 = sshll.u32 %s3002_s14, 4  ;;  %s24_s13 = int_to_ptr.vmem [resolvable:$true] %s23_s13  ;;  %s3093_s15 = int_to_ptr.vmem [resolvable:$true] %s47_s15 }
  0x29   :  { %s2923_s17 = scalar_lea.hbm %s3881_s0, 1024 }
  0x2a   :  { %p2924_p2 = scmp.ne.s32.totalorder %s3881_s0, %s2923_s17  ;;  %p2927_p3 = scmp.lt.u32.totalorder %s2923_s17, %s3881_s0 }
  0x2c   :  { %p2929_p4 = pnand %p2927_p3, %p2924_p2 }
  0x2e   :  { %2932 = shalt.err (!%p2929_p4)
}
  0x2f   :  { %s2933_s3 = scalar_lea.vmem %s24_s13, 1024  ;;  %p2938_p6 = scmp.lt.s32.totalorder %s24_s13, %s24_s13 }
  0x30   :  { %p2934_p5 = scmp.ne.s32.totalorder %s24_s13, %s2933_s3  ;;  %p2939_p7 = scmp.lt.s32.totalorder %s2933_s3, %s2933_s3 }
  0x32   :  { %p2940_p8 = por %p2939_p7, %p2938_p6 }
  0x34   :  { %p2941_p9 = pnand %p2940_p8, %p2934_p5 }
  0x36   :  { %2944 = shalt.err (!%p2941_p9)
}
  0x37   :  { %29 = dma.hbm_to_vmem [thread:$0]  %s3881_s0, 1024, %s24_s13, [#allocation6], %s2997_s18, %s2997_s18, %s2998_s19  }
  0x38   :  { %s2945_s27 = scalar_lea.hbm %s3883_s2, 256 }
  0x39   :  { %p2946_p10 = scmp.ne.s32.totalorder %s3883_s2, %s2945_s27  ;;  %p2949_p11 = scmp.lt.u32.totalorder %s2945_s27, %s3883_s2 }
  0x3b   :  { %p2951_p12 = pnand %p2949_p11, %p2946_p10 }
  0x3d   :  { %2954 = shalt.err (!%p2951_p12)
}
  0x3e   :  { %s2955_s12 = scalar_lea.vmem %s3093_s15, 256  ;;  %p2960_p0 = scmp.lt.s32.totalorder %s3093_s15, %s3093_s15 }
  0x3f   :  { %p2956_p13 = scmp.ne.s32.totalorder %s3093_s15, %s2955_s12  ;;  %p2961_p1 = scmp.lt.s32.totalorder %s2955_s12, %s2955_s12 }
  0x41   :  { %p2962_p2 = por %p2961_p1, %p2960_p0 }
  0x43   :  { %p2963_p3 = pnand %p2962_p2, %p2956_p13 }
  0x45   :  { %2966 = shalt.err (!%p2963_p3)
}
  0x46   :  { %53 = dma.hbm_to_vmem [thread:$0]  %s3883_s2, 256, %s3093_s15, [#allocation8], %s2997_s18, %s2997_s18, %s2998_s19  }
  0x47   :  { %s3003_s14 = smov [#allocation12]   ;;  %s2967_s20 = scalar_lea.hbm %s3885_s4, 2048 }
  0x48   :  { %s71_s7 = sshll.u32 %s3003_s14, 4  ;;  %p2968_p4 = scmp.ne.s32.totalorder %s3885_s4, %s2967_s20  ;;  %s72_s7 = int_to_ptr.vmem [resolvable:$true] %s71_s7 }
  0x49   :  { %p2971_p5 = scmp.lt.u32.totalorder %s2967_s20, %s3885_s4 }
  0x4b   :  { %p2973_p6 = pnand %p2971_p5, %p2968_p4 }
  0x4d   :  { %2976 = shalt.err (!%p2973_p6)
}
  0x4e   :  { %s2977_s10 = scalar_lea.vmem %s72_s7, 2048  ;;  %p2982_p8 = scmp.lt.s32.totalorder %s72_s7, %s72_s7 }
  0x4f   :  { %p2978_p7 = scmp.ne.s32.totalorder %s72_s7, %s2977_s10  ;;  %p2983_p9 = scmp.lt.s32.totalorder %s2977_s10, %s2977_s10 }
  0x51   :  { %p2984_p10 = por %p2983_p9, %p2982_p8 }
  0x53   :  { %p2985_p11 = pnand %p2984_p10, %p2978_p7 }
  0x55   :  { %2988 = shalt.err (!%p2985_p11)
}
  0x56   :  { %77 = dma.hbm_to_vmem [thread:$0]  %s3885_s4, 2048, %s72_s7, [#allocation11], %s2999_s1, %s2999_s1, %s3000_s30  }
  0x57   :  { %2989 = dma.done.wait [#allocation6], 1024  }
  0x58   :  { %2990 = vsyncadd [#allocation6], 4294966272 }
  0x59   :  { %2991 = dma.done.wait [#allocation8], 512  }
  0x5a   :  { %2992 = vsyncadd [#allocation8], 4294966784 }
  0x5b   :  { %2993 = dma.done.wait [#allocation11], 4096  }
  0x5c   :  { %2994 = vsyncadd [#allocation11], 4294963200  ;;  %v3004_v1 = vmov 0.0   ;;  %v3146_v2 = vld [vmem:[#allocation5 + $0x10] sm:$0xff]  ;;  %v3148_v3 = vld [vmem:[#allocation5] sm:$0xff]  ;;  %s3005_s19 = smov 32  }
  0x5d   :  { %2360 = vmatprep.subr.bf16.mxu1 %v3004_v1  ;;  %v3150_v4 = vld [vmem:[#allocation5 + $0x18] sm:$0xff]  ;;  %121 = vrot.lane.b32.xlu1 %v3146_v2, %s3005_s19  ;;  %v3156_v5 = vld [vmem:[#allocation5 + $0x8] sm:$0xff]  ;;  %v2717_v6 = vld [vmem:[#allocation10] sm:$0xff]   ;;  %vm3006_vm0 = vmmov 0   ;;  %s3007_s4 = smov 96   ;;  %vm189_vm1 = vcmask 261120  }
  0x5e   :  { %117 = vrot.lane.b32.xlu0 %v3148_v3, %s3005_s19  ;;  %v3158_v7 = vld [vmem:[#allocation12] sm:$0xff]   ;;  %2336 = vmatprep.subr.bf16.mxu0 %v2717_v6  ;;  %v2719_v8 = vld [vmem:[#allocation10 + $0x8] sm:$0xff]   ;;  %v2721_v10 = vld [vmem:[#allocation10 + $0x10] sm:$0xff]   ;;  %vm198_vm2 = vcmask 523264   ;;  %vm207_vm3 = vcmask 785408   ;;  %vm2106_vm4 = vcmask 7168  }
  0x5f   :  { %2337 = vmatpush3.bf16.msra.mxu0 %v2717_v6  ;;  %2361 = vmatpush3.bf16.msra.mxu1 %v3158_v7  ;;  %v3165_v9 = vld [vmem:[#allocation12 + $0x8] sm:$0xff]   ;;  %v3173_v11 = vld [vmem:[#allocation12 + $0x10] sm:$0xff]   ;;  %v2723_v12 = vld [vmem:[#allocation10 + $0x18] sm:$0xff]  }
  0x60   :  { %2338 = vmatprep.subr.bf16.mxu0 %v2719_v8  ;;  %2362 = vmatprep.subr.bf16.mxu1 %v3004_v1  ;;  %v3183_v13 = vld [vmem:[#allocation12 + $0x18] sm:$0xff]   ;;  %v2725_v14 = vld [vmem:[#allocation10 + $0x20] sm:$0xff]   ;;  %v2727_v16 = vld [vmem:[#allocation10 + $0x28] sm:$0xff]  }
  0x61   :  { %123 = vrot.lane.b32.xlu1 %v3150_v4, %s3005_s19  ;;  %2376 = vmatprep.mubr.msk.bf16.mxu1 %vm3006_vm0, %v3004_v1  ;;  %v3190_v15 = vld [vmem:[#allocation12 + $0x20] sm:$0xff]   ;;  %v3194_v17 = vld [vmem:[#allocation12 + $0x28] sm:$0xff]   ;;  %v2729_v18 = vld [vmem:[#allocation10 + $0x30] sm:$0xff]  }
  0x62   :  { %119 = vrot.lane.b32.xlu0 %v3156_v5, %s3005_s19  ;;  %v3202_v19 = vld [vmem:[#allocation12 + $0x30] sm:$0xff]   ;;  %v2731_v21 = vld [vmem:[#allocation10 + $0x38] sm:$0xff]   ;;  %v3238_v35 = vld [vmem:[#allocation7] sm:$0xff] }
  0x63   :  { %2339 = vmatpush3.bf16.msra.mxu0 %v2719_v8  ;;  %2363 = vmatpush3.bf16.msra.mxu1 %v3165_v9  ;;  %v3204_v20 = vld [vmem:[#allocation9] sm:$0xff]  ;;  %v3210_v23 = vld [vmem:[#allocation12 + $0x38] sm:$0xff]  }
  0x64   :  { %2340 = vmatprep.subr.bf16.mxu0 %v2721_v10  ;;  %2364 = vmatprep.subr.bf16.mxu1 %v3004_v1  ;;  %v389_v22 = vmul.f32 0.0, %v3204_v20  ;;  %v3275_v60 = vld [vmem:[%s3886_s5] ss:$0 sm:$0xff] }
  0x65   :  { %143 = vrot.lane.b32.xlu1 %v3156_v5, %s2999_s1 }
  0x66   :  { %141 = vrot.lane.b32.xlu0 %v3148_v3, %s2999_s1  ;;  %v391_v24 = vpack.c.bf16 %v389_v22, %v389_v22 }
  0x67   :  { %2341 = vmatpush3.bf16.msra.mxu0 %v2721_v10  ;;  %2365 = vmatpush3.bf16.msra.mxu1 %v3173_v11 }
  0x68   :  { %2342 = vmatprep.subr.bf16.mxu0 %v2723_v12  ;;  %2366 = vmatprep.subr.bf16.mxu1 %v3004_v1 }
  0x69   :  { %147 = vrot.lane.b32.xlu1 %v3150_v4, %s2999_s1 }
  0x6a   :  { %145 = vrot.lane.b32.xlu0 %v3146_v2, %s2999_s1 }
  0x6b   :  { %2343 = vmatpush3.bf16.msra.mxu0 %v2723_v12  ;;  %2367 = vmatpush3.bf16.msra.mxu1 %v3183_v13 }
  0x6c   :  { %2344 = vmatprep.subr.bf16.mxu0 %v2725_v14  ;;  %2368 = vmatprep.subr.bf16.mxu1 %v3004_v1 }
  0x6d   :  { %167 = vrot.lane.b32.xlu1 %v3156_v5, %s3007_s4 }
  0x6e   :  { %165 = vrot.lane.b32.xlu0 %v3148_v3, %s3007_s4 }
  0x6f   :  { %2345 = vmatpush3.bf16.msra.mxu0 %v2725_v14  ;;  %2369 = vmatpush3.bf16.msra.mxu1 %v3190_v15 }
  0x70   :  { %2346 = vmatprep.subr.bf16.mxu0 %v2727_v16  ;;  %2370 = vmatprep.subr.bf16.mxu1 %v3004_v1 }
  0x71   :  { %171 = vrot.lane.b32.xlu1 %v3150_v4, %s3007_s4 }
  0x72   :  { %169 = vrot.lane.b32.xlu0 %v3146_v2, %s3007_s4 }
  0x73   :  { %2347 = vmatpush3.bf16.msra.mxu0 %v2727_v16  ;;  %2371 = vmatpush3.bf16.msra.mxu1 %v3194_v17  ;;  %v104_v16 = vld [vmem:[#allocation5 + $0x20] sm:$0xff] }
  0x74   :  { %2348 = vmatprep.subr.bf16.mxu0 %v2729_v18  ;;  %2372 = vmatprep.subr.bf16.mxu1 %v3004_v1 }
  0x77   :  { %2349 = vmatpush3.bf16.msra.mxu0 %v2729_v18  ;;  %2373 = vmatpush3.bf16.msra.mxu1 %v3202_v19  ;;  %v106_v18 = vld [vmem:[#allocation5 + $0x30] sm:$0xff] }
  0x78   :  { %2350 = vmatprep.subr.bf16.mxu0 %v2731_v21  ;;  %2374 = vmatprep.subr.bf16.mxu1 %v3004_v1 }
  0x7b   :  { %2351 = vmatpush3.bf16.msra.mxu0 %v2731_v21  ;;  %2375 = vmatpush3.bf16.msra.mxu1 %v3210_v23 }
  0x7c   :  { %2380 = vmatprep.subr.bf16.mxu0 %v3004_v1  ;;  %2400 = vmatprep.subr.bf16.mxu1 %v3004_v1 }
  0x7e   :  { %2377 = vmatmul.mubr.bf16.vlgmr.msra.gmra.mrb[0].mxu1 %v391_v24 }
  0x7f   :  { %2401 = vmatpush3.bf16.msra.mxu1 %v3158_v7  ;;  %2416 = vmatprep.mubr.msk.bf16.mxu1 %vm3006_vm0, %v3004_v1 }
  0x80   :  { %2402 = vmatprep.subr.bf16.mxu1 %v3004_v1 }
  0x83   :  { %2403 = vmatpush3.bf16.msra.mxu1 %v3165_v9 }
  0x84   :  { %2404 = vmatprep.subr.bf16.mxu1 %v3004_v1 }
  0x87   :  { %2405 = vmatpush3.bf16.msra.mxu1 %v3173_v11 }
  0x88   :  { %2406 = vmatprep.subr.bf16.mxu1 %v3004_v1 }
  0x8b   :  { %2407 = vmatpush3.bf16.msra.mxu1 %v3183_v13 }
  0x8c   :  { %2408 = vmatprep.subr.bf16.mxu1 %v3004_v1 }
  0x8f   :  { %2409 = vmatpush3.bf16.msra.mxu1 %v3190_v15 }
  0x90   :  { %2410 = vmatprep.subr.bf16.mxu1 %v3004_v1 }
  0x93   :  { %2411 = vmatpush3.bf16.msra.mxu1 %v3194_v17 }
  0x94   :  { %2412 = vmatprep.subr.bf16.mxu1 %v3004_v1 }
  0x97   :  { %2413 = vmatpush3.bf16.msra.mxu1 %v3202_v19 }
  0x98   :  { %2414 = vmatprep.subr.bf16.mxu1 %v3004_v1 }
  0x9b   :  { %2415 = vmatpush3.bf16.msra.mxu1 %v3210_v23 }
  0x9c   :  { %2440 = vmatprep.subr.bf16.mxu1 %v3004_v1 }
  0xcf   :  { %v122_v25 = vpop.permute.xlu1 %121 }
  0xd0   :  { %v118_v26 = vpop.permute.xlu0 %117  ;;  %v192_v44 = vsel %vm189_vm1, %v3146_v2, %v122_v25 }
  0xd1   :  { %v190_v33 = vsel %vm189_vm1, %v3148_v3, %v118_v26  ;;  %v105_v26 = vld [vmem:[#allocation5 + $0x28] sm:$0xff] }
  0xd3   :  { %v124_v27 = vpop.permute.xlu1 %123 }
  0xd4   :  { %v120_v28 = vpop.permute.xlu0 %119  ;;  %v193_v45 = vsel %vm189_vm1, %v3150_v4, %v124_v27  ;;  %v107_v27 = vld [vmem:[#allocation5 + $0x38] sm:$0xff] }
  0xd5   :  { %v191_v34 = vsel %vm189_vm1, %v3156_v5, %v120_v28 }
  0xd7   :  { %v144_v29 = vpop.permute.xlu1 %143 }
  0xd8   :  { %v142_v30 = vpop.permute.xlu0 %141  ;;  %v200_v36 = vsel %vm198_vm2, %v191_v34, %v144_v29 }
  0xd9   :  { %v199_v37 = vsel %vm198_vm2, %v190_v33, %v142_v30 }
  0xdb   :  { %v148_v31 = vpop.permute.xlu1 %147 }
  0xdc   :  { %v146_v32 = vpop.permute.xlu0 %145  ;;  %v202_v46 = vsel %vm198_vm2, %v193_v45, %v148_v31 }
  0xdd   :  { %v201_v47 = vsel %vm198_vm2, %v192_v44, %v146_v32 }
  0xdf   :  { %v168_v38 = vpop.permute.xlu1 %167 }
  0xe0   :  { %v166_v39 = vpop.permute.xlu0 %165  ;;  %v209_v40 = vsel %vm207_vm3, %v200_v36, %v168_v38 }
  0xe1   :  { %v208_v41 = vsel %vm207_vm3, %v199_v37, %v166_v39  ;;  %v217_v43 = vmul.f32 %v209_v40, %v3238_v35 }
  0xe2   :  { %v216_v42 = vmul.f32 %v208_v41, %v3238_v35 }
  0xe3   :  { %v172_v48 = vpop.permute.xlu1 %171 }
  0xe4   :  { %v170_v49 = vpop.permute.xlu0 %169  ;;  %v224_v50 = vpack.c.bf16 %v217_v43, %v216_v42  ;;  %v211_v51 = vsel %vm207_vm3, %v202_v46, %v172_v48 }
  0xe5   :  { %v210_v52 = vsel %vm207_vm3, %v201_v47, %v170_v49  ;;  %v219_v53 = vmul.f32 %v211_v51, %v3238_v35 }
  0xe6   :  { %v218_v54 = vmul.f32 %v210_v52, %v3238_v35  ;;  %2352 = vmatprep.mubr.bf16.mxu0 %v224_v50 }
  0xe8   :  { %v225_v55 = vpack.c.bf16 %v219_v53, %v218_v54 }
  0xea   :  { %2353 = vmatmul.mubr.bf16.vlgmr.msra.gmra.mrb[0].mxu0 %v225_v55 }
  0xeb   :  { %2381 = vmatpush3.bf16.msra.mxu0 %v3158_v7 }
  0xec   :  { %2382 = vmatprep.subr.bf16.mxu0 %v3004_v1 }
  0xef   :  { %2383 = vmatpush3.bf16.msra.mxu0 %v3165_v9 }
  0xf0   :  { %2384 = vmatprep.subr.bf16.mxu0 %v3004_v1 }
  0xf3   :  { %2385 = vmatpush3.bf16.msra.mxu0 %v3173_v11 }
  0xf4   :  { %2386 = vmatprep.subr.bf16.mxu0 %v3004_v1 }
  0xf7   :  { %2387 = vmatpush3.bf16.msra.mxu0 %v3183_v13 }
  0xf8   :  { %2388 = vmatprep.subr.bf16.mxu0 %v3004_v1 }
  0xfb   :  { %2389 = vmatpush3.bf16.msra.mxu0 %v3190_v15 }
  0xfc   :  { %2390 = vmatprep.subr.bf16.mxu0 %v3004_v1 }
  0xff   :  { %2391 = vmatpush3.bf16.msra.mxu0 %v3194_v17 }
 0x100   :  { %2392 = vmatprep.subr.bf16.mxu0 %v3004_v1 }
 0x103   :  { %2393 = vmatpush3.bf16.msra.mxu0 %v3202_v19 }
 0x104   :  { %2394 = vmatprep.subr.bf16.mxu0 %v3004_v1 }
 0x107   :  { %2395 = vmatpush3.bf16.msra.mxu0 %v3210_v23 }
 0x108   :  { %2420 = vmatprep.subr.bf16.mxu0 %v3004_v1 }
 0x151   :  { %v474_v56 = vpop.f32.mrb[0].mxu1 }
 0x152   :  { %v2378_v57 = vpop.f32.mrb[1].mxu1 }
 0x153   :  { %v477_v58 = vpop.f32.mrb[2].mxu1 }
 0x154   :  { %v2379_v59 = vpop.f32.mrb[3].mxu1 }
 0x1bd   :  { %v3277_v61 = vpop.f32.mrb[0].mxu0 }
 0x1be   :  { %v333_v62 = vpop.f32.mrb[1].mxu0 }
 0x1bf   :  { %v334_v63 = vadd.f32 %v3275_v60, %v333_v62  ;;  %v3280_v0 = vpop.f32.mrb[2].mxu0 }
 0x1c0   :  { %v3282_v2 = vpop.f32.mrb[3].mxu0 }
 0x1c1   :  { %v480_v3 = vadd.f32 %v474_v56, %v334_v63 }
 0x1c3   :  { %2749 = vtanh.f32 %v480_v3  ;;  %v2132_v5 = vmul.f32 -1.442695, %v480_v3 }
 0x1c5   :  { %2751 = vpow2.f32 %v2132_v5 }
 0x1cd   :  { %v2750_v4 = vpop.eup %2749 }
 0x1ce   :  { %490 = vrot.lane.b32.xlu0 %v2750_v4, %s3005_s19 }
 0x1cf   :  { %v2752_v6 = vpop.eup %2751 }
 0x1d0   :  { %v484_v8 = vadd.f32 1.0, %v2752_v6 }
 0x1d2   :  { %2753 = vrcp.f32 %v484_v8 }
 0x1dc   :  { %v2754_v10 = vpop.eup %2753 }
 0x1dd   :  { %v488_v21 = vmul.f32 0.0, %v2754_v10 }
 0x240   :  { %v491_v12 = vpop.permute.xlu0 %490 }
 0x241   :  { %v493_v14 = vmul.f32 %v2754_v10, %v491_v12 }
 0x243   :  { %495 = vrot.lane.b32.xlu1 %v493_v14, %s3005_s19 }
 0x247   :  { %125 = vrot.lane.b32.xlu1 %v104_v16, %s3005_s19 }
 0x24b   :  { %129 = vrot.lane.b32.xlu1 %v106_v18, %s3005_s19 }
 0x24f   :  { %149 = vrot.lane.b32.xlu1 %v104_v16, %s2999_s1 }
 0x253   :  { %153 = vrot.lane.b32.xlu1 %v106_v18, %s2999_s1 }
 0x257   :  { %173 = vrot.lane.b32.xlu1 %v104_v16, %s3007_s4 }
 0x25b   :  { %177 = vrot.lane.b32.xlu1 %v106_v18, %s3007_s4 }
 0x2b5   :  { %v496_v22 = vpop.permute.xlu1 %495 }
 0x2b6   :  { %v3292_v24 = vadd.f32 %v496_v22, %v488_v21  ;;  %v337_v21 = vadd.f32 %v3275_v60, %v3282_v2 }
 0x2b8   :  { %2755 = vtanh.f32 %v3292_v24 }
 0x2b9   :  { %v126_v28 = vpop.permute.xlu1 %125 }
 0x2ba   :  { %v194_v37 = vsel %vm189_vm1, %v104_v16, %v126_v28 }
 0x2bd   :  { %v130_v29 = vpop.permute.xlu1 %129 }
 0x2be   :  { %v196_v42 = vsel %vm189_vm1, %v106_v18, %v130_v29 }
 0x2c1   :  { %v150_v31 = vpop.permute.xlu1 %149 }
 0x2c2   :  { %v2756_v25 = vpop.eup %2755  ;;  %v203_v40 = vsel %vm198_vm2, %v194_v37, %v150_v31 }
 0x2c3   :  { %501 = vrot.lane.b32.xlu0 %v2756_v25, %s3005_s19 }
 0x2c5   :  { %v154_v34 = vpop.permute.xlu1 %153 }
 0x2c6   :  { %v205_v46 = vsel %vm198_vm2, %v196_v42, %v154_v34 }
 0x2c7   :  { %127 = vrot.lane.b32.xlu0 %v105_v26, %s3005_s19 }
 0x2c9   :  { %v174_v39 = vpop.permute.xlu1 %173 }
 0x2ca   :  { %v212_v44 = vsel %vm207_vm3, %v203_v40, %v174_v39 }
 0x2cb   :  { %131 = vrot.lane.b32.xlu0 %v107_v27, %s3005_s19  ;;  %v220_v49 = vmul.f32 %v212_v44, %v3238_v35 }
 0x2cd   :  { %v178_v47 = vpop.permute.xlu1 %177 }
 0x2ce   :  { %v214_v52 = vsel %vm207_vm3, %v205_v46, %v178_v47 }
 0x2cf   :  { %151 = vrot.lane.b32.xlu0 %v105_v26, %s2999_s1  ;;  %v222_v55 = vmul.f32 %v214_v52, %v3238_v35 }
 0x2d3   :  { %155 = vrot.lane.b32.xlu0 %v107_v27, %s2999_s1 }
 0x2d7   :  { %175 = vrot.lane.b32.xlu0 %v105_v26, %s3007_s4 }
 0x2db   :  { %179 = vrot.lane.b32.xlu0 %v107_v27, %s3007_s4 }
 0x335   :  { %v502_v30 = vpop.permute.xlu0 %501 }
 0x336   :  { %v504_v32 = vmul.f32 %v2754_v10, %v502_v30 }
 0x338   :  { %510 = vrot.lane.b32.xlu0 %v504_v32, %s3007_s4  ;;  %506 = vrot.lane.b32.xlu1 %v504_v32, %s2999_s1 }
 0x339   :  { %v128_v33 = vpop.permute.xlu0 %127 }
 0x33a   :  { %v195_v41 = vsel %vm189_vm1, %v105_v26, %v128_v33 }
 0x33c   :  { %513 = vrot.lane.b32.xlu1 %v504_v32, %s3005_s19 }
 0x33d   :  { %v132_v36 = vpop.permute.xlu0 %131 }
 0x33e   :  { %v197_v48 = vsel %vm189_vm1, %v107_v27, %v132_v36 }
 0x341   :  { %v152_v38 = vpop.permute.xlu0 %151 }
 0x342   :  { %v204_v45 = vsel %vm198_vm2, %v195_v41, %v152_v38 }
 0x345   :  { %v156_v43 = vpop.permute.xlu0 %155 }
 0x346   :  { %v206_v53 = vsel %vm198_vm2, %v197_v48, %v156_v43 }
 0x349   :  { %v176_v50 = vpop.permute.xlu0 %175 }
 0x34a   :  { %v213_v51 = vsel %vm207_vm3, %v204_v45, %v176_v50 }
 0x34b   :  { %v221_v54 = vmul.f32 %v213_v51, %v3238_v35 }
 0x34d   :  { %v180_v56 = vpop.permute.xlu0 %179  ;;  %v226_v57 = vpack.c.bf16 %v221_v54, %v220_v49  ;;  %v342_v49 = vadd.f32 %v3277_v61, %v3275_v60 }
 0x34e   :  { %v215_v58 = vsel %vm207_vm3, %v206_v53, %v180_v56 }
 0x34f   :  { %v223_v59 = vmul.f32 %v215_v58, %v3238_v35  ;;  %2356 = vmatprep.mubr.bf16.mxu0 %v226_v57 }
 0x351   :  { %v227_v62 = vpack.c.bf16 %v223_v59, %v222_v55 }
 0x353   :  { %2357 = vmatmul.mubr.bf16.gmra.mrb[4].mxu0 %v227_v62 }
 0x354   :  { %2396 = vmatprep.mubr.msk.bf16.mxu0 %vm3006_vm0, %v3004_v1 }
 0x3aa   :  { %v507_v63 = vpop.permute.xlu1 %506  ;;  %v511_v3 = vpop.permute.xlu0 %510 }
 0x3ab   :  { %509 = vst.msk [vmem:[#allocation3] sm:$0xff] %vm189_vm1, %v507_v63  ;;  %v516_v4 = vsel %vm189_vm1, %v507_v63, %v511_v3 }
 0x3ac   :  { %v517_v6 = vsel %vm198_vm2, %v516_v4, %v504_v32 }
 0x3ae   :  { %v514_v5 = vpop.permute.xlu1 %513 }
 0x3af   :  { %v518_v8 = vsel %vm207_vm3, %v517_v6, %v514_v5 }
 0x3b0   :  { %v519_v10 = vmul.f32 %v518_v8, %v3204_v20 }
 0x3b2   :  { %v522_v35 = vpack.c.bf16 %v519_v10, %v519_v10 }
 0x3b4   :  { %2397 = vmatmul.mubr.bf16.vlgmr.msra.gmra.mrb[8].mxu0 %v522_v35 }
 0x3b5   :  { %2421 = vmatpush3.bf16.msra.mxu0 %v3158_v7  ;;  %2436 = vmatprep.mubr.msk.bf16.mxu0 %vm3006_vm0, %v3004_v1 }
 0x3b6   :  { %2422 = vmatprep.subr.bf16.mxu0 %v3004_v1 }
 0x3b9   :  { %2423 = vmatpush3.bf16.msra.mxu0 %v3165_v9 }
 0x3ba   :  { %2424 = vmatprep.subr.bf16.mxu0 %v3004_v1 }
 0x3bd   :  { %2425 = vmatpush3.bf16.msra.mxu0 %v3173_v11 }
 0x3be   :  { %2426 = vmatprep.subr.bf16.mxu0 %v3004_v1 }
 0x3c1   :  { %2427 = vmatpush3.bf16.msra.mxu0 %v3183_v13 }
 0x3c2   :  { %2428 = vmatprep.subr.bf16.mxu0 %v3004_v1 }
 0x3c5   :  { %2429 = vmatpush3.bf16.msra.mxu0 %v3190_v15 }
 0x3c6   :  { %2430 = vmatprep.subr.bf16.mxu0 %v3004_v1 }
 0x3c9   :  { %2431 = vmatpush3.bf16.msra.mxu0 %v3194_v17 }
 0x3ca   :  { %2432 = vmatprep.subr.bf16.mxu0 %v3004_v1 }
 0x3cd   :  { %2433 = vmatpush3.bf16.msra.mxu0 %v3202_v19 }
 0x3ce   :  { %2434 = vmatprep.subr.bf16.mxu0 %v3004_v1 }
 0x3d1   :  { %2435 = vmatpush3.bf16.msra.mxu0 %v3210_v23 }
 0x3d2   :  { %2460 = vmatprep.subr.bf16.mxu0 %v3004_v1 }
 0x426   :  { %v3346_v12 = vpop.f32.mrb[4].mxu0 }
 0x427   :  { %v3348_v14 = vpop.f32.mrb[5].mxu0 }
 0x428   :  { %v3350_v16 = vpop.f32.mrb[6].mxu0 }
 0x429   :  { %v3352_v18 = vpop.f32.mrb[7].mxu0 }
 0x487   :  { %v557_v22 = vpop.f32.mrb[8].mxu0 }
 0x488   :  { %v563_v25 = vadd.f32 %v557_v22, %v337_v21  ;;  %v2398_v26 = vpop.f32.mrb[9].mxu0 }
 0x489   :  { %v560_v27 = vpop.f32.mrb[10].mxu0 }
 0x48a   :  { %2757 = vtanh.f32 %v563_v25  ;;  %v2399_v28 = vpop.f32.mrb[11].mxu0  ;;  %v2133_v30 = vmul.f32 -1.442695, %v563_v25 }
 0x48c   :  { %2759 = vpow2.f32 %v2133_v30 }
 0x494   :  { %v2758_v29 = vpop.eup %2757 }
 0x495   :  { %573 = vrot.lane.b32.xlu0 %v2758_v29, %s3005_s19  ;;  %v345_v29 = vadd.f32 %v3280_v0, %v3275_v60 }
 0x496   :  { %v2760_v31 = vpop.eup %2759 }
 0x497   :  { %v567_v32 = vadd.f32 1.0, %v2760_v31 }
 0x499   :  { %2761 = vrcp.f32 %v567_v32 }
 0x4a3   :  { %v2762_v33 = vpop.eup %2761 }
 0x4a4   :  { %v571_v2 = vmul.f32 %v2762_v33, %v3292_v24 }
 0x507   :  { %v574_v34 = vpop.permute.xlu0 %573 }
 0x508   :  { %v576_v36 = vmul.f32 %v2762_v33, %v574_v34 }
 0x50a   :  { %578 = vrot.lane.b32.xlu1 %v576_v36, %s3005_s19 }
 0x57c   :  { %v579_v37 = vpop.permute.xlu1 %578 }
 0x57d   :  { %v581_v38 = vadd.f32 %v579_v37, %v571_v2 }
 0x57f   :  { %2763 = vtanh.f32 %v581_v38 }
 0x589   :  { %v2764_v39 = vpop.eup %2763 }
 0x58a   :  { %584 = vrot.lane.b32.xlu0 %v2764_v39, %s3005_s19 }
 0x5fc   :  { %v585_v40 = vpop.permute.xlu0 %584 }
 0x5fd   :  { %v587_v41 = vmul.f32 %v2762_v33, %v585_v40 }
 0x5ff   :  { %594 = vrot.lane.b32.xlu0 %v587_v41, %s3007_s4  ;;  %589 = vrot.lane.b32.xlu1 %v587_v41, %s2999_s1 }
 0x603   :  { %597 = vrot.lane.b32.xlu1 %v587_v41, %s3005_s19 }
 0x671   :  { %v595_v42 = vpop.permute.xlu0 %594  ;;  %v590_v43 = vpop.permute.xlu1 %589 }
 0x672   :  { %593 = vst.msk [vmem:[#allocation3 + $0x8] sm:$0xff] %vm189_vm1, %v590_v43  ;;  %v600_v24 = vsel %vm189_vm1, %v590_v43, %v595_v42 }
 0x673   :  { %v601_v44 = vsel %vm198_vm2, %v600_v24, %v587_v41 }
 0x675   :  { %v598_v45 = vpop.permute.xlu1 %597 }
 0x676   :  { %v602_v46 = vsel %vm207_vm3, %v601_v44, %v598_v45 }
 0x677   :  { %v603_v47 = vmul.f32 %v602_v46, %v3204_v20 }
 0x679   :  { %v606_v48 = vpack.c.bf16 %v603_v47, %v603_v47 }
 0x67b   :  { %2417 = vmatmul.mubr.bf16.vlgmr.msra.gmra.mrb[4].mxu1 %v606_v48 }
 0x67c   :  { %2441 = vmatpush3.bf16.msra.mxu1 %v3158_v7  ;;  %2456 = vmatprep.mubr.msk.bf16.mxu1 %vm3006_vm0, %v3004_v1 }
 0x67d   :  { %2442 = vmatprep.subr.bf16.mxu1 %v3004_v1 }
 0x680   :  { %2443 = vmatpush3.bf16.msra.mxu1 %v3165_v9 }
 0x681   :  { %2444 = vmatprep.subr.bf16.mxu1 %v3004_v1 }
 0x684   :  { %2445 = vmatpush3.bf16.msra.mxu1 %v3173_v11 }
 0x685   :  { %2446 = vmatprep.subr.bf16.mxu1 %v3004_v1 }
 0x688   :  { %2447 = vmatpush3.bf16.msra.mxu1 %v3183_v13 }
 0x689   :  { %2448 = vmatprep.subr.bf16.mxu1 %v3004_v1 }
 0x68c   :  { %2449 = vmatpush3.bf16.msra.mxu1 %v3190_v15 }
 0x68d   :  { %2450 = vmatprep.subr.bf16.mxu1 %v3004_v1 }
 0x690   :  { %2451 = vmatpush3.bf16.msra.mxu1 %v3194_v17 }
 0x691   :  { %2452 = vmatprep.subr.bf16.mxu1 %v3004_v1 }
 0x694   :  { %2453 = vmatpush3.bf16.msra.mxu1 %v3202_v19 }
 0x695   :  { %2454 = vmatprep.subr.bf16.mxu1 %v3004_v1 }
 0x698   :  { %2455 = vmatpush3.bf16.msra.mxu1 %v3210_v23 }
 0x699   :  { %2480 = vmatprep.subr.bf16.mxu1 %v3004_v1 }
 0x74e   :  { %v641_v50 = vpop.f32.mrb[4].mxu1 }
 0x74f   :  { %v647_v51 = vadd.f32 %v641_v50, %v342_v49  ;;  %v2418_v52 = vpop.f32.mrb[5].mxu1 }
 0x750   :  { %v644_v53 = vpop.f32.mrb[6].mxu1 }
 0x751   :  { %2765 = vtanh.f32 %v647_v51  ;;  %v2419_v54 = vpop.f32.mrb[7].mxu1  ;;  %v2134_v56 = vmul.f32 -1.442695, %v647_v51 }
 0x753   :  { %2767 = vpow2.f32 %v2134_v56 }
 0x75b   :  { %v2766_v55 = vpop.eup %2765 }
 0x75c   :  { %657 = vrot.lane.b32.xlu0 %v2766_v55, %s3005_s19 }
 0x75d   :  { %v2768_v57 = vpop.eup %2767 }
 0x75e   :  { %v651_v58 = vadd.f32 1.0, %v2768_v57 }
 0x760   :  { %2769 = vrcp.f32 %v651_v58 }
 0x76a   :  { %v2770_v59 = vpop.eup %2769 }
 0x76b   :  { %v655_v61 = vmul.f32 %v2770_v59, %v581_v38 }
 0x7ce   :  { %v658_v62 = vpop.permute.xlu0 %657 }
 0x7cf   :  { %v660_v63 = vmul.f32 %v2770_v59, %v658_v62 }
 0x7d1   :  { %662 = vrot.lane.b32.xlu1 %v660_v63, %s3005_s19 }
 0x843   :  { %v663_v3 = vpop.permute.xlu1 %662 }
 0x844   :  { %v665_v4 = vadd.f32 %v663_v3, %v655_v61 }
 0x846   :  { %2771 = vtanh.f32 %v665_v4 }
 0x850   :  { %v2772_v5 = vpop.eup %2771 }
 0x851   :  { %668 = vrot.lane.b32.xlu0 %v2772_v5, %s3005_s19 }
 0x8c3   :  { %v669_v6 = vpop.permute.xlu0 %668 }
 0x8c4   :  { %v671_v8 = vmul.f32 %v2770_v59, %v669_v6 }
 0x8c6   :  { %678 = vrot.lane.b32.xlu0 %v671_v8, %s3007_s4  ;;  %673 = vrot.lane.b32.xlu1 %v671_v8, %s2999_s1 }
 0x8ca   :  { %681 = vrot.lane.b32.xlu1 %v671_v8, %s3005_s19 }
 0x938   :  { %v679_v10 = vpop.permute.xlu0 %678  ;;  %v674_v35 = vpop.permute.xlu1 %673 }
 0x939   :  { %677 = vst.msk [vmem:[#allocation3 + $0x10] sm:$0xff] %vm189_vm1, %v674_v35  ;;  %v684_v21 = vsel %vm189_vm1, %v674_v35, %v679_v10 }
 0x93a   :  { %v685_v22 = vsel %vm198_vm2, %v684_v21, %v671_v8 }
 0x93c   :  { %v682_v25 = vpop.permute.xlu1 %681 }
 0x93d   :  { %v686_v26 = vsel %vm207_vm3, %v685_v22, %v682_v25 }
 0x93e   :  { %v687_v27 = vmul.f32 %v686_v26, %v3204_v20 }
 0x940   :  { %v690_v28 = vpack.c.bf16 %v687_v27, %v687_v27 }
 0x942   :  { %2437 = vmatmul.mubr.bf16.vlgmr.msra.gmra.mrb[12].mxu0 %v690_v28 }
 0x943   :  { %2461 = vmatpush3.bf16.msra.mxu0 %v3158_v7  ;;  %2476 = vmatprep.mubr.msk.bf16.mxu0 %vm3006_vm0, %v3004_v1 }
 0x944   :  { %2462 = vmatprep.subr.bf16.mxu0 %v3004_v1 }
 0x947   :  { %2463 = vmatpush3.bf16.msra.mxu0 %v3165_v9 }
 0x948   :  { %2464 = vmatprep.subr.bf16.mxu0 %v3004_v1 }
 0x94b   :  { %2465 = vmatpush3.bf16.msra.mxu0 %v3173_v11 }
 0x94c   :  { %2466 = vmatprep.subr.bf16.mxu0 %v3004_v1 }
 0x94f   :  { %2467 = vmatpush3.bf16.msra.mxu0 %v3183_v13 }
 0x950   :  { %2468 = vmatprep.subr.bf16.mxu0 %v3004_v1 }
 0x953   :  { %2469 = vmatpush3.bf16.msra.mxu0 %v3190_v15 }
 0x954   :  { %2470 = vmatprep.subr.bf16.mxu0 %v3004_v1 }
 0x957   :  { %2471 = vmatpush3.bf16.msra.mxu0 %v3194_v17 }
 0x958   :  { %2472 = vmatprep.subr.bf16.mxu0 %v3004_v1 }
 0x95b   :  { %2473 = vmatpush3.bf16.msra.mxu0 %v3202_v19 }
 0x95c   :  { %2474 = vmatprep.subr.bf16.mxu0 %v3004_v1 }
 0x95f   :  { %2475 = vmatpush3.bf16.msra.mxu0 %v3210_v23 }
 0x960   :  { %2500 = vmatprep.subr.bf16.mxu0 %v3004_v1 }
 0xa15   :  { %v725_v30 = vpop.f32.mrb[12].mxu0 }
 0xa16   :  { %v731_v31 = vadd.f32 %v725_v30, %v345_v29  ;;  %v2438_v32 = vpop.f32.mrb[13].mxu0 }
 0xa17   :  { %v728_v33 = vpop.f32.mrb[14].mxu0  ;;  %v2877_v32 = vld [vmem:[#allocation12] sm:$0xff]  }
 0xa18   :  { %2773 = vtanh.f32 %v731_v31  ;;  %v2439_v34 = vpop.f32.mrb[15].mxu0  ;;  %v2135_v2 = vmul.f32 -1.442695, %v731_v31 }
 0xa1a   :  { %2775 = vpow2.f32 %v2135_v2 }
 0xa22   :  { %v2774_v36 = vpop.eup %2773 }
 0xa23   :  { %741 = vrot.lane.b32.xlu0 %v2774_v36, %s3005_s19 }
 0xa24   :  { %v2776_v37 = vpop.eup %2775 }
 0xa25   :  { %v735_v38 = vadd.f32 1.0, %v2776_v37 }
 0xa27   :  { %2777 = vrcp.f32 %v735_v38 }
 0xa31   :  { %v2778_v39 = vpop.eup %2777 }
 0xa32   :  { %v739_v0 = vmul.f32 %v2778_v39, %v665_v4 }
 0xa95   :  { %v742_v40 = vpop.permute.xlu0 %741 }
 0xa96   :  { %v744_v41 = vmul.f32 %v2778_v39, %v742_v40 }
 0xa98   :  { %746 = vrot.lane.b32.xlu1 %v744_v41, %s3005_s19 }
 0xb0a   :  { %v747_v42 = vpop.permute.xlu1 %746 }
 0xb0b   :  { %v749_v43 = vadd.f32 %v747_v42, %v739_v0 }
 0xb0d   :  { %2779 = vtanh.f32 %v749_v43 }
 0xb17   :  { %v2780_v24 = vpop.eup %2779 }
 0xb18   :  { %752 = vrot.lane.b32.xlu0 %v2780_v24, %s3005_s19 }
 0xb8a   :  { %v753_v44 = vpop.permute.xlu0 %752 }
 0xb8b   :  { %v755_v45 = vmul.f32 %v2778_v39, %v753_v44 }
 0xb8d   :  { %762 = vrot.lane.b32.xlu0 %v755_v45, %s3007_s4  ;;  %757 = vrot.lane.b32.xlu1 %v755_v45, %s2999_s1 }
 0xb91   :  { %765 = vrot.lane.b32.xlu1 %v755_v45, %s3005_s19 }
 0xbff   :  { %v763_v46 = vpop.permute.xlu0 %762  ;;  %v758_v47 = vpop.permute.xlu1 %757 }
 0xc00   :  { %761 = vst.msk [vmem:[#allocation3 + $0x18] sm:$0xff] %vm189_vm1, %v758_v47  ;;  %v768_v48 = vsel %vm189_vm1, %v758_v47, %v763_v46 }
 0xc01   :  { %v769_v49 = vsel %vm198_vm2, %v768_v48, %v755_v45 }
 0xc03   :  { %v766_v50 = vpop.permute.xlu1 %765 }
 0xc04   :  { %v770_v51 = vsel %vm207_vm3, %v769_v49, %v766_v50  ;;  %v358_v50 = vadd.f32 %v3346_v12, %v3275_v60 }
 0xc05   :  { %v771_v52 = vmul.f32 %v770_v51, %v3204_v20 }
 0xc07   :  { %v774_v53 = vpack.c.bf16 %v771_v52, %v771_v52 }
 0xc09   :  { %2457 = vmatmul.mubr.bf16.vlgmr.msra.gmra.mrb[8].mxu1 %v774_v53 }
 0xc0a   :  { %2481 = vmatpush3.bf16.msra.mxu1 %v3158_v7  ;;  %2496 = vmatprep.mubr.msk.bf16.mxu1 %vm3006_vm0, %v3004_v1  ;;  %v350_v7 = vadd.f32 %v3275_v60, %v3348_v14 }
 0xc0b   :  { %2482 = vmatprep.subr.bf16.mxu1 %v3004_v1 }
 0xc0e   :  { %2483 = vmatpush3.bf16.msra.mxu1 %v3165_v9 }
 0xc0f   :  { %2484 = vmatprep.subr.bf16.mxu1 %v3004_v1 }
 0xc12   :  { %2485 = vmatpush3.bf16.msra.mxu1 %v3173_v11 }
 0xc13   :  { %2486 = vmatprep.subr.bf16.mxu1 %v3004_v1 }
 0xc16   :  { %2487 = vmatpush3.bf16.msra.mxu1 %v3183_v13 }
 0xc17   :  { %2488 = vmatprep.subr.bf16.mxu1 %v3004_v1 }
 0xc1a   :  { %2489 = vmatpush3.bf16.msra.mxu1 %v3190_v15 }
 0xc1b   :  { %2490 = vmatprep.subr.bf16.mxu1 %v3004_v1 }
 0xc1e   :  { %2491 = vmatpush3.bf16.msra.mxu1 %v3194_v17 }
 0xc1f   :  { %2492 = vmatprep.subr.bf16.mxu1 %v3004_v1 }
 0xc22   :  { %2493 = vmatpush3.bf16.msra.mxu1 %v3202_v19 }
 0xc23   :  { %2494 = vmatprep.subr.bf16.mxu1 %v3004_v1 }
 0xc26   :  { %2495 = vmatpush3.bf16.msra.mxu1 %v3210_v23 }
 0xcdc   :  { %v809_v54 = vpop.f32.mrb[8].mxu1 }
 0xcdd   :  { %v815_v55 = vadd.f32 %v809_v54, %v350_v7  ;;  %v2458_v56 = vpop.f32.mrb[9].mxu1 }
 0xcde   :  { %v812_v57 = vpop.f32.mrb[10].mxu1 }
 0xcdf   :  { %2781 = vtanh.f32 %v815_v55  ;;  %v2459_v58 = vpop.f32.mrb[11].mxu1  ;;  %v2136_v62 = vmul.f32 -1.442695, %v815_v55 }
 0xce1   :  { %2783 = vpow2.f32 %v2136_v62 }
 0xce9   :  { %v2782_v59 = vpop.eup %2781 }
 0xcea   :  { %825 = vrot.lane.b32.xlu0 %v2782_v59, %s3005_s19 }
 0xceb   :  { %v2784_v63 = vpop.eup %2783 }
 0xcec   :  { %v819_v61 = vadd.f32 1.0, %v2784_v63 }
 0xcee   :  { %2785 = vrcp.f32 %v819_v61 }
 0xcf8   :  { %v2786_v3 = vpop.eup %2785 }
 0xcf9   :  { %v823_v14 = vmul.f32 %v2786_v3, %v749_v43 }
 0xd5c   :  { %v826_v4 = vpop.permute.xlu0 %825 }
 0xd5d   :  { %v828_v5 = vmul.f32 %v2786_v3, %v826_v4 }
 0xd5f   :  { %830 = vrot.lane.b32.xlu1 %v828_v5, %s3005_s19 }
 0xdd1   :  { %v831_v6 = vpop.permute.xlu1 %830 }
 0xdd2   :  { %v833_v8 = vadd.f32 %v831_v6, %v823_v14 }
 0xdd4   :  { %2787 = vtanh.f32 %v833_v8 }
 0xdde   :  { %v2788_v10 = vpop.eup %2787 }
 0xddf   :  { %836 = vrot.lane.b32.xlu0 %v2788_v10, %s3005_s19 }
 0xe51   :  { %v837_v35 = vpop.permute.xlu0 %836 }
 0xe52   :  { %v839_v21 = vmul.f32 %v2786_v3, %v837_v35 }
 0xe54   :  { %846 = vrot.lane.b32.xlu0 %v839_v21, %s3007_s4  ;;  %841 = vrot.lane.b32.xlu1 %v839_v21, %s2999_s1 }
 0xe58   :  { %849 = vrot.lane.b32.xlu1 %v839_v21, %s3005_s19 }
 0xec6   :  { %v847_v22 = vpop.permute.xlu0 %846  ;;  %v842_v25 = vpop.permute.xlu1 %841 }
 0xec7   :  { %845 = vst.msk [vmem:[#allocation3 + $0x20] sm:$0xff] %vm189_vm1, %v842_v25  ;;  %v852_v26 = vsel %vm189_vm1, %v842_v25, %v847_v22  ;;  %v2878_v22 = vld [vmem:[#allocation9] sm:$0xff] }
 0xec8   :  { %v853_v27 = vsel %vm198_vm2, %v852_v26, %v839_v21 }
 0xeca   :  { %v850_v28 = vpop.permute.xlu1 %849 }
 0xecb   :  { %v854_v29 = vsel %vm207_vm3, %v853_v27, %v850_v28  ;;  %v361_v27 = vadd.f32 %v3350_v16, %v3275_v60  ;;  %v3515_v16 = vld [vmem:[#allocation3 + $0x10] sm:$0xff] }
 0xecc   :  { %v855_v30 = vmul.f32 %v854_v29, %v3204_v20 }
 0xece   :  { %v858_v31 = vpack.c.bf16 %v855_v30, %v855_v30 }
 0xed0   :  { %2477 = vmatmul.mubr.bf16.vlgmr.msra.gmra.mrb[16].mxu0 %v858_v31 }
 0xed1   :  { %2501 = vmatpush3.bf16.msra.mxu0 %v2877_v32  ;;  %2516 = vmatprep.mubr.msk.bf16.mxu0 %vm3006_vm0, %v3004_v1 }
 0xed2   :  { %2502 = vmatprep.subr.bf16.mxu0 %v3004_v1 }
 0xed5   :  { %2503 = vmatpush3.bf16.msra.mxu0 %v3165_v9  ;;  %v353_v9 = vadd.f32 %v3275_v60, %v3352_v18  ;;  %v3511_v60 = vld [vmem:[#allocation3] sm:$0xff] }
 0xed6   :  { %2504 = vmatprep.subr.bf16.mxu0 %v3004_v1 }
 0xed9   :  { %2505 = vmatpush3.bf16.msra.mxu0 %v3173_v11 }
 0xeda   :  { %2506 = vmatprep.subr.bf16.mxu0 %v3004_v1 }
 0xedd   :  { %2507 = vmatpush3.bf16.msra.mxu0 %v3183_v13 }
 0xede   :  { %2508 = vmatprep.subr.bf16.mxu0 %v3004_v1 }
 0xee1   :  { %2509 = vmatpush3.bf16.msra.mxu0 %v3190_v15 }
 0xee2   :  { %2510 = vmatprep.subr.bf16.mxu0 %v3004_v1 }
 0xee5   :  { %2511 = vmatpush3.bf16.msra.mxu0 %v3194_v17 }
 0xee6   :  { %2512 = vmatprep.subr.bf16.mxu0 %v3004_v1 }
 0xee9   :  { %2513 = vmatpush3.bf16.msra.mxu0 %v3202_v19 }
 0xeea   :  { %2514 = vmatprep.subr.bf16.mxu0 %v3004_v1 }
 0xeed   :  { %2515 = vmatpush3.bf16.msra.mxu0 %v3210_v23 }
 0xeee   :  { %2544 = vmatprep.subr.bf16.mxu0 %v3004_v1 }
 0xfa3   :  { %v893_v11 = vpop.f32.mrb[16].mxu0 }
 0xfa4   :  { %v899_v13 = vadd.f32 %v893_v11, %v353_v9  ;;  %v2478_v15 = vpop.f32.mrb[17].mxu0 }
 0xfa5   :  { %v896_v33 = vpop.f32.mrb[18].mxu0 }
 0xfa6   :  { %2789 = vtanh.f32 %v899_v13  ;;  %v2479_v34 = vpop.f32.mrb[19].mxu0  ;;  %v2137_v36 = vmul.f32 -1.442695, %v899_v13 }
 0xfa8   :  { %2791 = vpow2.f32 %v2137_v36  ;;  %v2733_v36 = vld [vmem:[#allocation10 + $0x40] sm:$0xff]  }
 0xfa9   :  { %2520 = vmatprep.subr.bf16.mxu1 %v2733_v36 }
 0xfb0   :  { %v2790_v17 = vpop.eup %2789 }
 0xfb1   :  { %909 = vrot.lane.b32.xlu0 %v2790_v17, %s3005_s19 }
 0xfb2   :  { %v2792_v19 = vpop.eup %2791 }
 0xfb3   :  { %v903_v2 = vadd.f32 1.0, %v2792_v19 }
 0xfb5   :  { %2793 = vrcp.f32 %v903_v2 }
 0xfbf   :  { %v2794_v23 = vpop.eup %2793 }
 0xfc0   :  { %v907_v18 = vmul.f32 %v2794_v23, %v833_v8 }
0x1023   :  { %v910_v37 = vpop.permute.xlu0 %909 }
0x1024   :  { %v912_v38 = vmul.f32 %v2794_v23, %v910_v37 }
0x1026   :  { %914 = vrot.lane.b32.xlu1 %v912_v38, %s3005_s19  ;;  %v2735_v38 = vld [vmem:[#allocation10 + $0x50] sm:$0xff]  }
0x1098   :  { %v915_v39 = vpop.permute.xlu1 %914 }
0x1099   :  { %v917_v40 = vadd.f32 %v915_v39, %v907_v18  ;;  %v2736_v18 = vld [vmem:[#allocation10 + $0x58] sm:$0xff]   ;;  %v2737_v39 = vld [vmem:[#allocation10 + $0x60] sm:$0xff]  }
0x109b   :  { %2795 = vtanh.f32 %v917_v40 }
0x10a5   :  { %v2796_v41 = vpop.eup %2795 }
0x10a6   :  { %920 = vrot.lane.b32.xlu0 %v2796_v41, %s3005_s19  ;;  %v2738_v41 = vld [vmem:[#allocation10 + $0x68] sm:$0xff]  }
0x1118   :  { %v921_v0 = vpop.permute.xlu0 %920 }
0x1119   :  { %v923_v42 = vmul.f32 %v2794_v23, %v921_v0  ;;  %v2734_v23 = vld [vmem:[#allocation10 + $0x48] sm:$0xff]  }
0x111a   :  { %v1099_v0 = vld [vmem:[#allocation3 + $0x8] sm:$0xff] }
0x111b   :  { %930 = vrot.lane.b32.xlu0 %v923_v42, %s3007_s4  ;;  %925 = vrot.lane.b32.xlu1 %v923_v42, %s2999_s1 }
0x111f   :  { %933 = vrot.lane.b32.xlu1 %v923_v42, %s3005_s19 }
0x118d   :  { %v931_v43 = vpop.permute.xlu0 %930  ;;  %v926_v24 = vpop.permute.xlu1 %925 }
0x118e   :  { %929 = vst.msk [vmem:[#allocation3 + $0x28] sm:$0xff] %vm189_vm1, %v926_v24  ;;  %v936_v44 = vsel %vm189_vm1, %v926_v24, %v931_v43  ;;  %v3533_v43 = vld [vmem:[#allocation3 + $0x18] sm:$0xff] }
0x118f   :  { %v937_v45 = vsel %vm198_vm2, %v936_v44, %v923_v42  ;;  %v2739_v42 = vld [vmem:[#allocation10 + $0x70] sm:$0xff]   ;;  %v2740_v24 = vld [vmem:[#allocation10 + $0x78] sm:$0xff]   ;;  %v3541_v44 = vld [vmem:[#allocation12 + $0x40] sm:$0xff]  }
0x1191   :  { %v934_v46 = vpop.permute.xlu1 %933 }
0x1192   :  { %v938_v47 = vsel %vm207_vm3, %v937_v45, %v934_v46  ;;  %v3544_v45 = vld [vmem:[#allocation12 + $0x48] sm:$0xff]   ;;  %v3549_v46 = vld [vmem:[#allocation12 + $0x50] sm:$0xff]  }
0x1193   :  { %v939_v48 = vmul.f32 %v938_v47, %v3204_v20  ;;  %v3555_v47 = vld [vmem:[#allocation12 + $0x58] sm:$0xff]  }
0x1195   :  { %v942_v49 = vpack.c.bf16 %v939_v48, %v939_v48  ;;  %v3559_v48 = vld [vmem:[#allocation12 + $0x60] sm:$0xff]  }
0x1197   :  { %2497 = vmatmul.mubr.bf16.vlgmr.msra.gmra.mrb[12].mxu1 %v942_v49  ;;  %v3563_v49 = vld [vmem:[#allocation12 + $0x68] sm:$0xff]  }
0x1198   :  { %2521 = vmatpush3.bf16.msra.mxu1 %v2733_v36 }
0x1199   :  { %2522 = vmatprep.subr.bf16.mxu1 %v2734_v23 }
0x119c   :  { %2523 = vmatpush3.bf16.msra.mxu1 %v2734_v23 }
0x119d   :  { %2524 = vmatprep.subr.bf16.mxu1 %v2735_v38 }
0x11a0   :  { %2525 = vmatpush3.bf16.msra.mxu1 %v2735_v38 }
0x11a1   :  { %2526 = vmatprep.subr.bf16.mxu1 %v2736_v18 }
0x11a4   :  { %2527 = vmatpush3.bf16.msra.mxu1 %v2736_v18  ;;  %v3651_v18 = vld [vmem:[%s3886_s5 + $0x1] ss:$0 sm:$0xff] }
0x11a5   :  { %2528 = vmatprep.subr.bf16.mxu1 %v2737_v39 }
0x11a8   :  { %2529 = vmatpush3.bf16.msra.mxu1 %v2737_v39 }
0x11a9   :  { %2530 = vmatprep.subr.bf16.mxu1 %v2738_v41 }
0x11ac   :  { %2531 = vmatpush3.bf16.msra.mxu1 %v2738_v41 }
0x11ad   :  { %2532 = vmatprep.subr.bf16.mxu1 %v2739_v42 }
0x11b0   :  { %2533 = vmatpush3.bf16.msra.mxu1 %v2739_v42 }
0x11b1   :  { %2534 = vmatprep.subr.bf16.mxu1 %v2740_v24 }
0x11b4   :  { %2535 = vmatpush3.bf16.msra.mxu1 %v2740_v24 }
0x11b5   :  { %2564 = vmatprep.subr.bf16.mxu1 %v3004_v1 }
0x126a   :  { %v977_v51 = vpop.f32.mrb[12].mxu1 }
0x126b   :  { %v983_v52 = vadd.f32 %v977_v51, %v358_v50  ;;  %v2498_v53 = vpop.f32.mrb[13].mxu1  ;;  %v3568_v51 = vld [vmem:[#allocation12 + $0x70] sm:$0xff]  }
0x126c   :  { %v980_v7 = vpop.f32.mrb[14].mxu1 }
0x126d   :  { %2797 = vtanh.f32 %v983_v52  ;;  %v2499_v54 = vpop.f32.mrb[15].mxu1  ;;  %v2138_v56 = vmul.f32 -1.442695, %v983_v52  ;;  %v3572_v52 = vld [vmem:[#allocation12 + $0x78] sm:$0xff]  }
0x126f   :  { %2799 = vpow2.f32 %v2138_v56 }
0x1277   :  { %v2798_v55 = vpop.eup %2797 }
0x1278   :  { %993 = vrot.lane.b32.xlu0 %v2798_v55, %s3005_s19 }
0x1279   :  { %v2800_v57 = vpop.eup %2799 }
0x127a   :  { %v987_v58 = vadd.f32 1.0, %v2800_v57 }
0x127c   :  { %2801 = vrcp.f32 %v987_v58 }
0x1286   :  { %v2802_v20 = vpop.eup %2801 }
0x1287   :  { %v991_v12 = vmul.f32 %v2802_v20, %v917_v40 }
0x12ea   :  { %v994_v59 = vpop.permute.xlu0 %993 }
0x12eb   :  { %v996_v62 = vmul.f32 %v2802_v20, %v994_v59 }
0x12ed   :  { %998 = vrot.lane.b32.xlu1 %v996_v62, %s3005_s19 }
0x135f   :  { %v999_v63 = vpop.permute.xlu1 %998 }
0x1360   :  { %v1001_v61 = vadd.f32 %v999_v63, %v991_v12 }
0x1362   :  { %2803 = vtanh.f32 %v1001_v61 }
0x136c   :  { %v2804_v3 = vpop.eup %2803 }
0x136d   :  { %1004 = vrot.lane.b32.xlu0 %v2804_v3, %s3005_s19 }
0x13df   :  { %v1005_v4 = vpop.permute.xlu0 %1004 }
0x13e0   :  { %v1007_v5 = vmul.f32 %v2802_v20, %v1005_v4 }
0x13e2   :  { %1014 = vrot.lane.b32.xlu0 %v1007_v5, %s3007_s4  ;;  %1009 = vrot.lane.b32.xlu1 %v1007_v5, %s2999_s1 }
0x13e6   :  { %1017 = vrot.lane.b32.xlu1 %v1007_v5, %s3005_s19 }
0x1454   :  { %v1015_v14 = vpop.permute.xlu0 %1014  ;;  %v1010_v6 = vpop.permute.xlu1 %1009 }
0x1455   :  { %1013 = vst.msk [vmem:[#allocation3 + $0x30] sm:$0xff] %vm189_vm1, %v1010_v6  ;;  %v1020_v8 = vsel %vm189_vm1, %v1010_v6, %v1015_v14 }
0x1456   :  { %v1021_v10 = vsel %vm198_vm2, %v1020_v8, %v1007_v5 }
0x1458   :  { %v1018_v35 = vpop.permute.xlu1 %1017 }
0x1459   :  { %v1022_v21 = vsel %vm207_vm3, %v1021_v10, %v1018_v35 }
0x145a   :  { %v1023_v25 = vmul.f32 %v2878_v22, %v1022_v21 }
0x145c   :  { %v1026_v26 = vpack.c.bf16 %v1023_v25, %v1023_v25 }
0x145e   :  { %2517 = vmatmul.mubr.bf16.vlgmr.msra.gmra.mrb[20].mxu0 %v1026_v26 }
0x145f   :  { %2560 = vmatprep.mubr.msk.bf16.mxu0 %vm3006_vm0, %v3004_v1  ;;  %2545 = vmatpush3.bf16.msra.mxu0 %v3541_v44 }
0x1460   :  { %2546 = vmatprep.subr.bf16.mxu0 %v3004_v1 }
0x1463   :  { %2547 = vmatpush3.bf16.msra.mxu0 %v3544_v45 }
0x1464   :  { %2548 = vmatprep.subr.bf16.mxu0 %v3004_v1 }
0x1467   :  { %2549 = vmatpush3.bf16.msra.mxu0 %v3549_v46 }
0x1468   :  { %2550 = vmatprep.subr.bf16.mxu0 %v3004_v1 }
0x146b   :  { %2551 = vmatpush3.bf16.msra.mxu0 %v3555_v47 }
0x146c   :  { %2552 = vmatprep.subr.bf16.mxu0 %v3004_v1 }
0x146f   :  { %2553 = vmatpush3.bf16.msra.mxu0 %v3559_v48 }
0x1470   :  { %2554 = vmatprep.subr.bf16.mxu0 %v3004_v1 }
0x1473   :  { %2555 = vmatpush3.bf16.msra.mxu0 %v3563_v49 }
0x1474   :  { %2556 = vmatprep.subr.bf16.mxu0 %v3004_v1 }
0x1477   :  { %2557 = vmatpush3.bf16.msra.mxu0 %v3568_v51 }
0x1478   :  { %2558 = vmatprep.subr.bf16.mxu0 %v3004_v1 }
0x147b   :  { %2559 = vmatpush3.bf16.msra.mxu0 %v3572_v52 }
0x147c   :  { %2584 = vmatprep.subr.bf16.mxu0 %v3004_v1 }
0x1531   :  { %v1061_v28 = vpop.f32.mrb[20].mxu0 }
0x1532   :  { %v1067_v29 = vadd.f32 %v1061_v28, %v361_v27  ;;  %v2518_v30 = vpop.f32.mrb[21].mxu0 }
0x1533   :  { %v1064_v31 = vpop.f32.mrb[22].mxu0 }
0x1534   :  { %2805 = vtanh.f32 %v1067_v29  ;;  %v2519_v32 = vpop.f32.mrb[23].mxu0  ;;  %v2139_v11 = vmul.f32 -1.442695, %v1067_v29 }
0x1536   :  { %2807 = vpow2.f32 %v2139_v11 }
0x153e   :  { %v2806_v9 = vpop.eup %2805 }
0x153f   :  { %1077 = vrot.lane.b32.xlu0 %v2806_v9, %s3005_s19 }
0x1540   :  { %v2808_v13 = vpop.eup %2807 }
0x1541   :  { %v1071_v15 = vadd.f32 1.0, %v2808_v13 }
0x1543   :  { %2809 = vrcp.f32 %v1071_v15 }
0x154d   :  { %v3507_v33 = vpop.eup %2809 }
0x154e   :  { %v1075_v19 = vmul.f32 %v3507_v33, %v1001_v61  ;;  %v3583_v61 = vld [vmem:[#allocation7 + $0x8] sm:$0xff] }
0x15b1   :  { %v1078_v34 = vpop.permute.xlu0 %1077 }
0x15b2   :  { %v1080_v17 = vmul.f32 %v3507_v33, %v1078_v34 }
0x15b4   :  { %1082 = vrot.lane.b32.xlu1 %v1080_v17, %s3005_s19 }
0x15b8   :  { %1116 = vrot.lane.b32.xlu1 %v3511_v60, %s3005_s19 }
0x15bc   :  { %1120 = vrot.lane.b32.xlu1 %v3515_v16, %s3005_s19 }
0x15c0   :  { %1140 = vrot.lane.b32.xlu1 %v3511_v60, %s2999_s1 }
0x15c4   :  { %1144 = vrot.lane.b32.xlu1 %v3515_v16, %s2999_s1 }
0x15c8   :  { %1164 = vrot.lane.b32.xlu1 %v3511_v60, %s3007_s4 }
0x15cc   :  { %1168 = vrot.lane.b32.xlu1 %v3515_v16, %s3007_s4 }
0x1626   :  { %v1083_v2 = vpop.permute.xlu1 %1082 }
0x1627   :  { %v3528_v37 = vadd.f32 %v1083_v2, %v1075_v19 }
0x1629   :  { %2811 = vtanh.f32 %v3528_v37 }
0x162a   :  { %v1117_v50 = vpop.permute.xlu1 %1116 }
0x162b   :  { %v1188_v12 = vsel %vm189_vm1, %v3511_v60, %v1117_v50 }
0x162e   :  { %v1121_v53 = vpop.permute.xlu1 %1120 }
0x162f   :  { %v1190_v8 = vsel %vm189_vm1, %v3515_v16, %v1121_v53 }
0x1632   :  { %v1141_v55 = vpop.permute.xlu1 %1140 }
0x1633   :  { %v2812_v40 = vpop.eup %2811  ;;  %v1196_v63 = vsel %vm198_vm2, %v1188_v12, %v1141_v55 }
0x1634   :  { %1088 = vrot.lane.b32.xlu0 %v2812_v40, %s3005_s19 }
0x1636   :  { %v1145_v57 = vpop.permute.xlu1 %1144 }
0x1637   :  { %v1198_v35 = vsel %vm198_vm2, %v1190_v8, %v1145_v57  ;;  %v1102_v57 = vld [vmem:[#allocation3 + $0x20] sm:$0xff] }
0x1638   :  { %1118 = vrot.lane.b32.xlu0 %v1099_v0, %s3005_s19 }
0x163a   :  { %v1165_v59 = vpop.permute.xlu1 %1164 }
0x163b   :  { %v1204_v3 = vsel %vm207_vm3, %v1196_v63, %v1165_v59  ;;  %v1103_v63 = vld [vmem:[#allocation3 + $0x28] sm:$0xff] }
0x163c   :  { %1122 = vrot.lane.b32.xlu0 %v3533_v43, %s3005_s19  ;;  %v1212_v21 = vmul.f32 %v1204_v3, %v3583_v61 }
0x163e   :  { %v1169_v5 = vpop.permute.xlu1 %1168 }
0x163f   :  { %v1206_v25 = vsel %vm207_vm3, %v1198_v35, %v1169_v5 }
0x1640   :  { %1142 = vrot.lane.b32.xlu0 %v1099_v0, %s2999_s1  ;;  %v1214_v31 = vmul.f32 %v1206_v25, %v3583_v61 }
0x1644   :  { %1146 = vrot.lane.b32.xlu0 %v3533_v43, %s2999_s1 }
0x1648   :  { %1166 = vrot.lane.b32.xlu0 %v1099_v0, %s3007_s4 }
0x164c   :  { %1170 = vrot.lane.b32.xlu0 %v3533_v43, %s3007_s4 }
0x16a6   :  { %v1089_v7 = vpop.permute.xlu0 %1088 }
0x16a7   :  { %v1091_v54 = vmul.f32 %v3507_v33, %v1089_v7  ;;  %v3619_v33 = vld [vmem:[#allocation9 + $0x8] sm:$0xff] }
0x16a9   :  { %1389 = vrot.lane.b32.xlu0 %v1091_v54, %s3007_s4  ;;  %1093 = vrot.lane.b32.xlu1 %v1091_v54, %s2999_s1 }
0x16aa   :  { %v1119_v56 = vpop.permute.xlu0 %1118 }
0x16ab   :  { %v1189_v4 = vsel %vm189_vm1, %v1099_v0, %v1119_v56 }
0x16ad   :  { %1392 = vrot.lane.b32.xlu1 %v1091_v54, %s3005_s19 }
0x16ae   :  { %v1123_v58 = vpop.permute.xlu0 %1122 }
0x16af   :  { %v1191_v26 = vsel %vm189_vm1, %v3533_v43, %v1123_v58  ;;  %v1104_v58 = vld [vmem:[#allocation3 + $0x30] sm:$0xff] }
0x16b2   :  { %v1143_v20 = vpop.permute.xlu0 %1142 }
0x16b3   :  { %v1197_v14 = vsel %vm198_vm2, %v1189_v4, %v1143_v20 }
0x16b6   :  { %v1147_v62 = vpop.permute.xlu0 %1146 }
0x16b7   :  { %v1199_v27 = vsel %vm198_vm2, %v1191_v26, %v1147_v62 }
0x16ba   :  { %v1167_v6 = vpop.permute.xlu0 %1166 }
0x16bb   :  { %v1205_v10 = vsel %vm207_vm3, %v1197_v14, %v1167_v6 }
0x16bc   :  { %v1213_v22 = vmul.f32 %v1205_v10, %v3583_v61 }
0x16be   :  { %v1171_v28 = vpop.permute.xlu0 %1170  ;;  %v1220_v29 = vpack.c.bf16 %v1213_v22, %v1212_v21 }
0x16bf   :  { %v1207_v30 = vsel %vm207_vm3, %v1199_v27, %v1171_v28 }
0x16c0   :  { %v1215_v32 = vmul.f32 %v1207_v30, %v3583_v61  ;;  %2536 = vmatprep.mubr.bf16.mxu1 %v1220_v29 }
0x16c2   :  { %v1221_v9 = vpack.c.bf16 %v1215_v32, %v1214_v31 }
0x16c4   :  { %2537 = vmatmul.mubr.bf16.vlgmr.msra.gmra.mrb[16].mxu1 %v1221_v9 }
0x16c5   :  { %2565 = vmatpush3.bf16.msra.mxu1 %v3541_v44 }
0x16c6   :  { %2566 = vmatprep.subr.bf16.mxu1 %v3004_v1 }
0x16c9   :  { %2567 = vmatpush3.bf16.msra.mxu1 %v3544_v45 }
0x16ca   :  { %2568 = vmatprep.subr.bf16.mxu1 %v3004_v1 }
0x16cd   :  { %2569 = vmatpush3.bf16.msra.mxu1 %v3549_v46 }
0x16ce   :  { %2570 = vmatprep.subr.bf16.mxu1 %v3004_v1 }
0x16d1   :  { %2571 = vmatpush3.bf16.msra.mxu1 %v3555_v47 }
0x16d2   :  { %2572 = vmatprep.subr.bf16.mxu1 %v3004_v1 }
0x16d5   :  { %2573 = vmatpush3.bf16.msra.mxu1 %v3559_v48 }
0x16d6   :  { %2574 = vmatprep.subr.bf16.mxu1 %v3004_v1 }
0x16d9   :  { %2575 = vmatpush3.bf16.msra.mxu1 %v3563_v49 }
0x16da   :  { %2576 = vmatprep.subr.bf16.mxu1 %v3004_v1 }
0x16dd   :  { %2577 = vmatpush3.bf16.msra.mxu1 %v3568_v51 }
0x16de   :  { %2578 = vmatprep.subr.bf16.mxu1 %v3004_v1 }
0x16e1   :  { %2579 = vmatpush3.bf16.msra.mxu1 %v3572_v52 }
0x16e2   :  { %2604 = vmatprep.subr.bf16.mxu1 %v3004_v1 }
0x171b   :  { %v1094_v11 = vpop.permute.xlu1 %1093  ;;  %v1390_v13 = vpop.permute.xlu0 %1389 }
0x171c   :  { %1097 = vst.msk [vmem:[#allocation3 + $0x38] sm:$0xff] %vm189_vm1, %v1094_v11  ;;  %v1395_v15 = vsel %vm189_vm1, %v1094_v11, %v1390_v13 }
0x171d   :  { %v1396_v17 = vsel %vm198_vm2, %v1395_v15, %v1091_v54 }
0x171f   :  { %v1393_v34 = vpop.permute.xlu1 %1392 }
0x1720   :  { %v1397_v60 = vsel %vm207_vm3, %v1396_v17, %v1393_v34 }
0x1721   :  { %v1398_v16 = vmul.f32 %v1397_v60, %v3619_v33 }
0x1723   :  { %v1400_v36 = vpack.c.bf16 %v1398_v16, %v1398_v16  ;;  %v1105_v3 = vld [vmem:[#allocation3 + $0x38] sm:$0xff] }
0x1725   :  { %2561 = vmatmul.mubr.bf16.vlgmr.msra.gmra.mrb[24].mxu0 %v1400_v36 }
0x1726   :  { %2585 = vmatpush3.bf16.msra.mxu0 %v3541_v44  ;;  %2600 = vmatprep.mubr.msk.bf16.mxu0 %vm3006_vm0, %v3004_v1 }
0x1727   :  { %2586 = vmatprep.subr.bf16.mxu0 %v3004_v1 }
0x172a   :  { %2587 = vmatpush3.bf16.msra.mxu0 %v3544_v45 }
0x172b   :  { %2588 = vmatprep.subr.bf16.mxu0 %v3004_v1 }
0x172e   :  { %2589 = vmatpush3.bf16.msra.mxu0 %v3549_v46 }
0x172f   :  { %2590 = vmatprep.subr.bf16.mxu0 %v3004_v1 }
0x1732   :  { %2591 = vmatpush3.bf16.msra.mxu0 %v3555_v47 }
0x1733   :  { %2592 = vmatprep.subr.bf16.mxu0 %v3004_v1 }
0x1736   :  { %2593 = vmatpush3.bf16.msra.mxu0 %v3559_v48 }
0x1737   :  { %2594 = vmatprep.subr.bf16.mxu0 %v3004_v1 }
0x173a   :  { %2595 = vmatpush3.bf16.msra.mxu0 %v3563_v49 }
0x173b   :  { %2596 = vmatprep.subr.bf16.mxu0 %v3004_v1 }
0x173e   :  { %2597 = vmatpush3.bf16.msra.mxu0 %v3568_v51 }
0x173f   :  { %2598 = vmatprep.subr.bf16.mxu0 %v3004_v1 }
0x1742   :  { %2599 = vmatpush3.bf16.msra.mxu0 %v3572_v52 }
0x1743   :  { %2624 = vmatprep.subr.bf16.mxu0 %v3004_v1 }
0x1797   :  { %v3642_v19 = vpop.f32.mrb[16].mxu1 }
0x1798   :  { %v1331_v2 = vpop.f32.mrb[17].mxu1 }
0x1799   :  { %v3644_v23 = vpop.f32.mrb[18].mxu1  ;;  %v1332_v39 = vadd.f32 %v3651_v18, %v1331_v2 }
0x179a   :  { %v3646_v38 = vpop.f32.mrb[19].mxu1 }
0x17f8   :  { %v1483_v40 = vpop.f32.mrb[24].mxu0 }
0x17f9   :  { %v1489_v41 = vadd.f32 %v1483_v40, %v1332_v39  ;;  %v2562_v0 = vpop.f32.mrb[25].mxu0 }
0x17fa   :  { %v1486_v42 = vpop.f32.mrb[26].mxu0 }
0x17fb   :  { %2813 = vtanh.f32 %v1489_v41  ;;  %v2563_v43 = vpop.f32.mrb[27].mxu0  ;;  %v2158_v50 = vmul.f32 -1.442695, %v1489_v41 }
0x17fd   :  { %2815 = vpow2.f32 %v2158_v50 }
0x1805   :  { %v2814_v24 = vpop.eup %2813 }
0x1806   :  { %1499 = vrot.lane.b32.xlu0 %v2814_v24, %s3005_s19 }
0x1807   :  { %v2816_v53 = vpop.eup %2815 }
0x1808   :  { %v1493_v7 = vadd.f32 1.0, %v2816_v53 }
0x180a   :  { %2817 = vrcp.f32 %v1493_v7 }
0x1814   :  { %v2818_v54 = vpop.eup %2817 }
0x1815   :  { %v1497_v20 = vmul.f32 %v2818_v54, %v3528_v37 }
0x1878   :  { %v1500_v55 = vpop.permute.xlu0 %1499 }
0x1879   :  { %v1502_v56 = vmul.f32 %v2818_v54, %v1500_v55 }
0x187b   :  { %1504 = vrot.lane.b32.xlu1 %v1502_v56, %s3005_s19 }
0x187f   :  { %1124 = vrot.lane.b32.xlu1 %v1102_v57, %s3005_s19 }
0x1883   :  { %1128 = vrot.lane.b32.xlu1 %v1104_v58, %s3005_s19 }
0x1887   :  { %1148 = vrot.lane.b32.xlu1 %v1102_v57, %s2999_s1 }
0x188b   :  { %1152 = vrot.lane.b32.xlu1 %v1104_v58, %s2999_s1 }
0x188f   :  { %1172 = vrot.lane.b32.xlu1 %v1102_v57, %s3007_s4 }
0x1893   :  { %1176 = vrot.lane.b32.xlu1 %v1104_v58, %s3007_s4 }
0x18ed   :  { %v1505_v59 = vpop.permute.xlu1 %1504 }
0x18ee   :  { %v3663_v62 = vadd.f32 %v1505_v59, %v1497_v20  ;;  %v1335_v20 = vadd.f32 %v3651_v18, %v3646_v38 }
0x18f0   :  { %2819 = vtanh.f32 %v3663_v62 }
0x18f1   :  { %v1125_v37 = vpop.permute.xlu1 %1124 }
0x18f2   :  { %v1192_v26 = vsel %vm189_vm1, %v1102_v57, %v1125_v37 }
0x18f5   :  { %v1129_v4 = vpop.permute.xlu1 %1128 }
0x18f6   :  { %v1194_v9 = vsel %vm189_vm1, %v1104_v58, %v1129_v4 }
0x18f9   :  { %v1149_v6 = vpop.permute.xlu1 %1148 }
0x18fa   :  { %v2820_v12 = vpop.eup %2819  ;;  %v1200_v27 = vsel %vm198_vm2, %v1192_v26, %v1149_v6 }
0x18fb   :  { %1510 = vrot.lane.b32.xlu0 %v2820_v12, %s3005_s19 }
0x18fd   :  { %v1153_v10 = vpop.permute.xlu1 %1152 }
0x18fe   :  { %v1202_v13 = vsel %vm198_vm2, %v1194_v9, %v1153_v10 }
0x18ff   :  { %1126 = vrot.lane.b32.xlu0 %v1103_v63, %s3005_s19 }
0x1901   :  { %v1173_v22 = vpop.permute.xlu1 %1172 }
0x1902   :  { %v1208_v28 = vsel %vm207_vm3, %v1200_v27, %v1173_v22 }
0x1903   :  { %1130 = vrot.lane.b32.xlu0 %v1105_v3, %s3005_s19  ;;  %v1216_v15 = vmul.f32 %v1208_v28, %v3583_v61 }
0x1905   :  { %v1177_v30 = vpop.permute.xlu1 %1176 }
0x1906   :  { %v1210_v17 = vsel %vm207_vm3, %v1202_v13, %v1177_v30  ;;  %v1340_v13 = vadd.f32 %v3642_v19, %v3651_v18 }
0x1907   :  { %1150 = vrot.lane.b32.xlu0 %v1103_v63, %s2999_s1  ;;  %v1218_v40 = vmul.f32 %v1210_v17, %v3583_v61 }
0x190b   :  { %1154 = vrot.lane.b32.xlu0 %v1105_v3, %s2999_s1 }
0x190f   :  { %1174 = vrot.lane.b32.xlu0 %v1103_v63, %s3007_s4 }
0x1913   :  { %1178 = vrot.lane.b32.xlu0 %v1105_v3, %s3007_s4 }
0x196d   :  { %v1511_v5 = vpop.permute.xlu0 %1510 }
0x196e   :  { %v1513_v14 = vmul.f32 %v2818_v54, %v1511_v5 }
0x1970   :  { %1518 = vrot.lane.b32.xlu0 %v1513_v14, %s3007_s4  ;;  %1515 = vrot.lane.b32.xlu1 %v1513_v14, %s2999_s1 }
0x1971   :  { %v1127_v8 = vpop.permute.xlu0 %1126 }
0x1972   :  { %v1193_v29 = vsel %vm189_vm1, %v1103_v63, %v1127_v8 }
0x1974   :  { %1521 = vrot.lane.b32.xlu1 %v1513_v14, %s3005_s19 }
0x1975   :  { %v1131_v35 = vpop.permute.xlu0 %1130 }
0x1976   :  { %v1195_v60 = vsel %vm189_vm1, %v1105_v3, %v1131_v35 }
0x1979   :  { %v1151_v21 = vpop.permute.xlu0 %1150 }
0x197a   :  { %v1201_v31 = vsel %vm198_vm2, %v1193_v29, %v1151_v21 }
0x197d   :  { %v1155_v25 = vpop.permute.xlu0 %1154 }
0x197e   :  { %v1203_v16 = vsel %vm198_vm2, %v1195_v60, %v1155_v25 }
0x1981   :  { %v1175_v32 = vpop.permute.xlu0 %1174 }
0x1982   :  { %v1209_v11 = vsel %vm207_vm3, %v1201_v31, %v1175_v32 }
0x1983   :  { %v1217_v34 = vmul.f32 %v1209_v11, %v3583_v61 }
0x1985   :  { %v1179_v36 = vpop.permute.xlu0 %1178  ;;  %v1222_v2 = vpack.c.bf16 %v1217_v34, %v1216_v15 }
0x1986   :  { %v1211_v39 = vsel %vm207_vm3, %v1203_v16, %v1179_v36 }
0x1987   :  { %v1219_v41 = vmul.f32 %v1211_v39, %v3583_v61  ;;  %2540 = vmatprep.mubr.bf16.mxu1 %v1222_v2 }
0x1989   :  { %v1223_v0 = vpack.c.bf16 %v1219_v41, %v1218_v40 }
0x198b   :  { %2541 = vmatmul.mubr.bf16.gmra.mrb[20].mxu1 %v1223_v0 }
0x198c   :  { %2580 = vmatprep.mubr.msk.bf16.mxu1 %vm3006_vm0, %v3004_v1 }
0x19e2   :  { %v1516_v42 = vpop.permute.xlu1 %1515  ;;  %v1519_v43 = vpop.permute.xlu0 %1518 }
0x19e3   :  { %v1524_v24 = vsel %vm189_vm1, %v1516_v42, %v1519_v43 }
0x19e4   :  { %v1525_v53 = vsel %vm198_vm2, %v1524_v24, %v1513_v14 }
0x19e6   :  { %v1522_v50 = vpop.permute.xlu1 %1521 }
0x19e7   :  { %v1526_v7 = vsel %vm207_vm3, %v1525_v53, %v1522_v50 }
0x19e8   :  { %v1527_v54 = vmul.f32 %v1526_v7, %v3619_v33 }
0x19ea   :  { %v1529_v55 = vpack.c.bf16 %v1527_v54, %v1527_v54 }
0x19ec   :  { %2581 = vmatmul.mubr.bf16.vlgmr.msra.gmra.mrb[24].mxu1 %v1529_v55 }
0x19ed   :  { %2605 = vmatpush3.bf16.msra.mxu1 %v3541_v44  ;;  %2620 = vmatprep.mubr.msk.bf16.mxu1 %vm3006_vm0, %v3004_v1 }
0x19ee   :  { %2606 = vmatprep.subr.bf16.mxu1 %v3004_v1 }
0x19f1   :  { %2607 = vmatpush3.bf16.msra.mxu1 %v3544_v45 }
0x19f2   :  { %2608 = vmatprep.subr.bf16.mxu1 %v3004_v1 }
0x19f5   :  { %2609 = vmatpush3.bf16.msra.mxu1 %v3549_v46 }
0x19f6   :  { %2610 = vmatprep.subr.bf16.mxu1 %v3004_v1 }
0x19f9   :  { %2611 = vmatpush3.bf16.msra.mxu1 %v3555_v47 }
0x19fa   :  { %2612 = vmatprep.subr.bf16.mxu1 %v3004_v1 }
0x19fd   :  { %2613 = vmatpush3.bf16.msra.mxu1 %v3559_v48 }
0x19fe   :  { %2614 = vmatprep.subr.bf16.mxu1 %v3004_v1 }
0x1a01   :  { %2615 = vmatpush3.bf16.msra.mxu1 %v3563_v49 }
0x1a02   :  { %2616 = vmatprep.subr.bf16.mxu1 %v3004_v1 }
0x1a05   :  { %2617 = vmatpush3.bf16.msra.mxu1 %v3568_v51 }
0x1a06   :  { %2618 = vmatprep.subr.bf16.mxu1 %v3004_v1 }
0x1a09   :  { %2619 = vmatpush3.bf16.msra.mxu1 %v3572_v52 }
0x1a0a   :  { %2644 = vmatprep.subr.bf16.mxu1 %v3004_v1 }
0x1a5e   :  { %v3716_v61 = vpop.f32.mrb[20].mxu1 }
0x1a5f   :  { %v3718_v56 = vpop.f32.mrb[21].mxu1 }
0x1a60   :  { %v3720_v57 = vpop.f32.mrb[22].mxu1 }
0x1a61   :  { %v3722_v58 = vpop.f32.mrb[23].mxu1 }
0x1abf   :  { %v1564_v59 = vpop.f32.mrb[24].mxu1 }
0x1ac0   :  { %v1570_v12 = vadd.f32 %v1564_v59, %v1335_v20  ;;  %v2582_v63 = vpop.f32.mrb[25].mxu1 }
0x1ac1   :  { %v1567_v3 = vpop.f32.mrb[26].mxu1 }
0x1ac2   :  { %2821 = vtanh.f32 %v1570_v12  ;;  %v2583_v37 = vpop.f32.mrb[27].mxu1  ;;  %v2159_v5 = vmul.f32 -1.442695, %v1570_v12 }
0x1ac4   :  { %2823 = vpow2.f32 %v2159_v5 }
0x1acc   :  { %v2822_v4 = vpop.eup %2821 }
0x1acd   :  { %1580 = vrot.lane.b32.xlu0 %v2822_v4, %s3005_s19  ;;  %v1343_v4 = vadd.f32 %v3644_v23, %v3651_v18 }
0x1ace   :  { %v2824_v14 = vpop.eup %2823 }
0x1acf   :  { %v1574_v6 = vadd.f32 1.0, %v2824_v14 }
0x1ad1   :  { %2825 = vrcp.f32 %v1574_v6 }
0x1adb   :  { %v2826_v8 = vpop.eup %2825 }
0x1adc   :  { %v1578_v38 = vmul.f32 %v2826_v8, %v3663_v62 }
0x1b3f   :  { %v1581_v10 = vpop.permute.xlu0 %1580 }
0x1b40   :  { %v1583_v35 = vmul.f32 %v2826_v8, %v1581_v10 }
0x1b42   :  { %1585 = vrot.lane.b32.xlu1 %v1583_v35, %s3005_s19 }
0x1bb4   :  { %v1586_v21 = vpop.permute.xlu1 %1585 }
0x1bb5   :  { %v1588_v22 = vadd.f32 %v1586_v21, %v1578_v38 }
0x1bb7   :  { %2827 = vtanh.f32 %v1588_v22 }
0x1bc1   :  { %v2828_v25 = vpop.eup %2827 }
0x1bc2   :  { %1591 = vrot.lane.b32.xlu0 %v2828_v25, %s3005_s19 }
0x1c34   :  { %v1592_v26 = vpop.permute.xlu0 %1591 }
0x1c35   :  { %v1594_v27 = vmul.f32 %v2826_v8, %v1592_v26 }
0x1c37   :  { %1599 = vrot.lane.b32.xlu0 %v1594_v27, %s3007_s4  ;;  %1596 = vrot.lane.b32.xlu1 %v1594_v27, %s2999_s1 }
0x1c3b   :  { %1602 = vrot.lane.b32.xlu1 %v1594_v27, %s3005_s19 }
0x1ca9   :  { %v1600_v28 = vpop.permute.xlu0 %1599  ;;  %v1597_v29 = vpop.permute.xlu1 %1596 }
0x1caa   :  { %v1605_v30 = vsel %vm189_vm1, %v1597_v29, %v1600_v28 }
0x1cab   :  { %v1606_v62 = vsel %vm198_vm2, %v1605_v30, %v1594_v27 }
0x1cad   :  { %v1603_v31 = vpop.permute.xlu1 %1602 }
0x1cae   :  { %v1607_v32 = vsel %vm207_vm3, %v1606_v62, %v1603_v31 }
0x1caf   :  { %v1608_v9 = vmul.f32 %v1607_v32, %v3619_v33 }
0x1cb1   :  { %v1610_v11 = vpack.c.bf16 %v1608_v9, %v1608_v9 }
0x1cb3   :  { %2601 = vmatmul.mubr.bf16.vlgmr.msra.gmra.mrb[28].mxu0 %v1610_v11 }
0x1cb4   :  { %2625 = vmatpush3.bf16.msra.mxu0 %v3541_v44  ;;  %2640 = vmatprep.mubr.msk.bf16.mxu0 %vm3006_vm0, %v3004_v1 }
0x1cb5   :  { %2626 = vmatprep.subr.bf16.mxu0 %v3004_v1 }
0x1cb8   :  { %2627 = vmatpush3.bf16.msra.mxu0 %v3544_v45 }
0x1cb9   :  { %2628 = vmatprep.subr.bf16.mxu0 %v3004_v1 }
0x1cbc   :  { %2629 = vmatpush3.bf16.msra.mxu0 %v3549_v46 }
0x1cbd   :  { %2630 = vmatprep.subr.bf16.mxu0 %v3004_v1 }
0x1cc0   :  { %2631 = vmatpush3.bf16.msra.mxu0 %v3555_v47 }
0x1cc1   :  { %2632 = vmatprep.subr.bf16.mxu0 %v3004_v1 }
0x1cc4   :  { %2633 = vmatpush3.bf16.msra.mxu0 %v3559_v48 }
0x1cc5   :  { %2634 = vmatprep.subr.bf16.mxu0 %v3004_v1 }
0x1cc8   :  { %2635 = vmatpush3.bf16.msra.mxu0 %v3563_v49 }
0x1cc9   :  { %2636 = vmatprep.subr.bf16.mxu0 %v3004_v1 }
0x1ccc   :  { %2637 = vmatpush3.bf16.msra.mxu0 %v3568_v51 }
0x1ccd   :  { %2638 = vmatprep.subr.bf16.mxu0 %v3004_v1 }
0x1cd0   :  { %2639 = vmatpush3.bf16.msra.mxu0 %v3572_v52 }
0x1cd1   :  { %2664 = vmatprep.subr.bf16.mxu0 %v3004_v1 }
0x1d86   :  { %v1645_v15 = vpop.f32.mrb[28].mxu0 }
0x1d87   :  { %v1651_v34 = vadd.f32 %v1645_v15, %v1340_v13  ;;  %v2602_v17 = vpop.f32.mrb[29].mxu0 }
0x1d88   :  { %v1648_v60 = vpop.f32.mrb[30].mxu0 }
0x1d89   :  { %2829 = vtanh.f32 %v1651_v34  ;;  %v2603_v16 = vpop.f32.mrb[31].mxu0  ;;  %v2160_v2 = vmul.f32 -1.442695, %v1651_v34 }
0x1d8a   :  { %v1348_v16 = vadd.f32 %v3651_v18, %v3718_v56 }
0x1d8b   :  { %2831 = vpow2.f32 %v2160_v2 }
0x1d93   :  { %v2830_v36 = vpop.eup %2829 }
0x1d94   :  { %1661 = vrot.lane.b32.xlu0 %v2830_v36, %s3005_s19 }
0x1d95   :  { %v2832_v39 = vpop.eup %2831 }
0x1d96   :  { %v1655_v40 = vadd.f32 1.0, %v2832_v39 }
0x1d98   :  { %2833 = vrcp.f32 %v1655_v40 }
0x1da2   :  { %v2834_v41 = vpop.eup %2833 }
0x1da3   :  { %v1659_v19 = vmul.f32 %v2834_v41, %v1588_v22 }
0x1e06   :  { %v1662_v0 = vpop.permute.xlu0 %1661 }
0x1e07   :  { %v1664_v42 = vmul.f32 %v2834_v41, %v1662_v0 }
0x1e09   :  { %1666 = vrot.lane.b32.xlu1 %v1664_v42, %s3005_s19 }
0x1e7b   :  { %v1667_v43 = vpop.permute.xlu1 %1666 }
0x1e7c   :  { %v1669_v24 = vadd.f32 %v1667_v43, %v1659_v19 }
0x1e7e   :  { %2835 = vtanh.f32 %v1669_v24 }
0x1e88   :  { %v2836_v50 = vpop.eup %2835 }
0x1e89   :  { %1672 = vrot.lane.b32.xlu0 %v2836_v50, %s3005_s19 }
0x1efb   :  { %v1673_v53 = vpop.permute.xlu0 %1672 }
0x1efc   :  { %v1675_v7 = vmul.f32 %v2834_v41, %v1673_v53 }
0x1efe   :  { %1680 = vrot.lane.b32.xlu0 %v1675_v7, %s3007_s4  ;;  %1677 = vrot.lane.b32.xlu1 %v1675_v7, %s2999_s1 }
0x1f02   :  { %1683 = vrot.lane.b32.xlu1 %v1675_v7, %s3005_s19 }
0x1f70   :  { %v1681_v54 = vpop.permute.xlu0 %1680  ;;  %v1678_v55 = vpop.permute.xlu1 %1677 }
0x1f71   :  { %v1686_v20 = vsel %vm189_vm1, %v1678_v55, %v1681_v54 }
0x1f72   :  { %v1687_v59 = vsel %vm198_vm2, %v1686_v20, %v1675_v7 }
0x1f74   :  { %v1684_v12 = vpop.permute.xlu1 %1683 }
0x1f75   :  { %v1688_v63 = vsel %vm207_vm3, %v1687_v59, %v1684_v12 }
0x1f76   :  { %v1689_v3 = vmul.f32 %v1688_v63, %v3619_v33 }
0x1f78   :  { %v1691_v37 = vpack.c.bf16 %v1689_v3, %v1689_v3 }
0x1f7a   :  { %2621 = vmatmul.mubr.bf16.vlgmr.msra.gmra.mrb[28].mxu1 %v1691_v37 }
0x1f7b   :  { %2645 = vmatpush3.bf16.msra.mxu1 %v3541_v44  ;;  %2660 = vmatprep.mubr.msk.bf16.mxu1 %vm3006_vm0, %v3004_v1 }
0x1f7c   :  { %2646 = vmatprep.subr.bf16.mxu1 %v3004_v1 }
0x1f7f   :  { %2647 = vmatpush3.bf16.msra.mxu1 %v3544_v45 }
0x1f80   :  { %2648 = vmatprep.subr.bf16.mxu1 %v3004_v1 }
0x1f83   :  { %2649 = vmatpush3.bf16.msra.mxu1 %v3549_v46 }
0x1f84   :  { %2650 = vmatprep.subr.bf16.mxu1 %v3004_v1 }
0x1f87   :  { %2651 = vmatpush3.bf16.msra.mxu1 %v3555_v47 }
0x1f88   :  { %2652 = vmatprep.subr.bf16.mxu1 %v3004_v1 }
0x1f8b   :  { %2653 = vmatpush3.bf16.msra.mxu1 %v3559_v48 }
0x1f8c   :  { %2654 = vmatprep.subr.bf16.mxu1 %v3004_v1 }
0x1f8f   :  { %2655 = vmatpush3.bf16.msra.mxu1 %v3563_v49 }
0x1f90   :  { %2656 = vmatprep.subr.bf16.mxu1 %v3004_v1 }
0x1f93   :  { %2657 = vmatpush3.bf16.msra.mxu1 %v3568_v51 }
0x1f94   :  { %2658 = vmatprep.subr.bf16.mxu1 %v3004_v1 }
0x1f97   :  { %2659 = vmatpush3.bf16.msra.mxu1 %v3572_v52 }
0x1f98   :  { %2684 = vmatprep.subr.bf16.mxu1 %v3004_v1 }
0x204d   :  { %v1726_v5 = vpop.f32.mrb[28].mxu1 }
0x204e   :  { %v1732_v14 = vadd.f32 %v1726_v5, %v1343_v4  ;;  %v2622_v6 = vpop.f32.mrb[29].mxu1 }
0x204f   :  { %v1729_v8 = vpop.f32.mrb[30].mxu1 }
0x2050   :  { %2837 = vtanh.f32 %v1732_v14  ;;  %v2623_v10 = vpop.f32.mrb[31].mxu1  ;;  %v2161_v38 = vmul.f32 -1.442695, %v1732_v14 }
0x2052   :  { %2839 = vpow2.f32 %v2161_v38 }
0x205a   :  { %v2838_v35 = vpop.eup %2837 }
0x205b   :  { %1742 = vrot.lane.b32.xlu0 %v2838_v35, %s3005_s19 }
0x205c   :  { %v2840_v21 = vpop.eup %2839 }
0x205d   :  { %v1736_v22 = vadd.f32 1.0, %v2840_v21 }
0x205f   :  { %2841 = vrcp.f32 %v1736_v22 }
0x2069   :  { %v2842_v25 = vpop.eup %2841 }
0x206a   :  { %v1740_v23 = vmul.f32 %v2842_v25, %v1669_v24 }
0x20cd   :  { %v1743_v26 = vpop.permute.xlu0 %1742 }
0x20ce   :  { %v1745_v27 = vmul.f32 %v2842_v25, %v1743_v26 }
0x20d0   :  { %1747 = vrot.lane.b32.xlu1 %v1745_v27, %s3005_s19 }
0x2142   :  { %v1748_v28 = vpop.permute.xlu1 %1747 }
0x2143   :  { %v1750_v29 = vadd.f32 %v1748_v28, %v1740_v23 }
0x2145   :  { %2843 = vtanh.f32 %v1750_v29 }
0x214f   :  { %v2844_v30 = vpop.eup %2843 }
0x2150   :  { %1753 = vrot.lane.b32.xlu0 %v2844_v30, %s3005_s19 }
0x21c2   :  { %v1754_v62 = vpop.permute.xlu0 %1753 }
0x21c3   :  { %v1756_v31 = vmul.f32 %v2842_v25, %v1754_v62 }
0x21c5   :  { %1761 = vrot.lane.b32.xlu0 %v1756_v31, %s3007_s4  ;;  %1758 = vrot.lane.b32.xlu1 %v1756_v31, %s2999_s1 }
0x21c9   :  { %1764 = vrot.lane.b32.xlu1 %v1756_v31, %s3005_s19 }
0x2237   :  { %v1762_v32 = vpop.permute.xlu0 %1761  ;;  %v1759_v9 = vpop.permute.xlu1 %1758 }
0x2238   :  { %v1767_v11 = vsel %vm189_vm1, %v1759_v9, %v1762_v32 }
0x2239   :  { %v1768_v13 = vsel %vm198_vm2, %v1767_v11, %v1756_v31  ;;  %v1356_v11 = vadd.f32 %v3716_v61, %v3651_v18 }
0x223b   :  { %v1765_v15 = vpop.permute.xlu1 %1764 }
0x223c   :  { %v1769_v34 = vsel %vm207_vm3, %v1768_v13, %v1765_v15 }
0x223d   :  { %v1770_v17 = vmul.f32 %v1769_v34, %v3619_v33 }
0x223f   :  { %v1772_v60 = vpack.c.bf16 %v1770_v17, %v1770_v17 }
0x2241   :  { %2641 = vmatmul.mubr.bf16.vlgmr.msra.gmra.mrb[32].mxu0 %v1772_v60 }
0x2242   :  { %2665 = vmatpush3.bf16.msra.mxu0 %v3541_v44  ;;  %2680 = vmatprep.mubr.msk.bf16.mxu0 %vm3006_vm0, %v3004_v1 }
0x2243   :  { %2666 = vmatprep.subr.bf16.mxu0 %v3004_v1 }
0x2246   :  { %2667 = vmatpush3.bf16.msra.mxu0 %v3544_v45 }
0x2247   :  { %2668 = vmatprep.subr.bf16.mxu0 %v3004_v1 }
0x224a   :  { %2669 = vmatpush3.bf16.msra.mxu0 %v3549_v46 }
0x224b   :  { %2670 = vmatprep.subr.bf16.mxu0 %v3004_v1 }
0x224e   :  { %2671 = vmatpush3.bf16.msra.mxu0 %v3555_v47 }
0x224f   :  { %2672 = vmatprep.subr.bf16.mxu0 %v3004_v1 }
0x2252   :  { %2673 = vmatpush3.bf16.msra.mxu0 %v3559_v48 }
0x2253   :  { %2674 = vmatprep.subr.bf16.mxu0 %v3004_v1 }
0x2256   :  { %2675 = vmatpush3.bf16.msra.mxu0 %v3563_v49 }
0x2257   :  { %2676 = vmatprep.subr.bf16.mxu0 %v3004_v1 }
0x225a   :  { %2677 = vmatpush3.bf16.msra.mxu0 %v3568_v51 }
0x225b   :  { %2678 = vmatprep.subr.bf16.mxu0 %v3004_v1 }
0x225e   :  { %2679 = vmatpush3.bf16.msra.mxu0 %v3572_v52 }
0x2314   :  { %v1807_v36 = vpop.f32.mrb[32].mxu0 }
0x2315   :  { %v1813_v2 = vadd.f32 %v1807_v36, %v1348_v16  ;;  %v2642_v39 = vpop.f32.mrb[33].mxu0 }
0x2316   :  { %v1810_v40 = vpop.f32.mrb[34].mxu0 }
0x2317   :  { %2845 = vtanh.f32 %v1813_v2  ;;  %v2643_v41 = vpop.f32.mrb[35].mxu0  ;;  %v2162_v42 = vmul.f32 -1.442695, %v1813_v2 }
0x2319   :  { %2847 = vpow2.f32 %v2162_v42 }
0x2321   :  { %v2846_v0 = vpop.eup %2845 }
0x2322   :  { %1823 = vrot.lane.b32.xlu0 %v2846_v0, %s3005_s19 }
0x2323   :  { %v2848_v19 = vpop.eup %2847 }
0x2324   :  { %v1817_v43 = vadd.f32 1.0, %v2848_v19 }
0x2326   :  { %2849 = vrcp.f32 %v1817_v43 }
0x2330   :  { %v2850_v24 = vpop.eup %2849 }
0x2331   :  { %v1821_v56 = vmul.f32 %v2850_v24, %v1750_v29 }
0x2394   :  { %v1824_v50 = vpop.permute.xlu0 %1823 }
0x2395   :  { %v1826_v53 = vmul.f32 %v2850_v24, %v1824_v50 }
0x2397   :  { %1828 = vrot.lane.b32.xlu1 %v1826_v53, %s3005_s19 }
0x2409   :  { %v1829_v7 = vpop.permute.xlu1 %1828 }
0x240a   :  { %v1831_v54 = vadd.f32 %v1829_v7, %v1821_v56 }
0x240c   :  { %2851 = vtanh.f32 %v1831_v54 }
0x2416   :  { %v2852_v55 = vpop.eup %2851 }
0x2417   :  { %1834 = vrot.lane.b32.xlu0 %v2852_v55, %s3005_s19 }
0x2489   :  { %v1835_v20 = vpop.permute.xlu0 %1834 }
0x248a   :  { %v1837_v59 = vmul.f32 %v2850_v24, %v1835_v20 }
0x248c   :  { %1842 = vrot.lane.b32.xlu0 %v1837_v59, %s3007_s4  ;;  %1839 = vrot.lane.b32.xlu1 %v1837_v59, %s2999_s1 }
0x2490   :  { %1845 = vrot.lane.b32.xlu1 %v1837_v59, %s3005_s19 }
0x24fe   :  { %v1843_v12 = vpop.permute.xlu0 %1842  ;;  %v1840_v63 = vpop.permute.xlu1 %1839 }
0x24ff   :  { %v1848_v3 = vsel %vm189_vm1, %v1840_v63, %v1843_v12  ;;  %v1359_v63 = vadd.f32 %v3720_v57, %v3651_v18 }
0x2500   :  { %v1849_v37 = vsel %vm198_vm2, %v1848_v3, %v1837_v59 }
0x2502   :  { %v1846_v4 = vpop.permute.xlu1 %1845 }
0x2503   :  { %v1850_v5 = vsel %vm207_vm3, %v1849_v37, %v1846_v4 }
0x2504   :  { %v1851_v14 = vmul.f32 %v1850_v5, %v3619_v33 }
0x2506   :  { %v1853_v6 = vpack.c.bf16 %v1851_v14, %v1851_v14 }
0x2508   :  { %2661 = vmatmul.mubr.bf16.vlgmr.msra.gmra.mrb[32].mxu1 %v1853_v6 }
0x2509   :  { %2685 = vmatpush3.bf16.msra.mxu1 %v3541_v44  ;;  %2700 = vmatprep.mubr.msk.bf16.mxu1 %vm3006_vm0, %v3004_v1  ;;  %v1351_v44 = vadd.f32 %v3651_v18, %v3722_v58  ;;  %v2166_v18 = vld [vmem:[%s3887_s6] ss:$0 sm:$0xff] }
0x250a   :  { %2686 = vmatprep.subr.bf16.mxu1 %v3004_v1 }
0x250d   :  { %2687 = vmatpush3.bf16.msra.mxu1 %v3544_v45 }
0x250e   :  { %2688 = vmatprep.subr.bf16.mxu1 %v3004_v1 }
0x2511   :  { %2689 = vmatpush3.bf16.msra.mxu1 %v3549_v46 }
0x2512   :  { %2690 = vmatprep.subr.bf16.mxu1 %v3004_v1 }
0x2515   :  { %2691 = vmatpush3.bf16.msra.mxu1 %v3555_v47 }
0x2516   :  { %2692 = vmatprep.subr.bf16.mxu1 %v3004_v1 }
0x2519   :  { %2693 = vmatpush3.bf16.msra.mxu1 %v3559_v48 }
0x251a   :  { %2694 = vmatprep.subr.bf16.mxu1 %v3004_v1 }
0x251d   :  { %2695 = vmatpush3.bf16.msra.mxu1 %v3563_v49 }
0x251e   :  { %2696 = vmatprep.subr.bf16.mxu1 %v3004_v1 }
0x2521   :  { %2697 = vmatpush3.bf16.msra.mxu1 %v3568_v51 }
0x2522   :  { %2698 = vmatprep.subr.bf16.mxu1 %v3004_v1 }
0x2525   :  { %2699 = vmatpush3.bf16.msra.mxu1 %v3572_v52 }
0x25db   :  { %v1888_v45 = vpop.f32.mrb[32].mxu1 }
0x25dc   :  { %v1894_v46 = vadd.f32 %v1888_v45, %v1351_v44  ;;  %v2662_v47 = vpop.f32.mrb[33].mxu1 }
0x25dd   :  { %v1891_v8 = vpop.f32.mrb[34].mxu1 }
0x25de   :  { %2853 = vtanh.f32 %v1894_v46  ;;  %v2663_v48 = vpop.f32.mrb[35].mxu1  ;;  %v2163_v49 = vmul.f32 -1.442695, %v1894_v46 }
0x25e0   :  { %2855 = vpow2.f32 %v2163_v49 }
0x25e8   :  { %v2854_v10 = vpop.eup %2853 }
0x25e9   :  { %1904 = vrot.lane.b32.xlu0 %v2854_v10, %s3005_s19 }
0x25ea   :  { %v2856_v35 = vpop.eup %2855 }
0x25eb   :  { %v1898_v51 = vadd.f32 1.0, %v2856_v35 }
0x25ed   :  { %2857 = vrcp.f32 %v1898_v51 }
0x25f7   :  { %v2858_v1 = vpop.eup %2857 }
0x25f8   :  { %v1902_v58 = vmul.f32 %v2858_v1, %v1831_v54 }
0x265b   :  { %v1905_v38 = vpop.permute.xlu0 %1904 }
0x265c   :  { %v1907_v52 = vmul.f32 %v2858_v1, %v1905_v38 }
0x265e   :  { %1909 = vrot.lane.b32.xlu1 %v1907_v52, %s3005_s19 }
0x26d0   :  { %v1910_v21 = vpop.permute.xlu1 %1909 }
0x26d1   :  { %v1912_v22 = vadd.f32 %v1910_v21, %v1902_v58  ;;  %v2167_v21 = vld [vmem:[#allocation4] ss:$0 sm:$0xff] }
0x26d3   :  { %2859 = vtanh.f32 %v1912_v22 }
0x26dd   :  { %v2860_v25 = vpop.eup %2859 }
0x26de   :  { %1915 = vrot.lane.b32.xlu0 %v2860_v25, %s3005_s19 }
0x2750   :  { %v1916_v26 = vpop.permute.xlu0 %1915 }
0x2751   :  { %v1918_v27 = vmul.f32 %v2858_v1, %v1916_v26 }
0x2753   :  { %1923 = vrot.lane.b32.xlu0 %v1918_v27, %s3007_s4  ;;  %1920 = vrot.lane.b32.xlu1 %v1918_v27, %s2999_s1 }
0x2757   :  { %1926 = vrot.lane.b32.xlu1 %v1918_v27, %s3005_s19 }
0x27c5   :  { %v1924_v23 = vpop.permute.xlu0 %1923  ;;  %v1921_v28 = vpop.permute.xlu1 %1920 }
0x27c6   :  { %v1929_v29 = vsel %vm189_vm1, %v1921_v28, %v1924_v23 }
0x27c7   :  { %v1930_v30 = vsel %vm198_vm2, %v1929_v29, %v1918_v27 }
0x27c9   :  { %v1927_v62 = vpop.permute.xlu1 %1926 }
0x27ca   :  { %v1931_v31 = vsel %vm207_vm3, %v1930_v30, %v1927_v62 }
0x27cb   :  { %v1932_v32 = vmul.f32 %v1931_v31, %v3619_v33 }
0x27cd   :  { %v1934_v9 = vpack.c.bf16 %v1932_v32, %v1932_v32 }
0x27cf   :  { %2681 = vmatmul.mubr.bf16.vlgmr.msra.gmra.mrb[36].mxu0 %v1934_v9 }
0x28a2   :  { %v1969_v13 = vpop.f32.mrb[36].mxu0 }
0x28a3   :  { %v1975_v15 = vadd.f32 %v1969_v13, %v1356_v11  ;;  %v2682_v34 = vpop.f32.mrb[37].mxu0 }
0x28a4   :  { %v1972_v17 = vpop.f32.mrb[38].mxu0 }
0x28a5   :  { %2861 = vtanh.f32 %v1975_v15  ;;  %v2683_v60 = vpop.f32.mrb[39].mxu0  ;;  %v2164_v36 = vmul.f32 -1.442695, %v1975_v15 }
0x28a7   :  { %2863 = vpow2.f32 %v2164_v36 }
0x28af   :  { %v2862_v16 = vpop.eup %2861 }
0x28b0   :  { %1985 = vrot.lane.b32.xlu0 %v2862_v16, %s3005_s19 }
0x28b1   :  { %v2864_v2 = vpop.eup %2863 }
0x28b2   :  { %v1979_v39 = vadd.f32 1.0, %v2864_v2 }
0x28b4   :  { %2865 = vrcp.f32 %v1979_v39 }
0x28be   :  { %v2866_v40 = vpop.eup %2865 }
0x28bf   :  { %v1983_v61 = vmul.f32 %v2866_v40, %v1912_v22 }
0x2922   :  { %v1986_v41 = vpop.permute.xlu0 %1985 }
0x2923   :  { %v1988_v0 = vmul.f32 %v2866_v40, %v1986_v41 }
0x2925   :  { %1990 = vrot.lane.b32.xlu1 %v1988_v0, %s3005_s19 }
0x2997   :  { %v1991_v42 = vpop.permute.xlu1 %1990 }
0x2998   :  { %v1993_v19 = vadd.f32 %v1991_v42, %v1983_v61 }
0x299a   :  { %2867 = vtanh.f32 %v1993_v19 }
0x29a4   :  { %v2868_v43 = vpop.eup %2867 }
0x29a5   :  { %1996 = vrot.lane.b32.xlu0 %v2868_v43, %s3005_s19 }
0x2a17   :  { %v1997_v24 = vpop.permute.xlu0 %1996 }
0x2a18   :  { %v1999_v50 = vmul.f32 %v2866_v40, %v1997_v24 }
0x2a1a   :  { %2004 = vrot.lane.b32.xlu0 %v1999_v50, %s3007_s4  ;;  %2001 = vrot.lane.b32.xlu1 %v1999_v50, %s2999_s1 }
0x2a1e   :  { %2007 = vrot.lane.b32.xlu1 %v1999_v50, %s3005_s19 }
0x2a8c   :  { %v2005_v53 = vpop.permute.xlu0 %2004  ;;  %v2002_v56 = vpop.permute.xlu1 %2001 }
0x2a8d   :  { %v2010_v7 = vsel %vm189_vm1, %v2002_v56, %v2005_v53 }
0x2a8e   :  { %v2011_v54 = vsel %vm198_vm2, %v2010_v7, %v1999_v50 }
0x2a90   :  { %v2008_v55 = vpop.permute.xlu1 %2007 }
0x2a91   :  { %v2012_v20 = vsel %vm207_vm3, %v2011_v54, %v2008_v55 }
0x2a92   :  { %v2013_v59 = vmul.f32 %v2012_v20, %v3619_v33 }
0x2a94   :  { %v2015_v12 = vpack.c.bf16 %v2013_v59, %v2013_v59 }
0x2a96   :  { %2701 = vmatmul.mubr.bf16.vlgmr.msra.gmra.mrb[36].mxu1 %v2015_v12 }
0x2b69   :  { %v2050_v3 = vpop.f32.mrb[36].mxu1 }
0x2b6a   :  { %v2056_v37 = vadd.f32 %v2050_v3, %v1359_v63  ;;  %v2702_v4 = vpop.f32.mrb[37].mxu1 }
0x2b6b   :  { %v2053_v5 = vpop.f32.mrb[38].mxu1 }
0x2b6c   :  { %2869 = vtanh.f32 %v2056_v37  ;;  %v2703_v14 = vpop.f32.mrb[39].mxu1  ;;  %v2165_v44 = vmul.f32 -1.442695, %v2056_v37 }
0x2b6e   :  { %2871 = vpow2.f32 %v2165_v44 }
0x2b76   :  { %v2870_v6 = vpop.eup %2869 }
0x2b77   :  { %2066 = vrot.lane.b32.xlu0 %v2870_v6, %s3005_s19 }
0x2b78   :  { %v2872_v45 = vpop.eup %2871 }
0x2b79   :  { %v2060_v46 = vadd.f32 1.0, %v2872_v45 }
0x2b7b   :  { %2873 = vrcp.f32 %v2060_v46 }
0x2b85   :  { %v2874_v33 = vpop.eup %2873 }
0x2b86   :  { %v2064_v57 = vmul.f32 %v2874_v33, %v1993_v19 }
0x2be9   :  { %v2067_v47 = vpop.permute.xlu0 %2066 }
0x2bea   :  { %v2069_v8 = vmul.f32 %v2874_v33, %v2067_v47 }
0x2bec   :  { %2071 = vrot.lane.b32.xlu1 %v2069_v8, %s3005_s19 }
0x2bf0   :  { %2087 = vrot.lane.b32.xlu1 %v2166_v18, %s2999_s1 }
0x2c5e   :  { %v2072_v48 = vpop.permute.xlu1 %2071 }
0x2c5f   :  { %v2074_v10 = vadd.f32 %v2072_v48, %v2064_v57 }
0x2c61   :  { %2875 = vtanh.f32 %v2074_v10 }
0x2c62   :  { %v2088_v51 = vpop.permute.xlu1 %2087 }
0x2c6b   :  { %v2876_v49 = vpop.eup %2875 }
0x2c6c   :  { %2077 = vrot.lane.b32.xlu0 %v2876_v49, %s3005_s19 }
0x2cde   :  { %v2078_v35 = vpop.permute.xlu0 %2077 }
0x2cdf   :  { %v2080_v1 = vmul.f32 %v2874_v33, %v2078_v35 }
0x2ce1   :  { %v2090_v38 = vmul.f32 %v2088_v51, %v2080_v1 }
0x2ce3   :  { %2092 = vrot.lane.b32.xlu0 %v2090_v38, %s2999_s1 }
0x2d55   :  { %v2093_v52 = vpop.permute.xlu0 %2092 }
0x2d56   :  { %v2095_v58 = vsel %vm189_vm1, %v2093_v52, 0.0 }
0x2d57   :  { %2096 = vadd.xlane.f32.xlu1 %v2095_v58 }
0x2de4   :  { %v2097_v22 = vpop.xlane.xlu1 %2096 }
0x2de5   :  { %v2105_v25 = vadd.f32 %v2167_v21, %v2097_v22 }
0x2de7   :  { %2107 = vst.msk [vmem:[%s3889_s8] sm:$0xff] %vm2106_vm4, %v2105_v25 }
0x2de8   :  { %2112 = vsyncpa [#allocation6], 1 }
0x2de9   :  { %2113 = vsyncpa [#allocation8], 1 }
0x2dea   :  { %2114 = vsyncpa [#allocation11], 1 }

</bundles_post_ra>
